<compile_context>
chip_gen: v7x
topology: tpu7x:2x2x1
jax: 0.10.0
libtpu: 0.0.40
codegen_flags: <defaults>
</compile_context>

<pallas_src>
import jax
import jax.numpy as jnp
from jax import lax
from jax.experimental import pallas as pl
from jax.experimental.pallas import tpu as pltpu


def _round_up(x, m):
    return (x + m - 1) // m * m


def _make_csdn_kernel(Cin, Cout, TH, Wp, W, out_dtype):
    nrb = TH // 8              # 8-row bands per H tile
    nlb = Wp // 128            # 128-lane blocks per row
    mask_cols = (W % 128 == 0)  # lane-roll wrap hits real data only in this case
    unroll_ch = Cin <= 8        # tiny channel counts: full static unroll

    def kernel(xc_ref, xh_ref, dw_ref, pw_ref, pb_ref, out_ref, dw_buf):
        # xc_ref : (1, Cin, TH, Wp)  centre rows of the padded input tile (VMEM)
        # xh_ref : (1, Cin, 8,  Wp)  halo rows below the tile (first 2 used)
        # dw_ref : (Cin, 9)          depthwise 3x3 weights, k = ky*3+kx   (SMEM)
        # pw_ref : (Cout, Cin)       pointwise weights                    (SMEM)
        # pb_ref : (Cout,)           fused bias = point_b + point_w@depth_b (SMEM)
        # out_ref: (1, Cout, TH, Wp)
        # dw_buf : (Cin, 8, Wp) f32  depthwise band staging scratch       (VMEM)
        row = lax.broadcasted_iota(jnp.int32, (8, Wp), 0)
        if mask_cols:
            col = lax.broadcasted_iota(jnp.int32, (8, Wp), 1)
            not_first = col != 0
            not_last = col != (W - 1)

        for r in range(nrb):
            lo = r * 8

            # ---- phase 1: 3x3 depthwise for this 8-row band, all channels ----
            def dw_band(c, carry, _r=r, _lo=lo):
                top = xc_ref[0, c, _lo:_lo + 8, :].astype(jnp.float32)
                if _r + 1 < nrb:
                    nxt = xc_ref[0, c, _lo + 8:_lo + 16, :]
                else:
                    nxt = xh_ref[0, c, :, :]
                nxt = nxt.astype(jnp.float32)

                acc = jnp.zeros((8, Wp), jnp.float32)
                for ky in range(3):
                    if ky == 0:
                        s = top                      # window rows 0..7 (aligned)
                    else:
                        # window rows ky..ky+7: aligned 8-row blocks combined via
                        # XLU sublane rolls + a ky-row select patch (no misaligned
                        # slices, no (TH+2)-row temporaries).
                        sh = 8 - ky
                        s = jnp.where(row >= sh,
                                      pltpu.roll(nxt, shift=sh, axis=0),
                                      pltpu.roll(top, shift=sh, axis=0))
                    lf = pltpu.roll(s, shift=1, axis=1)        # x[w-1]
                    rt = pltpu.roll(s, shift=Wp - 1, axis=1)   # x[w+1]
                    if mask_cols:
                        lf = jnp.where(not_first, lf, 0.0)
                        rt = jnp.where(not_last, rt, 0.0)
                    acc = (acc
                           + lf * dw_ref[c, 3 * ky + 0]
                           + s * dw_ref[c, 3 * ky + 1]
                           + rt * dw_ref[c, 3 * ky + 2])
                dw_buf[c, :, :] = acc
                return carry

            if unroll_ch:
                for c in range(Cin):
                    dw_band(c, 0)
            else:
                lax.fori_loop(0, Cin, dw_band, 0)

            # ---- phase 2: 1x1 pointwise with vreg-resident accumulators ----
            for lb in range(nlb):
                w0 = lb * 128

                def pw_band(c, accs, _w0=w0):
                    v = dw_buf[c, :, _w0:_w0 + 128]
                    return tuple(a + v * pw_ref[o, c] for o, a in enumerate(accs))

                accs = tuple(jnp.full((8, 128), pb_ref[o], dtype=jnp.float32)
                             for o in range(Cout))
                if unroll_ch:
                    for c in range(Cin):
                        accs = pw_band(c, accs)
                else:
                    accs = lax.fori_loop(0, Cin, pw_band, accs)

                for o in range(Cout):
                    out_ref[0, o, lo:lo + 8, w0:w0 + 128] = accs[o].astype(out_dtype)

    return kernel


def csdn_tem_forward(x, depth_w, depth_b, point_w, point_b, *, tile_h=None):
    """x: (N, Cin, H, W) NCHW.  Weights in PyTorch conv layouts:
       depth_w (Cin,1,3,3), depth_b (Cin,), point_w (Cout,Cin,1,1), point_b (Cout,)."""
    N, Cin, H, W = x.shape
    Cout = point_w.shape[0]
    itemsize = jnp.dtype(x.dtype).itemsize

    Wp = _round_up(W, 128)                       # lane-dense output width

    # --- per-generation VMEM budget (v7x: 64 MiB/TC, v5e/v6e: 128 MiB) ---
    try:
        vmem_cap = int(pltpu.get_tpu_info().vmem_capacity_bytes)
    except Exception:                            # older runtimes / host tracing
        vmem_cap = 64 * 1024 * 1024              # conservative (v7x-sized)
    vmem_limit = min((vmem_cap * 3) // 4, 100 * 1024 * 1024)

    per_row = 2 * (Cin + Cout) * Wp * itemsize   # double-buffered centre + out blocks
    fixed = Cin * 8 * Wp * (2 * itemsize + 4)    # halo buffers + dw staging scratch
    headroom = 8 * 1024 * 1024                   # compiler-internal scratch / temps
    # Never let even the minimum (TH=8) tile silently exceed the limit.
    vmem_limit = min(max(vmem_limit, fixed + 8 * per_row + headroom), vmem_cap)

    if tile_h is None:
        tile_h = (vmem_limit - headroom - fixed) // per_row

    H8 = _round_up(H, 8)
    th_max = max(8, min(int(tile_h) // 8 * 8, H8))
    Ht = pl.cdiv(H8, th_max)
    if N == 1 and H8 >= 16:
        Ht = max(Ht, 2)                          # batch-1: keep both v7x TCs busy
    TH = _round_up(pl.cdiv(H8, Ht), 8)           # minimise last-tile wasted rows
    Ht = pl.cdiv(H8, TH)
    Hp = Ht * TH + 8      # 1 top zero row + data + >=7 bottom zero rows

    # Zero padding supplies the conv's padding=1 halo and the lane-dense width.
    # (Single extra HBM copy of the input; could be removed for W%128==0 inputs
    #  with clamped index_maps + pl.when edge masking.)
    x_pad = jnp.pad(x, ((0, 0), (0, 0), (1, Hp - 1 - H), (0, Wp - W)))

    dw = depth_w.reshape(Cin, 9).astype(jnp.float32)     # row c = [k00..k22]
    pw = point_w.reshape(Cout, Cin).astype(jnp.float32)
    # Fold the depthwise bias into the pointwise bias (linear, no nonlinearity
    # in between):  pw @ (dwconv(x) + db) + pb == pw @ dwconv(x) + (pb + pw @ db)
    pb = (point_b.reshape(Cout).astype(jnp.float32)
          + pw @ depth_b.reshape(Cin).astype(jnp.float32))

    kernel = _make_csdn_kernel(Cin, Cout, TH, Wp, W, x.dtype)

    cost = pl.CostEstimate(
        flops=2 * N * Ht * TH * Wp * (9 * Cin + Cin * Cout),
        transcendentals=0,
        bytes_accessed=N * Wp * itemsize * (Cin * (Ht * TH + 8 * Ht) + Cout * Ht * TH))

    out_full = pl.pallas_call(
        kernel,
        out_shape=jax.ShapeDtypeStruct((N, Cout, Ht * TH, Wp), x.dtype),
        grid=(N, Ht),
        in_specs=[
            # centre rows of the tile
            pl.BlockSpec((1, Cin, TH, Wp), lambda n, hi: (n, 0, hi, 0)),
            # bottom halo (8-row block; first 2 rows used)
            pl.BlockSpec((1, Cin, 8, Wp),
                         lambda n, hi: (n, 0, (hi + 1) * (TH // 8), 0)),
            # small scalar tables -> SMEM
            pl.BlockSpec(memory_space=pltpu.MemorySpace.SMEM),
            pl.BlockSpec(memory_space=pltpu.MemorySpace.SMEM),
            pl.BlockSpec(memory_space=pltpu.MemorySpace.SMEM),
        ],
        out_specs=pl.BlockSpec((1, Cout, TH, Wp), lambda n, hi: (n, 0, hi, 0)),
        scratch_shapes=[pltpu.VMEM((Cin, 8, Wp), jnp.float32)],
        compiler_params=pltpu.CompilerParams(
            dimension_semantics=("parallel", "parallel"),
            vmem_limit_bytes=int(vmem_limit)),
        cost_estimate=cost,
    )(x_pad, x_pad, dw, pw, pb)

    # Strip H/W padding (a no-op when H/W are already tile/lane aligned).
    return out_full[:, :, :H, :W]


def csdn_tem_reference(x, depth_w, depth_b, point_w, point_b):
    """Pure-JAX reference (matches PyTorch semantics) for validation."""
    Cin = x.shape[1]
    out = lax.conv_general_dilated(
        x, depth_w, window_strides=(1, 1), padding=((1, 1), (1, 1)),
        dimension_numbers=("NCHW", "OIHW", "NCHW"),
        feature_group_count=Cin)
    out = out + depth_b[None, :, None, None]
    out = lax.conv_general_dilated(
        out, point_w, window_strides=(1, 1), padding=((0, 0), (0, 0)),
        dimension_numbers=("NCHW", "OIHW", "NCHW"))
    out = out + point_b[None, :, None, None]
    return out


if __name__ == "__main__":
    N, Cin, Cout, H, W = 2, 4, 8, 16, 16

    key = jax.random.PRNGKey(0)
    k1, k2, k3, k4, k5 = jax.random.split(key, 5)
    x = jax.random.normal(k1, (N, Cin, H, W), jnp.float32)
    # synthetic parameters (shapes from CSDN_Tem.__init__)
    depth_w = jax.random.normal(k2, (Cin, 1, 3, 3), jnp.float32) * 0.2
    depth_b = jax.random.normal(k3, (Cin,), jnp.float32) * 0.1
    point_w = jax.random.normal(k4, (Cout, Cin, 1, 1), jnp.float32) * 0.2
    point_b = jax.random.normal(k5, (Cout,), jnp.float32) * 0.1

    out = csdn_tem_forward(x, depth_w, depth_b, point_w, point_b)
    out = jax.block_until_ready(out)

    ref = csdn_tem_reference(x, depth_w, depth_b, point_w, point_b)
    assert out.shape == (N, Cout, H, W), out.shape
    assert jnp.allclose(out, ref, atol=1e-4, rtol=1e-4), "mismatch vs reference"

    print("KERNEL_OK")
</pallas_src>

<mosaic_0001>
module attributes {stable_mosaic.version = 11 : i64} {
  func.func @kernel(%arg0: i32, %arg1: i32, %arg2: memref<1x4x16x128xf32, #tpu.memory_space<vmem>>, %arg3: memref<1x4x8x128xf32, #tpu.memory_space<vmem>>, %arg4: memref<4x9xf32, #tpu.memory_space<smem>>, %arg5: memref<8x4xf32, #tpu.memory_space<smem>>, %arg6: memref<8xf32, #tpu.memory_space<smem>>, %arg7: memref<1x8x16x128xf32, #tpu.memory_space<vmem>>, %arg8: memref<4x8x128xf32, #tpu.memory_space<vmem>>) attributes {dimension_semantics = [#tpu.dimension_semantics<parallel>, #tpu.dimension_semantics<parallel>], iteration_bounds = array<i64: 2, 1>, scalar_prefetch = 0 : i64, scratch_operands = 1 : i64, tpu.core_type = #tpu.core_type<tc>, window_params = [{transform_indices = @transform_0, window_bounds = array<i64: 1, 4, 16, 128>}, {transform_indices = @transform_1, window_bounds = array<i64: 1, 4, 8, 128>}, {transform_indices = @transform_2, window_bounds = array<i64: 4, 9>}, {transform_indices = @transform_3, window_bounds = array<i64: 8, 4>}, {transform_indices = @transform_4, window_bounds = array<i64: 8>}, {transform_indices = @transform_5, window_bounds = array<i64: 1, 8, 16, 128>}]} {
    %0 = tpu.iota {dimensions = array<i32: 0>} : vector<8x128xi32>
    %c0 = arith.constant 0 : index
    %c0_0 = arith.constant 0 : index
    %c0_1 = arith.constant 0 : index
    %c0_2 = arith.constant 0 : index
    %1 = vector.load %arg2[%c0, %c0_0, %c0_1, %c0_2] : memref<1x4x16x128xf32, #tpu.memory_space<vmem>>, vector<1x1x8x128xf32>
    %2 = vector.shape_cast %1 : vector<1x1x8x128xf32> to vector<8x128xf32>
    %c0_3 = arith.constant 0 : index
    %c0_4 = arith.constant 0 : index
    %c8 = arith.constant 8 : index
    %c0_5 = arith.constant 0 : index
    %3 = vector.load %arg2[%c0_3, %c0_4, %c8, %c0_5] : memref<1x4x16x128xf32, #tpu.memory_space<vmem>>, vector<1x1x8x128xf32>
    %4 = vector.shape_cast %3 : vector<1x1x8x128xf32> to vector<8x128xf32>
    %cst = arith.constant 0.000000e+00 : f32
    %5 = vector.broadcast %cst : f32 to vector<8x128xf32>
    %c1_i32 = arith.constant 1 : i32
    %6 = tpu.dynamic_rotate %2 by %c1_i32 dim 1 : vector<8x128xf32>, i32 -> vector<8x128xf32>
    %c127_i32 = arith.constant 127 : i32
    %7 = tpu.dynamic_rotate %2 by %c127_i32 dim 1 : vector<8x128xf32>, i32 -> vector<8x128xf32>
    %c0_6 = arith.constant 0 : index
    %c0_7 = arith.constant 0 : index
    %8 = memref.load %arg4[%c0_6, %c0_7] : memref<4x9xf32, #tpu.memory_space<smem>>
    %9 = vector.broadcast %8 : f32 to vector<8x128xf32>
    %10 = arith.mulf %6, %9 : vector<8x128xf32>
    %11 = arith.addf %5, %10 : vector<8x128xf32>
    %c0_8 = arith.constant 0 : index
    %c1 = arith.constant 1 : index
    %12 = memref.load %arg4[%c0_8, %c1] : memref<4x9xf32, #tpu.memory_space<smem>>
    %13 = vector.broadcast %12 : f32 to vector<8x128xf32>
    %14 = arith.mulf %2, %13 : vector<8x128xf32>
    %15 = arith.addf %11, %14 : vector<8x128xf32>
    %c0_9 = arith.constant 0 : index
    %c2 = arith.constant 2 : index
    %16 = memref.load %arg4[%c0_9, %c2] : memref<4x9xf32, #tpu.memory_space<smem>>
    %17 = vector.broadcast %16 : f32 to vector<8x128xf32>
    %18 = arith.mulf %7, %17 : vector<8x128xf32>
    %19 = arith.addf %15, %18 : vector<8x128xf32>
    %c7_i32 = arith.constant 7 : i32
    %20 = vector.broadcast %c7_i32 : i32 to vector<8x128xi32>
    %21 = arith.cmpi sge, %0, %20 : vector<8x128xi32>
    %c7_i32_10 = arith.constant 7 : i32
    %22 = tpu.dynamic_rotate %4 by %c7_i32_10 dim 0 : vector<8x128xf32>, i32 -> vector<8x128xf32>
    %c7_i32_11 = arith.constant 7 : i32
    %23 = tpu.dynamic_rotate %2 by %c7_i32_11 dim 0 : vector<8x128xf32>, i32 -> vector<8x128xf32>
    %24 = arith.select %21, %22, %23 : vector<8x128xi1>, vector<8x128xf32>
    %c1_i32_12 = arith.constant 1 : i32
    %25 = tpu.dynamic_rotate %24 by %c1_i32_12 dim 1 : vector<8x128xf32>, i32 -> vector<8x128xf32>
    %c127_i32_13 = arith.constant 127 : i32
    %26 = tpu.dynamic_rotate %24 by %c127_i32_13 dim 1 : vector<8x128xf32>, i32 -> vector<8x128xf32>
    %c0_14 = arith.constant 0 : index
    %c3 = arith.constant 3 : index
    %27 = memref.load %arg4[%c0_14, %c3] : memref<4x9xf32, #tpu.memory_space<smem>>
    %28 = vector.broadcast %27 : f32 to vector<8x128xf32>
    %29 = arith.mulf %25, %28 : vector<8x128xf32>
    %30 = arith.addf %19, %29 : vector<8x128xf32>
    %c0_15 = arith.constant 0 : index
    %c4 = arith.constant 4 : index
    %31 = memref.load %arg4[%c0_15, %c4] : memref<4x9xf32, #tpu.memory_space<smem>>
    %32 = vector.broadcast %31 : f32 to vector<8x128xf32>
    %33 = arith.mulf %24, %32 : vector<8x128xf32>
    %34 = arith.addf %30, %33 : vector<8x128xf32>
    %c0_16 = arith.constant 0 : index
    %c5 = arith.constant 5 : index
    %35 = memref.load %arg4[%c0_16, %c5] : memref<4x9xf32, #tpu.memory_space<smem>>
    %36 = vector.broadcast %35 : f32 to vector<8x128xf32>
    %37 = arith.mulf %26, %36 : vector<8x128xf32>
    %38 = arith.addf %34, %37 : vector<8x128xf32>
    %c6_i32 = arith.constant 6 : i32
    %39 = vector.broadcast %c6_i32 : i32 to vector<8x128xi32>
    %40 = arith.cmpi sge, %0, %39 : vector<8x128xi32>
    %c6_i32_17 = arith.constant 6 : i32
    %41 = tpu.dynamic_rotate %4 by %c6_i32_17 dim 0 : vector<8x128xf32>, i32 -> vector<8x128xf32>
    %c6_i32_18 = arith.constant 6 : i32
    %42 = tpu.dynamic_rotate %2 by %c6_i32_18 dim 0 : vector<8x128xf32>, i32 -> vector<8x128xf32>
    %43 = arith.select %40, %41, %42 : vector<8x128xi1>, vector<8x128xf32>
    %c1_i32_19 = arith.constant 1 : i32
    %44 = tpu.dynamic_rotate %43 by %c1_i32_19 dim 1 : vector<8x128xf32>, i32 -> vector<8x128xf32>
    %c127_i32_20 = arith.constant 127 : i32
    %45 = tpu.dynamic_rotate %43 by %c127_i32_20 dim 1 : vector<8x128xf32>, i32 -> vector<8x128xf32>
    %c0_21 = arith.constant 0 : index
    %c6 = arith.constant 6 : index
    %46 = memref.load %arg4[%c0_21, %c6] : memref<4x9xf32, #tpu.memory_space<smem>>
    %47 = vector.broadcast %46 : f32 to vector<8x128xf32>
    %48 = arith.mulf %44, %47 : vector<8x128xf32>
    %49 = arith.addf %38, %48 : vector<8x128xf32>
    %c0_22 = arith.constant 0 : index
    %c7 = arith.constant 7 : index
    %50 = memref.load %arg4[%c0_22, %c7] : memref<4x9xf32, #tpu.memory_space<smem>>
    %51 = vector.broadcast %50 : f32 to vector<8x128xf32>
    %52 = arith.mulf %43, %51 : vector<8x128xf32>
    %53 = arith.addf %49, %52 : vector<8x128xf32>
    %c0_23 = arith.constant 0 : index
    %c8_24 = arith.constant 8 : index
    %54 = memref.load %arg4[%c0_23, %c8_24] : memref<4x9xf32, #tpu.memory_space<smem>>
    %55 = vector.broadcast %54 : f32 to vector<8x128xf32>
    %56 = arith.mulf %45, %55 : vector<8x128xf32>
    %57 = arith.addf %53, %56 : vector<8x128xf32>
    %c0_25 = arith.constant 0 : index
    %c0_26 = arith.constant 0 : index
    %c0_27 = arith.constant 0 : index
    %58 = vector.load %arg8[%c0_25, %c0_26, %c0_27] : memref<4x8x128xf32, #tpu.memory_space<vmem>>, vector<1x8x128xf32>
    %59 = vector.shape_cast %58 : vector<1x8x128xf32> to vector<8x128xf32>
    %60 = vector.shape_cast %57 : vector<8x128xf32> to vector<1x8x128xf32>
    tpu.vector_store %arg8[%c0_25, %c0_26, %c0_27], %60 {strides = array<i32>} : memref<4x8x128xf32, #tpu.memory_space<vmem>>, vector<1x8x128xf32>,
    %c0_28 = arith.constant 0 : index
    %c1_29 = arith.constant 1 : index
    %c0_30 = arith.constant 0 : index
    %c0_31 = arith.constant 0 : index
    %61 = vector.load %arg2[%c0_28, %c1_29, %c0_30, %c0_31] : memref<1x4x16x128xf32, #tpu.memory_space<vmem>>, vector<1x1x8x128xf32>
    %62 = vector.shape_cast %61 : vector<1x1x8x128xf32> to vector<8x128xf32>
    %c0_32 = arith.constant 0 : index
    %c1_33 = arith.constant 1 : index
    %c8_34 = arith.constant 8 : index
    %c0_35 = arith.constant 0 : index
    %63 = vector.load %arg2[%c0_32, %c1_33, %c8_34, %c0_35] : memref<1x4x16x128xf32, #tpu.memory_space<vmem>>, vector<1x1x8x128xf32>
    %64 = vector.shape_cast %63 : vector<1x1x8x128xf32> to vector<8x128xf32>
    %cst_36 = arith.constant 0.000000e+00 : f32
    %65 = vector.broadcast %cst_36 : f32 to vector<8x128xf32>
    %c1_i32_37 = arith.constant 1 : i32
    %66 = tpu.dynamic_rotate %62 by %c1_i32_37 dim 1 : vector<8x128xf32>, i32 -> vector<8x128xf32>
    %c127_i32_38 = arith.constant 127 : i32
    %67 = tpu.dynamic_rotate %62 by %c127_i32_38 dim 1 : vector<8x128xf32>, i32 -> vector<8x128xf32>
    %c1_39 = arith.constant 1 : index
    %c0_40 = arith.constant 0 : index
    %68 = memref.load %arg4[%c1_39, %c0_40] : memref<4x9xf32, #tpu.memory_space<smem>>
    %69 = vector.broadcast %68 : f32 to vector<8x128xf32>
    %70 = arith.mulf %66, %69 : vector<8x128xf32>
    %71 = arith.addf %65, %70 : vector<8x128xf32>
    %c1_41 = arith.constant 1 : index
    %c1_42 = arith.constant 1 : index
    %72 = memref.load %arg4[%c1_41, %c1_42] : memref<4x9xf32, #tpu.memory_space<smem>>
    %73 = vector.broadcast %72 : f32 to vector<8x128xf32>
    %74 = arith.mulf %62, %73 : vector<8x128xf32>
    %75 = arith.addf %71, %74 : vector<8x128xf32>
    %c1_43 = arith.constant 1 : index
    %c2_44 = arith.constant 2 : index
    %76 = memref.load %arg4[%c1_43, %c2_44] : memref<4x9xf32, #tpu.memory_space<smem>>
    %77 = vector.broadcast %76 : f32 to vector<8x128xf32>
    %78 = arith.mulf %67, %77 : vector<8x128xf32>
    %79 = arith.addf %75, %78 : vector<8x128xf32>
    %c7_i32_45 = arith.constant 7 : i32
    %80 = vector.broadcast %c7_i32_45 : i32 to vector<8x128xi32>
    %81 = arith.cmpi sge, %0, %80 : vector<8x128xi32>
    %c7_i32_46 = arith.constant 7 : i32
    %82 = tpu.dynamic_rotate %64 by %c7_i32_46 dim 0 : vector<8x128xf32>, i32 -> vector<8x128xf32>
    %c7_i32_47 = arith.constant 7 : i32
    %83 = tpu.dynamic_rotate %62 by %c7_i32_47 dim 0 : vector<8x128xf32>, i32 -> vector<8x128xf32>
    %84 = arith.select %81, %82, %83 : vector<8x128xi1>, vector<8x128xf32>
    %c1_i32_48 = arith.constant 1 : i32
    %85 = tpu.dynamic_rotate %84 by %c1_i32_48 dim 1 : vector<8x128xf32>, i32 -> vector<8x128xf32>
    %c127_i32_49 = arith.constant 127 : i32
    %86 = tpu.dynamic_rotate %84 by %c127_i32_49 dim 1 : vector<8x128xf32>, i32 -> vector<8x128xf32>
    %c1_50 = arith.constant 1 : index
    %c3_51 = arith.constant 3 : index
    %87 = memref.load %arg4[%c1_50, %c3_51] : memref<4x9xf32, #tpu.memory_space<smem>>
    %88 = vector.broadcast %87 : f32 to vector<8x128xf32>
    %89 = arith.mulf %85, %88 : vector<8x128xf32>
    %90 = arith.addf %79, %89 : vector<8x128xf32>
    %c1_52 = arith.constant 1 : index
    %c4_53 = arith.constant 4 : index
    %91 = memref.load %arg4[%c1_52, %c4_53] : memref<4x9xf32, #tpu.memory_space<smem>>
    %92 = vector.broadcast %91 : f32 to vector<8x128xf32>
    %93 = arith.mulf %84, %92 : vector<8x128xf32>
    %94 = arith.addf %90, %93 : vector<8x128xf32>
    %c1_54 = arith.constant 1 : index
    %c5_55 = arith.constant 5 : index
    %95 = memref.load %arg4[%c1_54, %c5_55] : memref<4x9xf32, #tpu.memory_space<smem>>
    %96 = vector.broadcast %95 : f32 to vector<8x128xf32>
    %97 = arith.mulf %86, %96 : vector<8x128xf32>
    %98 = arith.addf %94, %97 : vector<8x128xf32>
    %c6_i32_56 = arith.constant 6 : i32
    %99 = vector.broadcast %c6_i32_56 : i32 to vector<8x128xi32>
    %100 = arith.cmpi sge, %0, %99 : vector<8x128xi32>
    %c6_i32_57 = arith.constant 6 : i32
    %101 = tpu.dynamic_rotate %64 by %c6_i32_57 dim 0 : vector<8x128xf32>, i32 -> vector<8x128xf32>
    %c6_i32_58 = arith.constant 6 : i32
    %102 = tpu.dynamic_rotate %62 by %c6_i32_58 dim 0 : vector<8x128xf32>, i32 -> vector<8x128xf32>
    %103 = arith.select %100, %101, %102 : vector<8x128xi1>, vector<8x128xf32>
    %c1_i32_59 = arith.constant 1 : i32
    %104 = tpu.dynamic_rotate %103 by %c1_i32_59 dim 1 : vector<8x128xf32>, i32 -> vector<8x128xf32>
    %c127_i32_60 = arith.constant 127 : i32
    %105 = tpu.dynamic_rotate %103 by %c127_i32_60 dim 1 : vector<8x128xf32>, i32 -> vector<8x128xf32>
    %c1_61 = arith.constant 1 : index
    %c6_62 = arith.constant 6 : index
    %106 = memref.load %arg4[%c1_61, %c6_62] : memref<4x9xf32, #tpu.memory_space<smem>>
    %107 = vector.broadcast %106 : f32 to vector<8x128xf32>
    %108 = arith.mulf %104, %107 : vector<8x128xf32>
    %109 = arith.addf %98, %108 : vector<8x128xf32>
    %c1_63 = arith.constant 1 : index
    %c7_64 = arith.constant 7 : index
    %110 = memref.load %arg4[%c1_63, %c7_64] : memref<4x9xf32, #tpu.memory_space<smem>>
    %111 = vector.broadcast %110 : f32 to vector<8x128xf32>
    %112 = arith.mulf %103, %111 : vector<8x128xf32>
    %113 = arith.addf %109, %112 : vector<8x128xf32>
    %c1_65 = arith.constant 1 : index
    %c8_66 = arith.constant 8 : index
    %114 = memref.load %arg4[%c1_65, %c8_66] : memref<4x9xf32, #tpu.memory_space<smem>>
    %115 = vector.broadcast %114 : f32 to vector<8x128xf32>
    %116 = arith.mulf %105, %115 : vector<8x128xf32>
    %117 = arith.addf %113, %116 : vector<8x128xf32>
    %c1_67 = arith.constant 1 : index
    %c0_68 = arith.constant 0 : index
    %c0_69 = arith.constant 0 : index
    %118 = vector.load %arg8[%c1_67, %c0_68, %c0_69] : memref<4x8x128xf32, #tpu.memory_space<vmem>>, vector<1x8x128xf32>
    %119 = vector.shape_cast %118 : vector<1x8x128xf32> to vector<8x128xf32>
    %120 = vector.shape_cast %117 : vector<8x128xf32> to vector<1x8x128xf32>
    tpu.vector_store %arg8[%c1_67, %c0_68, %c0_69], %120 {strides = array<i32>} : memref<4x8x128xf32, #tpu.memory_space<vmem>>, vector<1x8x128xf32>,
    %c0_70 = arith.constant 0 : index
    %c2_71 = arith.constant 2 : index
    %c0_72 = arith.constant 0 : index
    %c0_73 = arith.constant 0 : index
    %121 = vector.load %arg2[%c0_70, %c2_71, %c0_72, %c0_73] : memref<1x4x16x128xf32, #tpu.memory_space<vmem>>, vector<1x1x8x128xf32>
    %122 = vector.shape_cast %121 : vector<1x1x8x128xf32> to vector<8x128xf32>
    %c0_74 = arith.constant 0 : index
    %c2_75 = arith.constant 2 : index
    %c8_76 = arith.constant 8 : index
    %c0_77 = arith.constant 0 : index
    %123 = vector.load %arg2[%c0_74, %c2_75, %c8_76, %c0_77] : memref<1x4x16x128xf32, #tpu.memory_space<vmem>>, vector<1x1x8x128xf32>
    %124 = vector.shape_cast %123 : vector<1x1x8x128xf32> to vector<8x128xf32>
    %cst_78 = arith.constant 0.000000e+00 : f32
    %125 = vector.broadcast %cst_78 : f32 to vector<8x128xf32>
    %c1_i32_79 = arith.constant 1 : i32
    %126 = tpu.dynamic_rotate %122 by %c1_i32_79 dim 1 : vector<8x128xf32>, i32 -> vector<8x128xf32>
    %c127_i32_80 = arith.constant 127 : i32
    %127 = tpu.dynamic_rotate %122 by %c127_i32_80 dim 1 : vector<8x128xf32>, i32 -> vector<8x128xf32>
    %c2_81 = arith.constant 2 : index
    %c0_82 = arith.constant 0 : index
    %128 = memref.load %arg4[%c2_81, %c0_82] : memref<4x9xf32, #tpu.memory_space<smem>>
    %129 = vector.broadcast %128 : f32 to vector<8x128xf32>
    %130 = arith.mulf %126, %129 : vector<8x128xf32>
    %131 = arith.addf %125, %130 : vector<8x128xf32>
    %c2_83 = arith.constant 2 : index
    %c1_84 = arith.constant 1 : index
    %132 = memref.load %arg4[%c2_83, %c1_84] : memref<4x9xf32, #tpu.memory_space<smem>>
    %133 = vector.broadcast %132 : f32 to vector<8x128xf32>
    %134 = arith.mulf %122, %133 : vector<8x128xf32>
    %135 = arith.addf %131, %134 : vector<8x128xf32>
    %c2_85 = arith.constant 2 : index
    %c2_86 = arith.constant 2 : index
    %136 = memref.load %arg4[%c2_85, %c2_86] : memref<4x9xf32, #tpu.memory_space<smem>>
    %137 = vector.broadcast %136 : f32 to vector<8x128xf32>
    %138 = arith.mulf %127, %137 : vector<8x128xf32>
    %139 = arith.addf %135, %138 : vector<8x128xf32>
    %c7_i32_87 = arith.constant 7 : i32
    %140 = vector.broadcast %c7_i32_87 : i32 to vector<8x128xi32>
    %141 = arith.cmpi sge, %0, %140 : vector<8x128xi32>
    %c7_i32_88 = arith.constant 7 : i32
    %142 = tpu.dynamic_rotate %124 by %c7_i32_88 dim 0 : vector<8x128xf32>, i32 -> vector<8x128xf32>
    %c7_i32_89 = arith.constant 7 : i32
    %143 = tpu.dynamic_rotate %122 by %c7_i32_89 dim 0 : vector<8x128xf32>, i32 -> vector<8x128xf32>
    %144 = arith.select %141, %142, %143 : vector<8x128xi1>, vector<8x128xf32>
    %c1_i32_90 = arith.constant 1 : i32
    %145 = tpu.dynamic_rotate %144 by %c1_i32_90 dim 1 : vector<8x128xf32>, i32 -> vector<8x128xf32>
    %c127_i32_91 = arith.constant 127 : i32
    %146 = tpu.dynamic_rotate %144 by %c127_i32_91 dim 1 : vector<8x128xf32>, i32 -> vector<8x128xf32>
    %c2_92 = arith.constant 2 : index
    %c3_93 = arith.constant 3 : index
    %147 = memref.load %arg4[%c2_92, %c3_93] : memref<4x9xf32, #tpu.memory_space<smem>>
    %148 = vector.broadcast %147 : f32 to vector<8x128xf32>
    %149 = arith.mulf %145, %148 : vector<8x128xf32>
    %150 = arith.addf %139, %149 : vector<8x128xf32>
    %c2_94 = arith.constant 2 : index
    %c4_95 = arith.constant 4 : index
    %151 = memref.load %arg4[%c2_94, %c4_95] : memref<4x9xf32, #tpu.memory_space<smem>>
    %152 = vector.broadcast %151 : f32 to vector<8x128xf32>
    %153 = arith.mulf %144, %152 : vector<8x128xf32>
    %154 = arith.addf %150, %153 : vector<8x128xf32>
    %c2_96 = arith.constant 2 : index
    %c5_97 = arith.constant 5 : index
    %155 = memref.load %arg4[%c2_96, %c5_97] : memref<4x9xf32, #tpu.memory_space<smem>>
    %156 = vector.broadcast %155 : f32 to vector<8x128xf32>
    %157 = arith.mulf %146, %156 : vector<8x128xf32>
    %158 = arith.addf %154, %157 : vector<8x128xf32>
    %c6_i32_98 = arith.constant 6 : i32
    %159 = vector.broadcast %c6_i32_98 : i32 to vector<8x128xi32>
    %160 = arith.cmpi sge, %0, %159 : vector<8x128xi32>
    %c6_i32_99 = arith.constant 6 : i32
    %161 = tpu.dynamic_rotate %124 by %c6_i32_99 dim 0 : vector<8x128xf32>, i32 -> vector<8x128xf32>
    %c6_i32_100 = arith.constant 6 : i32
    %162 = tpu.dynamic_rotate %122 by %c6_i32_100 dim 0 : vector<8x128xf32>, i32 -> vector<8x128xf32>
    %163 = arith.select %160, %161, %162 : vector<8x128xi1>, vector<8x128xf32>
    %c1_i32_101 = arith.constant 1 : i32
    %164 = tpu.dynamic_rotate %163 by %c1_i32_101 dim 1 : vector<8x128xf32>, i32 -> vector<8x128xf32>
    %c127_i32_102 = arith.constant 127 : i32
    %165 = tpu.dynamic_rotate %163 by %c127_i32_102 dim 1 : vector<8x128xf32>, i32 -> vector<8x128xf32>
    %c2_103 = arith.constant 2 : index
    %c6_104 = arith.constant 6 : index
    %166 = memref.load %arg4[%c2_103, %c6_104] : memref<4x9xf32, #tpu.memory_space<smem>>
    %167 = vector.broadcast %166 : f32 to vector<8x128xf32>
    %168 = arith.mulf %164, %167 : vector<8x128xf32>
    %169 = arith.addf %158, %168 : vector<8x128xf32>
    %c2_105 = arith.constant 2 : index
    %c7_106 = arith.constant 7 : index
    %170 = memref.load %arg4[%c2_105, %c7_106] : memref<4x9xf32, #tpu.memory_space<smem>>
    %171 = vector.broadcast %170 : f32 to vector<8x128xf32>
    %172 = arith.mulf %163, %171 : vector<8x128xf32>
    %173 = arith.addf %169, %172 : vector<8x128xf32>
    %c2_107 = arith.constant 2 : index
    %c8_108 = arith.constant 8 : index
    %174 = memref.load %arg4[%c2_107, %c8_108] : memref<4x9xf32, #tpu.memory_space<smem>>
    %175 = vector.broadcast %174 : f32 to vector<8x128xf32>
    %176 = arith.mulf %165, %175 : vector<8x128xf32>
    %177 = arith.addf %173, %176 : vector<8x128xf32>
    %c2_109 = arith.constant 2 : index
    %c0_110 = arith.constant 0 : index
    %c0_111 = arith.constant 0 : index
    %178 = vector.load %arg8[%c2_109, %c0_110, %c0_111] : memref<4x8x128xf32, #tpu.memory_space<vmem>>, vector<1x8x128xf32>
    %179 = vector.shape_cast %178 : vector<1x8x128xf32> to vector<8x128xf32>
    %180 = vector.shape_cast %177 : vector<8x128xf32> to vector<1x8x128xf32>
    tpu.vector_store %arg8[%c2_109, %c0_110, %c0_111], %180 {strides = array<i32>} : memref<4x8x128xf32, #tpu.memory_space<vmem>>, vector<1x8x128xf32>,
    %c0_112 = arith.constant 0 : index
    %c3_113 = arith.constant 3 : index
    %c0_114 = arith.constant 0 : index
    %c0_115 = arith.constant 0 : index
    %181 = vector.load %arg2[%c0_112, %c3_113, %c0_114, %c0_115] : memref<1x4x16x128xf32, #tpu.memory_space<vmem>>, vector<1x1x8x128xf32>
    %182 = vector.shape_cast %181 : vector<1x1x8x128xf32> to vector<8x128xf32>
    %c0_116 = arith.constant 0 : index
    %c3_117 = arith.constant 3 : index
    %c8_118 = arith.constant 8 : index
    %c0_119 = arith.constant 0 : index
    %183 = vector.load %arg2[%c0_116, %c3_117, %c8_118, %c0_119] : memref<1x4x16x128xf32, #tpu.memory_space<vmem>>, vector<1x1x8x128xf32>
    %184 = vector.shape_cast %183 : vector<1x1x8x128xf32> to vector<8x128xf32>
    %cst_120 = arith.constant 0.000000e+00 : f32
    %185 = vector.broadcast %cst_120 : f32 to vector<8x128xf32>
    %c1_i32_121 = arith.constant 1 : i32
    %186 = tpu.dynamic_rotate %182 by %c1_i32_121 dim 1 : vector<8x128xf32>, i32 -> vector<8x128xf32>
    %c127_i32_122 = arith.constant 127 : i32
    %187 = tpu.dynamic_rotate %182 by %c127_i32_122 dim 1 : vector<8x128xf32>, i32 -> vector<8x128xf32>
    %c3_123 = arith.constant 3 : index
    %c0_124 = arith.constant 0 : index
    %188 = memref.load %arg4[%c3_123, %c0_124] : memref<4x9xf32, #tpu.memory_space<smem>>
    %189 = vector.broadcast %188 : f32 to vector<8x128xf32>
    %190 = arith.mulf %186, %189 : vector<8x128xf32>
    %191 = arith.addf %185, %190 : vector<8x128xf32>
    %c3_125 = arith.constant 3 : index
    %c1_126 = arith.constant 1 : index
    %192 = memref.load %arg4[%c3_125, %c1_126] : memref<4x9xf32, #tpu.memory_space<smem>>
    %193 = vector.broadcast %192 : f32 to vector<8x128xf32>
    %194 = arith.mulf %182, %193 : vector<8x128xf32>
    %195 = arith.addf %191, %194 : vector<8x128xf32>
    %c3_127 = arith.constant 3 : index
    %c2_128 = arith.constant 2 : index
    %196 = memref.load %arg4[%c3_127, %c2_128] : memref<4x9xf32, #tpu.memory_space<smem>>
    %197 = vector.broadcast %196 : f32 to vector<8x128xf32>
    %198 = arith.mulf %187, %197 : vector<8x128xf32>
    %199 = arith.addf %195, %198 : vector<8x128xf32>
    %c7_i32_129 = arith.constant 7 : i32
    %200 = vector.broadcast %c7_i32_129 : i32 to vector<8x128xi32>
    %201 = arith.cmpi sge, %0, %200 : vector<8x128xi32>
    %c7_i32_130 = arith.constant 7 : i32
    %202 = tpu.dynamic_rotate %184 by %c7_i32_130 dim 0 : vector<8x128xf32>, i32 -> vector<8x128xf32>
    %c7_i32_131 = arith.constant 7 : i32
    %203 = tpu.dynamic_rotate %182 by %c7_i32_131 dim 0 : vector<8x128xf32>, i32 -> vector<8x128xf32>
    %204 = arith.select %201, %202, %203 : vector<8x128xi1>, vector<8x128xf32>
    %c1_i32_132 = arith.constant 1 : i32
    %205 = tpu.dynamic_rotate %204 by %c1_i32_132 dim 1 : vector<8x128xf32>, i32 -> vector<8x128xf32>
    %c127_i32_133 = arith.constant 127 : i32
    %206 = tpu.dynamic_rotate %204 by %c127_i32_133 dim 1 : vector<8x128xf32>, i32 -> vector<8x128xf32>
    %c3_134 = arith.constant 3 : index
    %c3_135 = arith.constant 3 : index
    %207 = memref.load %arg4[%c3_134, %c3_135] : memref<4x9xf32, #tpu.memory_space<smem>>
    %208 = vector.broadcast %207 : f32 to vector<8x128xf32>
    %209 = arith.mulf %205, %208 : vector<8x128xf32>
    %210 = arith.addf %199, %209 : vector<8x128xf32>
    %c3_136 = arith.constant 3 : index
    %c4_137 = arith.constant 4 : index
    %211 = memref.load %arg4[%c3_136, %c4_137] : memref<4x9xf32, #tpu.memory_space<smem>>
    %212 = vector.broadcast %211 : f32 to vector<8x128xf32>
    %213 = arith.mulf %204, %212 : vector<8x128xf32>
    %214 = arith.addf %210, %213 : vector<8x128xf32>
    %c3_138 = arith.constant 3 : index
    %c5_139 = arith.constant 5 : index
    %215 = memref.load %arg4[%c3_138, %c5_139] : memref<4x9xf32, #tpu.memory_space<smem>>
    %216 = vector.broadcast %215 : f32 to vector<8x128xf32>
    %217 = arith.mulf %206, %216 : vector<8x128xf32>
    %218 = arith.addf %214, %217 : vector<8x128xf32>
    %c6_i32_140 = arith.constant 6 : i32
    %219 = vector.broadcast %c6_i32_140 : i32 to vector<8x128xi32>
    %220 = arith.cmpi sge, %0, %219 : vector<8x128xi32>
    %c6_i32_141 = arith.constant 6 : i32
    %221 = tpu.dynamic_rotate %184 by %c6_i32_141 dim 0 : vector<8x128xf32>, i32 -> vector<8x128xf32>
    %c6_i32_142 = arith.constant 6 : i32
    %222 = tpu.dynamic_rotate %182 by %c6_i32_142 dim 0 : vector<8x128xf32>, i32 -> vector<8x128xf32>
    %223 = arith.select %220, %221, %222 : vector<8x128xi1>, vector<8x128xf32>
    %c1_i32_143 = arith.constant 1 : i32
    %224 = tpu.dynamic_rotate %223 by %c1_i32_143 dim 1 : vector<8x128xf32>, i32 -> vector<8x128xf32>
    %c127_i32_144 = arith.constant 127 : i32
    %225 = tpu.dynamic_rotate %223 by %c127_i32_144 dim 1 : vector<8x128xf32>, i32 -> vector<8x128xf32>
    %c3_145 = arith.constant 3 : index
    %c6_146 = arith.constant 6 : index
    %226 = memref.load %arg4[%c3_145, %c6_146] : memref<4x9xf32, #tpu.memory_space<smem>>
    %227 = vector.broadcast %226 : f32 to vector<8x128xf32>
    %228 = arith.mulf %224, %227 : vector<8x128xf32>
    %229 = arith.addf %218, %228 : vector<8x128xf32>
    %c3_147 = arith.constant 3 : index
    %c7_148 = arith.constant 7 : index
    %230 = memref.load %arg4[%c3_147, %c7_148] : memref<4x9xf32, #tpu.memory_space<smem>>
    %231 = vector.broadcast %230 : f32 to vector<8x128xf32>
    %232 = arith.mulf %223, %231 : vector<8x128xf32>
    %233 = arith.addf %229, %232 : vector<8x128xf32>
    %c3_149 = arith.constant 3 : index
    %c8_150 = arith.constant 8 : index
    %234 = memref.load %arg4[%c3_149, %c8_150] : memref<4x9xf32, #tpu.memory_space<smem>>
    %235 = vector.broadcast %234 : f32 to vector<8x128xf32>
    %236 = arith.mulf %225, %235 : vector<8x128xf32>
    %237 = arith.addf %233, %236 : vector<8x128xf32>
    %c3_151 = arith.constant 3 : index
    %c0_152 = arith.constant 0 : index
    %c0_153 = arith.constant 0 : index
    %238 = vector.load %arg8[%c3_151, %c0_152, %c0_153] : memref<4x8x128xf32, #tpu.memory_space<vmem>>, vector<1x8x128xf32>
    %239 = vector.shape_cast %238 : vector<1x8x128xf32> to vector<8x128xf32>
    %240 = vector.shape_cast %237 : vector<8x128xf32> to vector<1x8x128xf32>
    tpu.vector_store %arg8[%c3_151, %c0_152, %c0_153], %240 {strides = array<i32>} : memref<4x8x128xf32, #tpu.memory_space<vmem>>, vector<1x8x128xf32>,
    %c0_154 = arith.constant 0 : index
    %241 = memref.load %arg6[%c0_154] : memref<8xf32, #tpu.memory_space<smem>>
    %242 = vector.broadcast %241 : f32 to vector<8x128xf32>
    %c1_155 = arith.constant 1 : index
    %243 = memref.load %arg6[%c1_155] : memref<8xf32, #tpu.memory_space<smem>>
    %244 = vector.broadcast %243 : f32 to vector<8x128xf32>
    %c2_156 = arith.constant 2 : index
    %245 = memref.load %arg6[%c2_156] : memref<8xf32, #tpu.memory_space<smem>>
    %246 = vector.broadcast %245 : f32 to vector<8x128xf32>
    %c3_157 = arith.constant 3 : index
    %247 = memref.load %arg6[%c3_157] : memref<8xf32, #tpu.memory_space<smem>>
    %248 = vector.broadcast %247 : f32 to vector<8x128xf32>
    %c4_158 = arith.constant 4 : index
    %249 = memref.load %arg6[%c4_158] : memref<8xf32, #tpu.memory_space<smem>>
    %250 = vector.broadcast %249 : f32 to vector<8x128xf32>
    %c5_159 = arith.constant 5 : index
    %251 = memref.load %arg6[%c5_159] : memref<8xf32, #tpu.memory_space<smem>>
    %252 = vector.broadcast %251 : f32 to vector<8x128xf32>
    %c6_160 = arith.constant 6 : index
    %253 = memref.load %arg6[%c6_160] : memref<8xf32, #tpu.memory_space<smem>>
    %254 = vector.broadcast %253 : f32 to vector<8x128xf32>
    %c7_161 = arith.constant 7 : index
    %255 = memref.load %arg6[%c7_161] : memref<8xf32, #tpu.memory_space<smem>>
    %256 = vector.broadcast %255 : f32 to vector<8x128xf32>
    %c0_162 = arith.constant 0 : index
    %c0_163 = arith.constant 0 : index
    %c0_164 = arith.constant 0 : index
    %257 = vector.load %arg8[%c0_162, %c0_163, %c0_164] : memref<4x8x128xf32, #tpu.memory_space<vmem>>, vector<1x8x128xf32>
    %258 = vector.shape_cast %257 : vector<1x8x128xf32> to vector<8x128xf32>
    %c0_165 = arith.constant 0 : index
    %c0_166 = arith.constant 0 : index
    %259 = memref.load %arg5[%c0_165, %c0_166] : memref<8x4xf32, #tpu.memory_space<smem>>
    %260 = vector.broadcast %259 : f32 to vector<8x128xf32>
    %261 = arith.mulf %258, %260 : vector<8x128xf32>
    %262 = arith.addf %242, %261 : vector<8x128xf32>
    %c1_167 = arith.constant 1 : index
    %c0_168 = arith.constant 0 : index
    %263 = memref.load %arg5[%c1_167, %c0_168] : memref<8x4xf32, #tpu.memory_space<smem>>
    %264 = vector.broadcast %263 : f32 to vector<8x128xf32>
    %265 = arith.mulf %258, %264 : vector<8x128xf32>
    %266 = arith.addf %244, %265 : vector<8x128xf32>
    %c2_169 = arith.constant 2 : index
    %c0_170 = arith.constant 0 : index
    %267 = memref.load %arg5[%c2_169, %c0_170] : memref<8x4xf32, #tpu.memory_space<smem>>
    %268 = vector.broadcast %267 : f32 to vector<8x128xf32>
    %269 = arith.mulf %258, %268 : vector<8x128xf32>
    %270 = arith.addf %246, %269 : vector<8x128xf32>
    %c3_171 = arith.constant 3 : index
    %c0_172 = arith.constant 0 : index
    %271 = memref.load %arg5[%c3_171, %c0_172] : memref<8x4xf32, #tpu.memory_space<smem>>
    %272 = vector.broadcast %271 : f32 to vector<8x128xf32>
    %273 = arith.mulf %258, %272 : vector<8x128xf32>
    %274 = arith.addf %248, %273 : vector<8x128xf32>
    %c4_173 = arith.constant 4 : index
    %c0_174 = arith.constant 0 : index
    %275 = memref.load %arg5[%c4_173, %c0_174] : memref<8x4xf32, #tpu.memory_space<smem>>
    %276 = vector.broadcast %275 : f32 to vector<8x128xf32>
    %277 = arith.mulf %258, %276 : vector<8x128xf32>
    %278 = arith.addf %250, %277 : vector<8x128xf32>
    %c5_175 = arith.constant 5 : index
    %c0_176 = arith.constant 0 : index
    %279 = memref.load %arg5[%c5_175, %c0_176] : memref<8x4xf32, #tpu.memory_space<smem>>
    %280 = vector.broadcast %279 : f32 to vector<8x128xf32>
    %281 = arith.mulf %258, %280 : vector<8x128xf32>
    %282 = arith.addf %252, %281 : vector<8x128xf32>
    %c6_177 = arith.constant 6 : index
    %c0_178 = arith.constant 0 : index
    %283 = memref.load %arg5[%c6_177, %c0_178] : memref<8x4xf32, #tpu.memory_space<smem>>
    %284 = vector.broadcast %283 : f32 to vector<8x128xf32>
    %285 = arith.mulf %258, %284 : vector<8x128xf32>
    %286 = arith.addf %254, %285 : vector<8x128xf32>
    %c7_179 = arith.constant 7 : index
    %c0_180 = arith.constant 0 : index
    %287 = memref.load %arg5[%c7_179, %c0_180] : memref<8x4xf32, #tpu.memory_space<smem>>
    %288 = vector.broadcast %287 : f32 to vector<8x128xf32>
    %289 = arith.mulf %258, %288 : vector<8x128xf32>
    %290 = arith.addf %256, %289 : vector<8x128xf32>
    %c1_181 = arith.constant 1 : index
    %c0_182 = arith.constant 0 : index
    %c0_183 = arith.constant 0 : index
    %291 = vector.load %arg8[%c1_181, %c0_182, %c0_183] : memref<4x8x128xf32, #tpu.memory_space<vmem>>, vector<1x8x128xf32>
    %292 = vector.shape_cast %291 : vector<1x8x128xf32> to vector<8x128xf32>
    %c0_184 = arith.constant 0 : index
    %c1_185 = arith.constant 1 : index
    %293 = memref.load %arg5[%c0_184, %c1_185] : memref<8x4xf32, #tpu.memory_space<smem>>
    %294 = vector.broadcast %293 : f32 to vector<8x128xf32>
    %295 = arith.mulf %292, %294 : vector<8x128xf32>
    %296 = arith.addf %262, %295 : vector<8x128xf32>
    %c1_186 = arith.constant 1 : index
    %c1_187 = arith.constant 1 : index
    %297 = memref.load %arg5[%c1_186, %c1_187] : memref<8x4xf32, #tpu.memory_space<smem>>
    %298 = vector.broadcast %297 : f32 to vector<8x128xf32>
    %299 = arith.mulf %292, %298 : vector<8x128xf32>
    %300 = arith.addf %266, %299 : vector<8x128xf32>
    %c2_188 = arith.constant 2 : index
    %c1_189 = arith.constant 1 : index
    %301 = memref.load %arg5[%c2_188, %c1_189] : memref<8x4xf32, #tpu.memory_space<smem>>
    %302 = vector.broadcast %301 : f32 to vector<8x128xf32>
    %303 = arith.mulf %292, %302 : vector<8x128xf32>
    %304 = arith.addf %270, %303 : vector<8x128xf32>
    %c3_190 = arith.constant 3 : index
    %c1_191 = arith.constant 1 : index
    %305 = memref.load %arg5[%c3_190, %c1_191] : memref<8x4xf32, #tpu.memory_space<smem>>
    %306 = vector.broadcast %305 : f32 to vector<8x128xf32>
    %307 = arith.mulf %292, %306 : vector<8x128xf32>
    %308 = arith.addf %274, %307 : vector<8x128xf32>
    %c4_192 = arith.constant 4 : index
    %c1_193 = arith.constant 1 : index
    %309 = memref.load %arg5[%c4_192, %c1_193] : memref<8x4xf32, #tpu.memory_space<smem>>
    %310 = vector.broadcast %309 : f32 to vector<8x128xf32>
    %311 = arith.mulf %292, %310 : vector<8x128xf32>
    %312 = arith.addf %278, %311 : vector<8x128xf32>
    %c5_194 = arith.constant 5 : index
    %c1_195 = arith.constant 1 : index
    %313 = memref.load %arg5[%c5_194, %c1_195] : memref<8x4xf32, #tpu.memory_space<smem>>
    %314 = vector.broadcast %313 : f32 to vector<8x128xf32>
    %315 = arith.mulf %292, %314 : vector<8x128xf32>
    %316 = arith.addf %282, %315 : vector<8x128xf32>
    %c6_196 = arith.constant 6 : index
    %c1_197 = arith.constant 1 : index
    %317 = memref.load %arg5[%c6_196, %c1_197] : memref<8x4xf32, #tpu.memory_space<smem>>
    %318 = vector.broadcast %317 : f32 to vector<8x128xf32>
    %319 = arith.mulf %292, %318 : vector<8x128xf32>
    %320 = arith.addf %286, %319 : vector<8x128xf32>
    %c7_198 = arith.constant 7 : index
    %c1_199 = arith.constant 1 : index
    %321 = memref.load %arg5[%c7_198, %c1_199] : memref<8x4xf32, #tpu.memory_space<smem>>
    %322 = vector.broadcast %321 : f32 to vector<8x128xf32>
    %323 = arith.mulf %292, %322 : vector<8x128xf32>
    %324 = arith.addf %290, %323 : vector<8x128xf32>
    %c2_200 = arith.constant 2 : index
    %c0_201 = arith.constant 0 : index
    %c0_202 = arith.constant 0 : index
    %325 = vector.load %arg8[%c2_200, %c0_201, %c0_202] : memref<4x8x128xf32, #tpu.memory_space<vmem>>, vector<1x8x128xf32>
    %326 = vector.shape_cast %325 : vector<1x8x128xf32> to vector<8x128xf32>
    %c0_203 = arith.constant 0 : index
    %c2_204 = arith.constant 2 : index
    %327 = memref.load %arg5[%c0_203, %c2_204] : memref<8x4xf32, #tpu.memory_space<smem>>
    %328 = vector.broadcast %327 : f32 to vector<8x128xf32>
    %329 = arith.mulf %326, %328 : vector<8x128xf32>
    %330 = arith.addf %296, %329 : vector<8x128xf32>
    %c1_205 = arith.constant 1 : index
    %c2_206 = arith.constant 2 : index
    %331 = memref.load %arg5[%c1_205, %c2_206] : memref<8x4xf32, #tpu.memory_space<smem>>
    %332 = vector.broadcast %331 : f32 to vector<8x128xf32>
    %333 = arith.mulf %326, %332 : vector<8x128xf32>
    %334 = arith.addf %300, %333 : vector<8x128xf32>
    %c2_207 = arith.constant 2 : index
    %c2_208 = arith.constant 2 : index
    %335 = memref.load %arg5[%c2_207, %c2_208] : memref<8x4xf32, #tpu.memory_space<smem>>
    %336 = vector.broadcast %335 : f32 to vector<8x128xf32>
    %337 = arith.mulf %326, %336 : vector<8x128xf32>
    %338 = arith.addf %304, %337 : vector<8x128xf32>
    %c3_209 = arith.constant 3 : index
    %c2_210 = arith.constant 2 : index
    %339 = memref.load %arg5[%c3_209, %c2_210] : memref<8x4xf32, #tpu.memory_space<smem>>
    %340 = vector.broadcast %339 : f32 to vector<8x128xf32>
    %341 = arith.mulf %326, %340 : vector<8x128xf32>
    %342 = arith.addf %308, %341 : vector<8x128xf32>
    %c4_211 = arith.constant 4 : index
    %c2_212 = arith.constant 2 : index
    %343 = memref.load %arg5[%c4_211, %c2_212] : memref<8x4xf32, #tpu.memory_space<smem>>
    %344 = vector.broadcast %343 : f32 to vector<8x128xf32>
    %345 = arith.mulf %326, %344 : vector<8x128xf32>
    %346 = arith.addf %312, %345 : vector<8x128xf32>
    %c5_213 = arith.constant 5 : index
    %c2_214 = arith.constant 2 : index
    %347 = memref.load %arg5[%c5_213, %c2_214] : memref<8x4xf32, #tpu.memory_space<smem>>
    %348 = vector.broadcast %347 : f32 to vector<8x128xf32>
    %349 = arith.mulf %326, %348 : vector<8x128xf32>
    %350 = arith.addf %316, %349 : vector<8x128xf32>
    %c6_215 = arith.constant 6 : index
    %c2_216 = arith.constant 2 : index
    %351 = memref.load %arg5[%c6_215, %c2_216] : memref<8x4xf32, #tpu.memory_space<smem>>
    %352 = vector.broadcast %351 : f32 to vector<8x128xf32>
    %353 = arith.mulf %326, %352 : vector<8x128xf32>
    %354 = arith.addf %320, %353 : vector<8x128xf32>
    %c7_217 = arith.constant 7 : index
    %c2_218 = arith.constant 2 : index
    %355 = memref.load %arg5[%c7_217, %c2_218] : memref<8x4xf32, #tpu.memory_space<smem>>
    %356 = vector.broadcast %355 : f32 to vector<8x128xf32>
    %357 = arith.mulf %326, %356 : vector<8x128xf32>
    %358 = arith.addf %324, %357 : vector<8x128xf32>
    %c3_219 = arith.constant 3 : index
    %c0_220 = arith.constant 0 : index
    %c0_221 = arith.constant 0 : index
    %359 = vector.load %arg8[%c3_219, %c0_220, %c0_221] : memref<4x8x128xf32, #tpu.memory_space<vmem>>, vector<1x8x128xf32>
    %360 = vector.shape_cast %359 : vector<1x8x128xf32> to vector<8x128xf32>
    %c0_222 = arith.constant 0 : index
    %c3_223 = arith.constant 3 : index
    %361 = memref.load %arg5[%c0_222, %c3_223] : memref<8x4xf32, #tpu.memory_space<smem>>
    %362 = vector.broadcast %361 : f32 to vector<8x128xf32>
    %363 = arith.mulf %360, %362 : vector<8x128xf32>
    %364 = arith.addf %330, %363 : vector<8x128xf32>
    %c1_224 = arith.constant 1 : index
    %c3_225 = arith.constant 3 : index
    %365 = memref.load %arg5[%c1_224, %c3_225] : memref<8x4xf32, #tpu.memory_space<smem>>
    %366 = vector.broadcast %365 : f32 to vector<8x128xf32>
    %367 = arith.mulf %360, %366 : vector<8x128xf32>
    %368 = arith.addf %334, %367 : vector<8x128xf32>
    %c2_226 = arith.constant 2 : index
    %c3_227 = arith.constant 3 : index
    %369 = memref.load %arg5[%c2_226, %c3_227] : memref<8x4xf32, #tpu.memory_space<smem>>
    %370 = vector.broadcast %369 : f32 to vector<8x128xf32>
    %371 = arith.mulf %360, %370 : vector<8x128xf32>
    %372 = arith.addf %338, %371 : vector<8x128xf32>
    %c3_228 = arith.constant 3 : index
    %c3_229 = arith.constant 3 : index
    %373 = memref.load %arg5[%c3_228, %c3_229] : memref<8x4xf32, #tpu.memory_space<smem>>
    %374 = vector.broadcast %373 : f32 to vector<8x128xf32>
    %375 = arith.mulf %360, %374 : vector<8x128xf32>
    %376 = arith.addf %342, %375 : vector<8x128xf32>
    %c4_230 = arith.constant 4 : index
    %c3_231 = arith.constant 3 : index
    %377 = memref.load %arg5[%c4_230, %c3_231] : memref<8x4xf32, #tpu.memory_space<smem>>
    %378 = vector.broadcast %377 : f32 to vector<8x128xf32>
    %379 = arith.mulf %360, %378 : vector<8x128xf32>
    %380 = arith.addf %346, %379 : vector<8x128xf32>
    %c5_232 = arith.constant 5 : index
    %c3_233 = arith.constant 3 : index
    %381 = memref.load %arg5[%c5_232, %c3_233] : memref<8x4xf32, #tpu.memory_space<smem>>
    %382 = vector.broadcast %381 : f32 to vector<8x128xf32>
    %383 = arith.mulf %360, %382 : vector<8x128xf32>
    %384 = arith.addf %350, %383 : vector<8x128xf32>
    %c6_234 = arith.constant 6 : index
    %c3_235 = arith.constant 3 : index
    %385 = memref.load %arg5[%c6_234, %c3_235] : memref<8x4xf32, #tpu.memory_space<smem>>
    %386 = vector.broadcast %385 : f32 to vector<8x128xf32>
    %387 = arith.mulf %360, %386 : vector<8x128xf32>
    %388 = arith.addf %354, %387 : vector<8x128xf32>
    %c7_236 = arith.constant 7 : index
    %c3_237 = arith.constant 3 : index
    %389 = memref.load %arg5[%c7_236, %c3_237] : memref<8x4xf32, #tpu.memory_space<smem>>
    %390 = vector.broadcast %389 : f32 to vector<8x128xf32>
    %391 = arith.mulf %360, %390 : vector<8x128xf32>
    %392 = arith.addf %358, %391 : vector<8x128xf32>
    %c0_238 = arith.constant 0 : index
    %c0_239 = arith.constant 0 : index
    %c0_240 = arith.constant 0 : index
    %c0_241 = arith.constant 0 : index
    %393 = vector.load %arg7[%c0_238, %c0_239, %c0_240, %c0_241] : memref<1x8x16x128xf32, #tpu.memory_space<vmem>>, vector<1x1x8x128xf32>
    %394 = vector.shape_cast %393 : vector<1x1x8x128xf32> to vector<8x128xf32>
    %395 = vector.shape_cast %364 : vector<8x128xf32> to vector<1x1x8x128xf32>
    tpu.vector_store %arg7[%c0_238, %c0_239, %c0_240, %c0_241], %395 {strides = array<i32>} : memref<1x8x16x128xf32, #tpu.memory_space<vmem>>, vector<1x1x8x128xf32>,
    %c0_242 = arith.constant 0 : index
    %c1_243 = arith.constant 1 : index
    %c0_244 = arith.constant 0 : index
    %c0_245 = arith.constant 0 : index
    %396 = vector.load %arg7[%c0_242, %c1_243, %c0_244, %c0_245] : memref<1x8x16x128xf32, #tpu.memory_space<vmem>>, vector<1x1x8x128xf32>
    %397 = vector.shape_cast %396 : vector<1x1x8x128xf32> to vector<8x128xf32>
    %398 = vector.shape_cast %368 : vector<8x128xf32> to vector<1x1x8x128xf32>
    tpu.vector_store %arg7[%c0_242, %c1_243, %c0_244, %c0_245], %398 {strides = array<i32>} : memref<1x8x16x128xf32, #tpu.memory_space<vmem>>, vector<1x1x8x128xf32>,
    %c0_246 = arith.constant 0 : index
    %c2_247 = arith.constant 2 : index
    %c0_248 = arith.constant 0 : index
    %c0_249 = arith.constant 0 : index
    %399 = vector.load %arg7[%c0_246, %c2_247, %c0_248, %c0_249] : memref<1x8x16x128xf32, #tpu.memory_space<vmem>>, vector<1x1x8x128xf32>
    %400 = vector.shape_cast %399 : vector<1x1x8x128xf32> to vector<8x128xf32>
    %401 = vector.shape_cast %372 : vector<8x128xf32> to vector<1x1x8x128xf32>
    tpu.vector_store %arg7[%c0_246, %c2_247, %c0_248, %c0_249], %401 {strides = array<i32>} : memref<1x8x16x128xf32, #tpu.memory_space<vmem>>, vector<1x1x8x128xf32>,
    %c0_250 = arith.constant 0 : index
    %c3_251 = arith.constant 3 : index
    %c0_252 = arith.constant 0 : index
    %c0_253 = arith.constant 0 : index
    %402 = vector.load %arg7[%c0_250, %c3_251, %c0_252, %c0_253] : memref<1x8x16x128xf32, #tpu.memory_space<vmem>>, vector<1x1x8x128xf32>
    %403 = vector.shape_cast %402 : vector<1x1x8x128xf32> to vector<8x128xf32>
    %404 = vector.shape_cast %376 : vector<8x128xf32> to vector<1x1x8x128xf32>
    tpu.vector_store %arg7[%c0_250, %c3_251, %c0_252, %c0_253], %404 {strides = array<i32>} : memref<1x8x16x128xf32, #tpu.memory_space<vmem>>, vector<1x1x8x128xf32>,
    %c0_254 = arith.constant 0 : index
    %c4_255 = arith.constant 4 : index
    %c0_256 = arith.constant 0 : index
    %c0_257 = arith.constant 0 : index
    %405 = vector.load %arg7[%c0_254, %c4_255, %c0_256, %c0_257] : memref<1x8x16x128xf32, #tpu.memory_space<vmem>>, vector<1x1x8x128xf32>
    %406 = vector.shape_cast %405 : vector<1x1x8x128xf32> to vector<8x128xf32>
    %407 = vector.shape_cast %380 : vector<8x128xf32> to vector<1x1x8x128xf32>
    tpu.vector_store %arg7[%c0_254, %c4_255, %c0_256, %c0_257], %407 {strides = array<i32>} : memref<1x8x16x128xf32, #tpu.memory_space<vmem>>, vector<1x1x8x128xf32>,
    %c0_258 = arith.constant 0 : index
    %c5_259 = arith.constant 5 : index
    %c0_260 = arith.constant 0 : index
    %c0_261 = arith.constant 0 : index
    %408 = vector.load %arg7[%c0_258, %c5_259, %c0_260, %c0_261] : memref<1x8x16x128xf32, #tpu.memory_space<vmem>>, vector<1x1x8x128xf32>
    %409 = vector.shape_cast %408 : vector<1x1x8x128xf32> to vector<8x128xf32>
    %410 = vector.shape_cast %384 : vector<8x128xf32> to vector<1x1x8x128xf32>
    tpu.vector_store %arg7[%c0_258, %c5_259, %c0_260, %c0_261], %410 {strides = array<i32>} : memref<1x8x16x128xf32, #tpu.memory_space<vmem>>, vector<1x1x8x128xf32>,
    %c0_262 = arith.constant 0 : index
    %c6_263 = arith.constant 6 : index
    %c0_264 = arith.constant 0 : index
    %c0_265 = arith.constant 0 : index
    %411 = vector.load %arg7[%c0_262, %c6_263, %c0_264, %c0_265] : memref<1x8x16x128xf32, #tpu.memory_space<vmem>>, vector<1x1x8x128xf32>
    %412 = vector.shape_cast %411 : vector<1x1x8x128xf32> to vector<8x128xf32>
    %413 = vector.shape_cast %388 : vector<8x128xf32> to vector<1x1x8x128xf32>
    tpu.vector_store %arg7[%c0_262, %c6_263, %c0_264, %c0_265], %413 {strides = array<i32>} : memref<1x8x16x128xf32, #tpu.memory_space<vmem>>, vector<1x1x8x128xf32>,
    %c0_266 = arith.constant 0 : index
    %c7_267 = arith.constant 7 : index
    %c0_268 = arith.constant 0 : index
    %c0_269 = arith.constant 0 : index
    %414 = vector.load %arg7[%c0_266, %c7_267, %c0_268, %c0_269] : memref<1x8x16x128xf32, #tpu.memory_space<vmem>>, vector<1x1x8x128xf32>
    %415 = vector.shape_cast %414 : vector<1x1x8x128xf32> to vector<8x128xf32>
    %416 = vector.shape_cast %392 : vector<8x128xf32> to vector<1x1x8x128xf32>
    tpu.vector_store %arg7[%c0_266, %c7_267, %c0_268, %c0_269], %416 {strides = array<i32>} : memref<1x8x16x128xf32, #tpu.memory_space<vmem>>, vector<1x1x8x128xf32>,
    %c0_270 = arith.constant 0 : index
    %c0_271 = arith.constant 0 : index
    %c8_272 = arith.constant 8 : index
    %c0_273 = arith.constant 0 : index
    %417 = vector.load %arg2[%c0_270, %c0_271, %c8_272, %c0_273] : memref<1x4x16x128xf32, #tpu.memory_space<vmem>>, vector<1x1x8x128xf32>
    %418 = vector.shape_cast %417 : vector<1x1x8x128xf32> to vector<8x128xf32>
    %c0_274 = arith.constant 0 : index
    %c0_275 = arith.constant 0 : index
    %c0_276 = arith.constant 0 : index
    %c0_277 = arith.constant 0 : index
    %419 = vector.load %arg3[%c0_274, %c0_275, %c0_276, %c0_277] : memref<1x4x8x128xf32, #tpu.memory_space<vmem>>, vector<1x1x8x128xf32>
    %420 = vector.shape_cast %419 : vector<1x1x8x128xf32> to vector<8x128xf32>
    %cst_278 = arith.constant 0.000000e+00 : f32
    %421 = vector.broadcast %cst_278 : f32 to vector<8x128xf32>
    %c1_i32_279 = arith.constant 1 : i32
    %422 = tpu.dynamic_rotate %418 by %c1_i32_279 dim 1 : vector<8x128xf32>, i32 -> vector<8x128xf32>
    %c127_i32_280 = arith.constant 127 : i32
    %423 = tpu.dynamic_rotate %418 by %c127_i32_280 dim 1 : vector<8x128xf32>, i32 -> vector<8x128xf32>
    %c0_281 = arith.constant 0 : index
    %c0_282 = arith.constant 0 : index
    %424 = memref.load %arg4[%c0_281, %c0_282] : memref<4x9xf32, #tpu.memory_space<smem>>
    %425 = vector.broadcast %424 : f32 to vector<8x128xf32>
    %426 = arith.mulf %422, %425 : vector<8x128xf32>
    %427 = arith.addf %421, %426 : vector<8x128xf32>
    %c0_283 = arith.constant 0 : index
    %c1_284 = arith.constant 1 : index
    %428 = memref.load %arg4[%c0_283, %c1_284] : memref<4x9xf32, #tpu.memory_space<smem>>
    %429 = vector.broadcast %428 : f32 to vector<8x128xf32>
    %430 = arith.mulf %418, %429 : vector<8x128xf32>
    %431 = arith.addf %427, %430 : vector<8x128xf32>
    %c0_285 = arith.constant 0 : index
    %c2_286 = arith.constant 2 : index
    %432 = memref.load %arg4[%c0_285, %c2_286] : memref<4x9xf32, #tpu.memory_space<smem>>
    %433 = vector.broadcast %432 : f32 to vector<8x128xf32>
    %434 = arith.mulf %423, %433 : vector<8x128xf32>
    %435 = arith.addf %431, %434 : vector<8x128xf32>
    %c7_i32_287 = arith.constant 7 : i32
    %436 = vector.broadcast %c7_i32_287 : i32 to vector<8x128xi32>
    %437 = arith.cmpi sge, %0, %436 : vector<8x128xi32>
    %c7_i32_288 = arith.constant 7 : i32
    %438 = tpu.dynamic_rotate %420 by %c7_i32_288 dim 0 : vector<8x128xf32>, i32 -> vector<8x128xf32>
    %c7_i32_289 = arith.constant 7 : i32
    %439 = tpu.dynamic_rotate %418 by %c7_i32_289 dim 0 : vector<8x128xf32>, i32 -> vector<8x128xf32>
    %440 = arith.select %437, %438, %439 : vector<8x128xi1>, vector<8x128xf32>
    %c1_i32_290 = arith.constant 1 : i32
    %441 = tpu.dynamic_rotate %440 by %c1_i32_290 dim 1 : vector<8x128xf32>, i32 -> vector<8x128xf32>
    %c127_i32_291 = arith.constant 127 : i32
    %442 = tpu.dynamic_rotate %440 by %c127_i32_291 dim 1 : vector<8x128xf32>, i32 -> vector<8x128xf32>
    %c0_292 = arith.constant 0 : index
    %c3_293 = arith.constant 3 : index
    %443 = memref.load %arg4[%c0_292, %c3_293] : memref<4x9xf32, #tpu.memory_space<smem>>
    %444 = vector.broadcast %443 : f32 to vector<8x128xf32>
    %445 = arith.mulf %441, %444 : vector<8x128xf32>
    %446 = arith.addf %435, %445 : vector<8x128xf32>
    %c0_294 = arith.constant 0 : index
    %c4_295 = arith.constant 4 : index
    %447 = memref.load %arg4[%c0_294, %c4_295] : memref<4x9xf32, #tpu.memory_space<smem>>
    %448 = vector.broadcast %447 : f32 to vector<8x128xf32>
    %449 = arith.mulf %440, %448 : vector<8x128xf32>
    %450 = arith.addf %446, %449 : vector<8x128xf32>
    %c0_296 = arith.constant 0 : index
    %c5_297 = arith.constant 5 : index
    %451 = memref.load %arg4[%c0_296, %c5_297] : memref<4x9xf32, #tpu.memory_space<smem>>
    %452 = vector.broadcast %451 : f32 to vector<8x128xf32>
    %453 = arith.mulf %442, %452 : vector<8x128xf32>
    %454 = arith.addf %450, %453 : vector<8x128xf32>
    %c6_i32_298 = arith.constant 6 : i32
    %455 = vector.broadcast %c6_i32_298 : i32 to vector<8x128xi32>
    %456 = arith.cmpi sge, %0, %455 : vector<8x128xi32>
    %c6_i32_299 = arith.constant 6 : i32
    %457 = tpu.dynamic_rotate %420 by %c6_i32_299 dim 0 : vector<8x128xf32>, i32 -> vector<8x128xf32>
    %c6_i32_300 = arith.constant 6 : i32
    %458 = tpu.dynamic_rotate %418 by %c6_i32_300 dim 0 : vector<8x128xf32>, i32 -> vector<8x128xf32>
    %459 = arith.select %456, %457, %458 : vector<8x128xi1>, vector<8x128xf32>
    %c1_i32_301 = arith.constant 1 : i32
    %460 = tpu.dynamic_rotate %459 by %c1_i32_301 dim 1 : vector<8x128xf32>, i32 -> vector<8x128xf32>
    %c127_i32_302 = arith.constant 127 : i32
    %461 = tpu.dynamic_rotate %459 by %c127_i32_302 dim 1 : vector<8x128xf32>, i32 -> vector<8x128xf32>
    %c0_303 = arith.constant 0 : index
    %c6_304 = arith.constant 6 : index
    %462 = memref.load %arg4[%c0_303, %c6_304] : memref<4x9xf32, #tpu.memory_space<smem>>
    %463 = vector.broadcast %462 : f32 to vector<8x128xf32>
    %464 = arith.mulf %460, %463 : vector<8x128xf32>
    %465 = arith.addf %454, %464 : vector<8x128xf32>
    %c0_305 = arith.constant 0 : index
    %c7_306 = arith.constant 7 : index
    %466 = memref.load %arg4[%c0_305, %c7_306] : memref<4x9xf32, #tpu.memory_space<smem>>
    %467 = vector.broadcast %466 : f32 to vector<8x128xf32>
    %468 = arith.mulf %459, %467 : vector<8x128xf32>
    %469 = arith.addf %465, %468 : vector<8x128xf32>
    %c0_307 = arith.constant 0 : index
    %c8_308 = arith.constant 8 : index
    %470 = memref.load %arg4[%c0_307, %c8_308] : memref<4x9xf32, #tpu.memory_space<smem>>
    %471 = vector.broadcast %470 : f32 to vector<8x128xf32>
    %472 = arith.mulf %461, %471 : vector<8x128xf32>
    %473 = arith.addf %469, %472 : vector<8x128xf32>
    %c0_309 = arith.constant 0 : index
    %c0_310 = arith.constant 0 : index
    %c0_311 = arith.constant 0 : index
    %474 = vector.load %arg8[%c0_309, %c0_310, %c0_311] : memref<4x8x128xf32, #tpu.memory_space<vmem>>, vector<1x8x128xf32>
    %475 = vector.shape_cast %474 : vector<1x8x128xf32> to vector<8x128xf32>
    %476 = vector.shape_cast %473 : vector<8x128xf32> to vector<1x8x128xf32>
    tpu.vector_store %arg8[%c0_309, %c0_310, %c0_311], %476 {strides = array<i32>} : memref<4x8x128xf32, #tpu.memory_space<vmem>>, vector<1x8x128xf32>,
    %c0_312 = arith.constant 0 : index
    %c1_313 = arith.constant 1 : index
    %c8_314 = arith.constant 8 : index
    %c0_315 = arith.constant 0 : index
    %477 = vector.load %arg2[%c0_312, %c1_313, %c8_314, %c0_315] : memref<1x4x16x128xf32, #tpu.memory_space<vmem>>, vector<1x1x8x128xf32>
    %478 = vector.shape_cast %477 : vector<1x1x8x128xf32> to vector<8x128xf32>
    %c0_316 = arith.constant 0 : index
    %c1_317 = arith.constant 1 : index
    %c0_318 = arith.constant 0 : index
    %c0_319 = arith.constant 0 : index
    %479 = vector.load %arg3[%c0_316, %c1_317, %c0_318, %c0_319] : memref<1x4x8x128xf32, #tpu.memory_space<vmem>>, vector<1x1x8x128xf32>
    %480 = vector.shape_cast %479 : vector<1x1x8x128xf32> to vector<8x128xf32>
    %cst_320 = arith.constant 0.000000e+00 : f32
    %481 = vector.broadcast %cst_320 : f32 to vector<8x128xf32>
    %c1_i32_321 = arith.constant 1 : i32
    %482 = tpu.dynamic_rotate %478 by %c1_i32_321 dim 1 : vector<8x128xf32>, i32 -> vector<8x128xf32>
    %c127_i32_322 = arith.constant 127 : i32
    %483 = tpu.dynamic_rotate %478 by %c127_i32_322 dim 1 : vector<8x128xf32>, i32 -> vector<8x128xf32>
    %c1_323 = arith.constant 1 : index
    %c0_324 = arith.constant 0 : index
    %484 = memref.load %arg4[%c1_323, %c0_324] : memref<4x9xf32, #tpu.memory_space<smem>>
    %485 = vector.broadcast %484 : f32 to vector<8x128xf32>
    %486 = arith.mulf %482, %485 : vector<8x128xf32>
    %487 = arith.addf %481, %486 : vector<8x128xf32>
    %c1_325 = arith.constant 1 : index
    %c1_326 = arith.constant 1 : index
    %488 = memref.load %arg4[%c1_325, %c1_326] : memref<4x9xf32, #tpu.memory_space<smem>>
    %489 = vector.broadcast %488 : f32 to vector<8x128xf32>
    %490 = arith.mulf %478, %489 : vector<8x128xf32>
    %491 = arith.addf %487, %490 : vector<8x128xf32>
    %c1_327 = arith.constant 1 : index
    %c2_328 = arith.constant 2 : index
    %492 = memref.load %arg4[%c1_327, %c2_328] : memref<4x9xf32, #tpu.memory_space<smem>>
    %493 = vector.broadcast %492 : f32 to vector<8x128xf32>
    %494 = arith.mulf %483, %493 : vector<8x128xf32>
    %495 = arith.addf %491, %494 : vector<8x128xf32>
    %c7_i32_329 = arith.constant 7 : i32
    %496 = vector.broadcast %c7_i32_329 : i32 to vector<8x128xi32>
    %497 = arith.cmpi sge, %0, %496 : vector<8x128xi32>
    %c7_i32_330 = arith.constant 7 : i32
    %498 = tpu.dynamic_rotate %480 by %c7_i32_330 dim 0 : vector<8x128xf32>, i32 -> vector<8x128xf32>
    %c7_i32_331 = arith.constant 7 : i32
    %499 = tpu.dynamic_rotate %478 by %c7_i32_331 dim 0 : vector<8x128xf32>, i32 -> vector<8x128xf32>
    %500 = arith.select %497, %498, %499 : vector<8x128xi1>, vector<8x128xf32>
    %c1_i32_332 = arith.constant 1 : i32
    %501 = tpu.dynamic_rotate %500 by %c1_i32_332 dim 1 : vector<8x128xf32>, i32 -> vector<8x128xf32>
    %c127_i32_333 = arith.constant 127 : i32
    %502 = tpu.dynamic_rotate %500 by %c127_i32_333 dim 1 : vector<8x128xf32>, i32 -> vector<8x128xf32>
    %c1_334 = arith.constant 1 : index
    %c3_335 = arith.constant 3 : index
    %503 = memref.load %arg4[%c1_334, %c3_335] : memref<4x9xf32, #tpu.memory_space<smem>>
    %504 = vector.broadcast %503 : f32 to vector<8x128xf32>
    %505 = arith.mulf %501, %504 : vector<8x128xf32>
    %506 = arith.addf %495, %505 : vector<8x128xf32>
    %c1_336 = arith.constant 1 : index
    %c4_337 = arith.constant 4 : index
    %507 = memref.load %arg4[%c1_336, %c4_337] : memref<4x9xf32, #tpu.memory_space<smem>>
    %508 = vector.broadcast %507 : f32 to vector<8x128xf32>
    %509 = arith.mulf %500, %508 : vector<8x128xf32>
    %510 = arith.addf %506, %509 : vector<8x128xf32>
    %c1_338 = arith.constant 1 : index
    %c5_339 = arith.constant 5 : index
    %511 = memref.load %arg4[%c1_338, %c5_339] : memref<4x9xf32, #tpu.memory_space<smem>>
    %512 = vector.broadcast %511 : f32 to vector<8x128xf32>
    %513 = arith.mulf %502, %512 : vector<8x128xf32>
    %514 = arith.addf %510, %513 : vector<8x128xf32>
    %c6_i32_340 = arith.constant 6 : i32
    %515 = vector.broadcast %c6_i32_340 : i32 to vector<8x128xi32>
    %516 = arith.cmpi sge, %0, %515 : vector<8x128xi32>
    %c6_i32_341 = arith.constant 6 : i32
    %517 = tpu.dynamic_rotate %480 by %c6_i32_341 dim 0 : vector<8x128xf32>, i32 -> vector<8x128xf32>
    %c6_i32_342 = arith.constant 6 : i32
    %518 = tpu.dynamic_rotate %478 by %c6_i32_342 dim 0 : vector<8x128xf32>, i32 -> vector<8x128xf32>
    %519 = arith.select %516, %517, %518 : vector<8x128xi1>, vector<8x128xf32>
    %c1_i32_343 = arith.constant 1 : i32
    %520 = tpu.dynamic_rotate %519 by %c1_i32_343 dim 1 : vector<8x128xf32>, i32 -> vector<8x128xf32>
    %c127_i32_344 = arith.constant 127 : i32
    %521 = tpu.dynamic_rotate %519 by %c127_i32_344 dim 1 : vector<8x128xf32>, i32 -> vector<8x128xf32>
    %c1_345 = arith.constant 1 : index
    %c6_346 = arith.constant 6 : index
    %522 = memref.load %arg4[%c1_345, %c6_346] : memref<4x9xf32, #tpu.memory_space<smem>>
    %523 = vector.broadcast %522 : f32 to vector<8x128xf32>
    %524 = arith.mulf %520, %523 : vector<8x128xf32>
    %525 = arith.addf %514, %524 : vector<8x128xf32>
    %c1_347 = arith.constant 1 : index
    %c7_348 = arith.constant 7 : index
    %526 = memref.load %arg4[%c1_347, %c7_348] : memref<4x9xf32, #tpu.memory_space<smem>>
    %527 = vector.broadcast %526 : f32 to vector<8x128xf32>
    %528 = arith.mulf %519, %527 : vector<8x128xf32>
    %529 = arith.addf %525, %528 : vector<8x128xf32>
    %c1_349 = arith.constant 1 : index
    %c8_350 = arith.constant 8 : index
    %530 = memref.load %arg4[%c1_349, %c8_350] : memref<4x9xf32, #tpu.memory_space<smem>>
    %531 = vector.broadcast %530 : f32 to vector<8x128xf32>
    %532 = arith.mulf %521, %531 : vector<8x128xf32>
    %533 = arith.addf %529, %532 : vector<8x128xf32>
    %c1_351 = arith.constant 1 : index
    %c0_352 = arith.constant 0 : index
    %c0_353 = arith.constant 0 : index
    %534 = vector.load %arg8[%c1_351, %c0_352, %c0_353] : memref<4x8x128xf32, #tpu.memory_space<vmem>>, vector<1x8x128xf32>
    %535 = vector.shape_cast %534 : vector<1x8x128xf32> to vector<8x128xf32>
    %536 = vector.shape_cast %533 : vector<8x128xf32> to vector<1x8x128xf32>
    tpu.vector_store %arg8[%c1_351, %c0_352, %c0_353], %536 {strides = array<i32>} : memref<4x8x128xf32, #tpu.memory_space<vmem>>, vector<1x8x128xf32>,
    %c0_354 = arith.constant 0 : index
    %c2_355 = arith.constant 2 : index
    %c8_356 = arith.constant 8 : index
    %c0_357 = arith.constant 0 : index
    %537 = vector.load %arg2[%c0_354, %c2_355, %c8_356, %c0_357] : memref<1x4x16x128xf32, #tpu.memory_space<vmem>>, vector<1x1x8x128xf32>
    %538 = vector.shape_cast %537 : vector<1x1x8x128xf32> to vector<8x128xf32>
    %c0_358 = arith.constant 0 : index
    %c2_359 = arith.constant 2 : index
    %c0_360 = arith.constant 0 : index
    %c0_361 = arith.constant 0 : index
    %539 = vector.load %arg3[%c0_358, %c2_359, %c0_360, %c0_361] : memref<1x4x8x128xf32, #tpu.memory_space<vmem>>, vector<1x1x8x128xf32>
    %540 = vector.shape_cast %539 : vector<1x1x8x128xf32> to vector<8x128xf32>
    %cst_362 = arith.constant 0.000000e+00 : f32
    %541 = vector.broadcast %cst_362 : f32 to vector<8x128xf32>
    %c1_i32_363 = arith.constant 1 : i32
    %542 = tpu.dynamic_rotate %538 by %c1_i32_363 dim 1 : vector<8x128xf32>, i32 -> vector<8x128xf32>
    %c127_i32_364 = arith.constant 127 : i32
    %543 = tpu.dynamic_rotate %538 by %c127_i32_364 dim 1 : vector<8x128xf32>, i32 -> vector<8x128xf32>
    %c2_365 = arith.constant 2 : index
    %c0_366 = arith.constant 0 : index
    %544 = memref.load %arg4[%c2_365, %c0_366] : memref<4x9xf32, #tpu.memory_space<smem>>
    %545 = vector.broadcast %544 : f32 to vector<8x128xf32>
    %546 = arith.mulf %542, %545 : vector<8x128xf32>
    %547 = arith.addf %541, %546 : vector<8x128xf32>
    %c2_367 = arith.constant 2 : index
    %c1_368 = arith.constant 1 : index
    %548 = memref.load %arg4[%c2_367, %c1_368] : memref<4x9xf32, #tpu.memory_space<smem>>
    %549 = vector.broadcast %548 : f32 to vector<8x128xf32>
    %550 = arith.mulf %538, %549 : vector<8x128xf32>
    %551 = arith.addf %547, %550 : vector<8x128xf32>
    %c2_369 = arith.constant 2 : index
    %c2_370 = arith.constant 2 : index
    %552 = memref.load %arg4[%c2_369, %c2_370] : memref<4x9xf32, #tpu.memory_space<smem>>
    %553 = vector.broadcast %552 : f32 to vector<8x128xf32>
    %554 = arith.mulf %543, %553 : vector<8x128xf32>
    %555 = arith.addf %551, %554 : vector<8x128xf32>
    %c7_i32_371 = arith.constant 7 : i32
    %556 = vector.broadcast %c7_i32_371 : i32 to vector<8x128xi32>
    %557 = arith.cmpi sge, %0, %556 : vector<8x128xi32>
    %c7_i32_372 = arith.constant 7 : i32
    %558 = tpu.dynamic_rotate %540 by %c7_i32_372 dim 0 : vector<8x128xf32>, i32 -> vector<8x128xf32>
    %c7_i32_373 = arith.constant 7 : i32
    %559 = tpu.dynamic_rotate %538 by %c7_i32_373 dim 0 : vector<8x128xf32>, i32 -> vector<8x128xf32>
    %560 = arith.select %557, %558, %559 : vector<8x128xi1>, vector<8x128xf32>
    %c1_i32_374 = arith.constant 1 : i32
    %561 = tpu.dynamic_rotate %560 by %c1_i32_374 dim 1 : vector<8x128xf32>, i32 -> vector<8x128xf32>
    %c127_i32_375 = arith.constant 127 : i32
    %562 = tpu.dynamic_rotate %560 by %c127_i32_375 dim 1 : vector<8x128xf32>, i32 -> vector<8x128xf32>
    %c2_376 = arith.constant 2 : index
    %c3_377 = arith.constant 3 : index
    %563 = memref.load %arg4[%c2_376, %c3_377] : memref<4x9xf32, #tpu.memory_space<smem>>
    %564 = vector.broadcast %563 : f32 to vector<8x128xf32>
    %565 = arith.mulf %561, %564 : vector<8x128xf32>
    %566 = arith.addf %555, %565 : vector<8x128xf32>
    %c2_378 = arith.constant 2 : index
    %c4_379 = arith.constant 4 : index
    %567 = memref.load %arg4[%c2_378, %c4_379] : memref<4x9xf32, #tpu.memory_space<smem>>
    %568 = vector.broadcast %567 : f32 to vector<8x128xf32>
    %569 = arith.mulf %560, %568 : vector<8x128xf32>
    %570 = arith.addf %566, %569 : vector<8x128xf32>
    %c2_380 = arith.constant 2 : index
    %c5_381 = arith.constant 5 : index
    %571 = memref.load %arg4[%c2_380, %c5_381] : memref<4x9xf32, #tpu.memory_space<smem>>
    %572 = vector.broadcast %571 : f32 to vector<8x128xf32>
    %573 = arith.mulf %562, %572 : vector<8x128xf32>
    %574 = arith.addf %570, %573 : vector<8x128xf32>
    %c6_i32_382 = arith.constant 6 : i32
    %575 = vector.broadcast %c6_i32_382 : i32 to vector<8x128xi32>
    %576 = arith.cmpi sge, %0, %575 : vector<8x128xi32>
    %c6_i32_383 = arith.constant 6 : i32
    %577 = tpu.dynamic_rotate %540 by %c6_i32_383 dim 0 : vector<8x128xf32>, i32 -> vector<8x128xf32>
    %c6_i32_384 = arith.constant 6 : i32
    %578 = tpu.dynamic_rotate %538 by %c6_i32_384 dim 0 : vector<8x128xf32>, i32 -> vector<8x128xf32>
    %579 = arith.select %576, %577, %578 : vector<8x128xi1>, vector<8x128xf32>
    %c1_i32_385 = arith.constant 1 : i32
    %580 = tpu.dynamic_rotate %579 by %c1_i32_385 dim 1 : vector<8x128xf32>, i32 -> vector<8x128xf32>
    %c127_i32_386 = arith.constant 127 : i32
    %581 = tpu.dynamic_rotate %579 by %c127_i32_386 dim 1 : vector<8x128xf32>, i32 -> vector<8x128xf32>
    %c2_387 = arith.constant 2 : index
    %c6_388 = arith.constant 6 : index
    %582 = memref.load %arg4[%c2_387, %c6_388] : memref<4x9xf32, #tpu.memory_space<smem>>
    %583 = vector.broadcast %582 : f32 to vector<8x128xf32>
    %584 = arith.mulf %580, %583 : vector<8x128xf32>
    %585 = arith.addf %574, %584 : vector<8x128xf32>
    %c2_389 = arith.constant 2 : index
    %c7_390 = arith.constant 7 : index
    %586 = memref.load %arg4[%c2_389, %c7_390] : memref<4x9xf32, #tpu.memory_space<smem>>
    %587 = vector.broadcast %586 : f32 to vector<8x128xf32>
    %588 = arith.mulf %579, %587 : vector<8x128xf32>
    %589 = arith.addf %585, %588 : vector<8x128xf32>
    %c2_391 = arith.constant 2 : index
    %c8_392 = arith.constant 8 : index
    %590 = memref.load %arg4[%c2_391, %c8_392] : memref<4x9xf32, #tpu.memory_space<smem>>
    %591 = vector.broadcast %590 : f32 to vector<8x128xf32>
    %592 = arith.mulf %581, %591 : vector<8x128xf32>
    %593 = arith.addf %589, %592 : vector<8x128xf32>
    %c2_393 = arith.constant 2 : index
    %c0_394 = arith.constant 0 : index
    %c0_395 = arith.constant 0 : index
    %594 = vector.load %arg8[%c2_393, %c0_394, %c0_395] : memref<4x8x128xf32, #tpu.memory_space<vmem>>, vector<1x8x128xf32>
    %595 = vector.shape_cast %594 : vector<1x8x128xf32> to vector<8x128xf32>
    %596 = vector.shape_cast %593 : vector<8x128xf32> to vector<1x8x128xf32>
    tpu.vector_store %arg8[%c2_393, %c0_394, %c0_395], %596 {strides = array<i32>} : memref<4x8x128xf32, #tpu.memory_space<vmem>>, vector<1x8x128xf32>,
    %c0_396 = arith.constant 0 : index
    %c3_397 = arith.constant 3 : index
    %c8_398 = arith.constant 8 : index
    %c0_399 = arith.constant 0 : index
    %597 = vector.load %arg2[%c0_396, %c3_397, %c8_398, %c0_399] : memref<1x4x16x128xf32, #tpu.memory_space<vmem>>, vector<1x1x8x128xf32>
    %598 = vector.shape_cast %597 : vector<1x1x8x128xf32> to vector<8x128xf32>
    %c0_400 = arith.constant 0 : index
    %c3_401 = arith.constant 3 : index
    %c0_402 = arith.constant 0 : index
    %c0_403 = arith.constant 0 : index
    %599 = vector.load %arg3[%c0_400, %c3_401, %c0_402, %c0_403] : memref<1x4x8x128xf32, #tpu.memory_space<vmem>>, vector<1x1x8x128xf32>
    %600 = vector.shape_cast %599 : vector<1x1x8x128xf32> to vector<8x128xf32>
    %cst_404 = arith.constant 0.000000e+00 : f32
    %601 = vector.broadcast %cst_404 : f32 to vector<8x128xf32>
    %c1_i32_405 = arith.constant 1 : i32
    %602 = tpu.dynamic_rotate %598 by %c1_i32_405 dim 1 : vector<8x128xf32>, i32 -> vector<8x128xf32>
    %c127_i32_406 = arith.constant 127 : i32
    %603 = tpu.dynamic_rotate %598 by %c127_i32_406 dim 1 : vector<8x128xf32>, i32 -> vector<8x128xf32>
    %c3_407 = arith.constant 3 : index
    %c0_408 = arith.constant 0 : index
    %604 = memref.load %arg4[%c3_407, %c0_408] : memref<4x9xf32, #tpu.memory_space<smem>>
    %605 = vector.broadcast %604 : f32 to vector<8x128xf32>
    %606 = arith.mulf %602, %605 : vector<8x128xf32>
    %607 = arith.addf %601, %606 : vector<8x128xf32>
    %c3_409 = arith.constant 3 : index
    %c1_410 = arith.constant 1 : index
    %608 = memref.load %arg4[%c3_409, %c1_410] : memref<4x9xf32, #tpu.memory_space<smem>>
    %609 = vector.broadcast %608 : f32 to vector<8x128xf32>
    %610 = arith.mulf %598, %609 : vector<8x128xf32>
    %611 = arith.addf %607, %610 : vector<8x128xf32>
    %c3_411 = arith.constant 3 : index
    %c2_412 = arith.constant 2 : index
    %612 = memref.load %arg4[%c3_411, %c2_412] : memref<4x9xf32, #tpu.memory_space<smem>>
    %613 = vector.broadcast %612 : f32 to vector<8x128xf32>
    %614 = arith.mulf %603, %613 : vector<8x128xf32>
    %615 = arith.addf %611, %614 : vector<8x128xf32>
    %c7_i32_413 = arith.constant 7 : i32
    %616 = vector.broadcast %c7_i32_413 : i32 to vector<8x128xi32>
    %617 = arith.cmpi sge, %0, %616 : vector<8x128xi32>
    %c7_i32_414 = arith.constant 7 : i32
    %618 = tpu.dynamic_rotate %600 by %c7_i32_414 dim 0 : vector<8x128xf32>, i32 -> vector<8x128xf32>
    %c7_i32_415 = arith.constant 7 : i32
    %619 = tpu.dynamic_rotate %598 by %c7_i32_415 dim 0 : vector<8x128xf32>, i32 -> vector<8x128xf32>
    %620 = arith.select %617, %618, %619 : vector<8x128xi1>, vector<8x128xf32>
    %c1_i32_416 = arith.constant 1 : i32
    %621 = tpu.dynamic_rotate %620 by %c1_i32_416 dim 1 : vector<8x128xf32>, i32 -> vector<8x128xf32>
    %c127_i32_417 = arith.constant 127 : i32
    %622 = tpu.dynamic_rotate %620 by %c127_i32_417 dim 1 : vector<8x128xf32>, i32 -> vector<8x128xf32>
    %c3_418 = arith.constant 3 : index
    %c3_419 = arith.constant 3 : index
    %623 = memref.load %arg4[%c3_418, %c3_419] : memref<4x9xf32, #tpu.memory_space<smem>>
    %624 = vector.broadcast %623 : f32 to vector<8x128xf32>
    %625 = arith.mulf %621, %624 : vector<8x128xf32>
    %626 = arith.addf %615, %625 : vector<8x128xf32>
    %c3_420 = arith.constant 3 : index
    %c4_421 = arith.constant 4 : index
    %627 = memref.load %arg4[%c3_420, %c4_421] : memref<4x9xf32, #tpu.memory_space<smem>>
    %628 = vector.broadcast %627 : f32 to vector<8x128xf32>
    %629 = arith.mulf %620, %628 : vector<8x128xf32>
    %630 = arith.addf %626, %629 : vector<8x128xf32>
    %c3_422 = arith.constant 3 : index
    %c5_423 = arith.constant 5 : index
    %631 = memref.load %arg4[%c3_422, %c5_423] : memref<4x9xf32, #tpu.memory_space<smem>>
    %632 = vector.broadcast %631 : f32 to vector<8x128xf32>
    %633 = arith.mulf %622, %632 : vector<8x128xf32>
    %634 = arith.addf %630, %633 : vector<8x128xf32>
    %c6_i32_424 = arith.constant 6 : i32
    %635 = vector.broadcast %c6_i32_424 : i32 to vector<8x128xi32>
    %636 = arith.cmpi sge, %0, %635 : vector<8x128xi32>
    %c6_i32_425 = arith.constant 6 : i32
    %637 = tpu.dynamic_rotate %600 by %c6_i32_425 dim 0 : vector<8x128xf32>, i32 -> vector<8x128xf32>
    %c6_i32_426 = arith.constant 6 : i32
    %638 = tpu.dynamic_rotate %598 by %c6_i32_426 dim 0 : vector<8x128xf32>, i32 -> vector<8x128xf32>
    %639 = arith.select %636, %637, %638 : vector<8x128xi1>, vector<8x128xf32>
    %c1_i32_427 = arith.constant 1 : i32
    %640 = tpu.dynamic_rotate %639 by %c1_i32_427 dim 1 : vector<8x128xf32>, i32 -> vector<8x128xf32>
    %c127_i32_428 = arith.constant 127 : i32
    %641 = tpu.dynamic_rotate %639 by %c127_i32_428 dim 1 : vector<8x128xf32>, i32 -> vector<8x128xf32>
    %c3_429 = arith.constant 3 : index
    %c6_430 = arith.constant 6 : index
    %642 = memref.load %arg4[%c3_429, %c6_430] : memref<4x9xf32, #tpu.memory_space<smem>>
    %643 = vector.broadcast %642 : f32 to vector<8x128xf32>
    %644 = arith.mulf %640, %643 : vector<8x128xf32>
    %645 = arith.addf %634, %644 : vector<8x128xf32>
    %c3_431 = arith.constant 3 : index
    %c7_432 = arith.constant 7 : index
    %646 = memref.load %arg4[%c3_431, %c7_432] : memref<4x9xf32, #tpu.memory_space<smem>>
    %647 = vector.broadcast %646 : f32 to vector<8x128xf32>
    %648 = arith.mulf %639, %647 : vector<8x128xf32>
    %649 = arith.addf %645, %648 : vector<8x128xf32>
    %c3_433 = arith.constant 3 : index
    %c8_434 = arith.constant 8 : index
    %650 = memref.load %arg4[%c3_433, %c8_434] : memref<4x9xf32, #tpu.memory_space<smem>>
    %651 = vector.broadcast %650 : f32 to vector<8x128xf32>
    %652 = arith.mulf %641, %651 : vector<8x128xf32>
    %653 = arith.addf %649, %652 : vector<8x128xf32>
    %c3_435 = arith.constant 3 : index
    %c0_436 = arith.constant 0 : index
    %c0_437 = arith.constant 0 : index
    %654 = vector.load %arg8[%c3_435, %c0_436, %c0_437] : memref<4x8x128xf32, #tpu.memory_space<vmem>>, vector<1x8x128xf32>
    %655 = vector.shape_cast %654 : vector<1x8x128xf32> to vector<8x128xf32>
    %656 = vector.shape_cast %653 : vector<8x128xf32> to vector<1x8x128xf32>
    tpu.vector_store %arg8[%c3_435, %c0_436, %c0_437], %656 {strides = array<i32>} : memref<4x8x128xf32, #tpu.memory_space<vmem>>, vector<1x8x128xf32>,
    %c0_438 = arith.constant 0 : index
    %657 = memref.load %arg6[%c0_438] : memref<8xf32, #tpu.memory_space<smem>>
    %658 = vector.broadcast %657 : f32 to vector<8x128xf32>
    %c1_439 = arith.constant 1 : index
    %659 = memref.load %arg6[%c1_439] : memref<8xf32, #tpu.memory_space<smem>>
    %660 = vector.broadcast %659 : f32 to vector<8x128xf32>
    %c2_440 = arith.constant 2 : index
    %661 = memref.load %arg6[%c2_440] : memref<8xf32, #tpu.memory_space<smem>>
    %662 = vector.broadcast %661 : f32 to vector<8x128xf32>
    %c3_441 = arith.constant 3 : index
    %663 = memref.load %arg6[%c3_441] : memref<8xf32, #tpu.memory_space<smem>>
    %664 = vector.broadcast %663 : f32 to vector<8x128xf32>
    %c4_442 = arith.constant 4 : index
    %665 = memref.load %arg6[%c4_442] : memref<8xf32, #tpu.memory_space<smem>>
    %666 = vector.broadcast %665 : f32 to vector<8x128xf32>
    %c5_443 = arith.constant 5 : index
    %667 = memref.load %arg6[%c5_443] : memref<8xf32, #tpu.memory_space<smem>>
    %668 = vector.broadcast %667 : f32 to vector<8x128xf32>
    %c6_444 = arith.constant 6 : index
    %669 = memref.load %arg6[%c6_444] : memref<8xf32, #tpu.memory_space<smem>>
    %670 = vector.broadcast %669 : f32 to vector<8x128xf32>
    %c7_445 = arith.constant 7 : index
    %671 = memref.load %arg6[%c7_445] : memref<8xf32, #tpu.memory_space<smem>>
    %672 = vector.broadcast %671 : f32 to vector<8x128xf32>
    %c0_446 = arith.constant 0 : index
    %c0_447 = arith.constant 0 : index
    %c0_448 = arith.constant 0 : index
    %673 = vector.load %arg8[%c0_446, %c0_447, %c0_448] : memref<4x8x128xf32, #tpu.memory_space<vmem>>, vector<1x8x128xf32>
    %674 = vector.shape_cast %673 : vector<1x8x128xf32> to vector<8x128xf32>
    %c0_449 = arith.constant 0 : index
    %c0_450 = arith.constant 0 : index
    %675 = memref.load %arg5[%c0_449, %c0_450] : memref<8x4xf32, #tpu.memory_space<smem>>
    %676 = vector.broadcast %675 : f32 to vector<8x128xf32>
    %677 = arith.mulf %674, %676 : vector<8x128xf32>
    %678 = arith.addf %658, %677 : vector<8x128xf32>
    %c1_451 = arith.constant 1 : index
    %c0_452 = arith.constant 0 : index
    %679 = memref.load %arg5[%c1_451, %c0_452] : memref<8x4xf32, #tpu.memory_space<smem>>
    %680 = vector.broadcast %679 : f32 to vector<8x128xf32>
    %681 = arith.mulf %674, %680 : vector<8x128xf32>
    %682 = arith.addf %660, %681 : vector<8x128xf32>
    %c2_453 = arith.constant 2 : index
    %c0_454 = arith.constant 0 : index
    %683 = memref.load %arg5[%c2_453, %c0_454] : memref<8x4xf32, #tpu.memory_space<smem>>
    %684 = vector.broadcast %683 : f32 to vector<8x128xf32>
    %685 = arith.mulf %674, %684 : vector<8x128xf32>
    %686 = arith.addf %662, %685 : vector<8x128xf32>
    %c3_455 = arith.constant 3 : index
    %c0_456 = arith.constant 0 : index
    %687 = memref.load %arg5[%c3_455, %c0_456] : memref<8x4xf32, #tpu.memory_space<smem>>
    %688 = vector.broadcast %687 : f32 to vector<8x128xf32>
    %689 = arith.mulf %674, %688 : vector<8x128xf32>
    %690 = arith.addf %664, %689 : vector<8x128xf32>
    %c4_457 = arith.constant 4 : index
    %c0_458 = arith.constant 0 : index
    %691 = memref.load %arg5[%c4_457, %c0_458] : memref<8x4xf32, #tpu.memory_space<smem>>
    %692 = vector.broadcast %691 : f32 to vector<8x128xf32>
    %693 = arith.mulf %674, %692 : vector<8x128xf32>
    %694 = arith.addf %666, %693 : vector<8x128xf32>
    %c5_459 = arith.constant 5 : index
    %c0_460 = arith.constant 0 : index
    %695 = memref.load %arg5[%c5_459, %c0_460] : memref<8x4xf32, #tpu.memory_space<smem>>
    %696 = vector.broadcast %695 : f32 to vector<8x128xf32>
    %697 = arith.mulf %674, %696 : vector<8x128xf32>
    %698 = arith.addf %668, %697 : vector<8x128xf32>
    %c6_461 = arith.constant 6 : index
    %c0_462 = arith.constant 0 : index
    %699 = memref.load %arg5[%c6_461, %c0_462] : memref<8x4xf32, #tpu.memory_space<smem>>
    %700 = vector.broadcast %699 : f32 to vector<8x128xf32>
    %701 = arith.mulf %674, %700 : vector<8x128xf32>
    %702 = arith.addf %670, %701 : vector<8x128xf32>
    %c7_463 = arith.constant 7 : index
    %c0_464 = arith.constant 0 : index
    %703 = memref.load %arg5[%c7_463, %c0_464] : memref<8x4xf32, #tpu.memory_space<smem>>
    %704 = vector.broadcast %703 : f32 to vector<8x128xf32>
    %705 = arith.mulf %674, %704 : vector<8x128xf32>
    %706 = arith.addf %672, %705 : vector<8x128xf32>
    %c1_465 = arith.constant 1 : index
    %c0_466 = arith.constant 0 : index
    %c0_467 = arith.constant 0 : index
    %707 = vector.load %arg8[%c1_465, %c0_466, %c0_467] : memref<4x8x128xf32, #tpu.memory_space<vmem>>, vector<1x8x128xf32>
    %708 = vector.shape_cast %707 : vector<1x8x128xf32> to vector<8x128xf32>
    %c0_468 = arith.constant 0 : index
    %c1_469 = arith.constant 1 : index
    %709 = memref.load %arg5[%c0_468, %c1_469] : memref<8x4xf32, #tpu.memory_space<smem>>
    %710 = vector.broadcast %709 : f32 to vector<8x128xf32>
    %711 = arith.mulf %708, %710 : vector<8x128xf32>
    %712 = arith.addf %678, %711 : vector<8x128xf32>
    %c1_470 = arith.constant 1 : index
    %c1_471 = arith.constant 1 : index
    %713 = memref.load %arg5[%c1_470, %c1_471] : memref<8x4xf32, #tpu.memory_space<smem>>
    %714 = vector.broadcast %713 : f32 to vector<8x128xf32>
    %715 = arith.mulf %708, %714 : vector<8x128xf32>
    %716 = arith.addf %682, %715 : vector<8x128xf32>
    %c2_472 = arith.constant 2 : index
    %c1_473 = arith.constant 1 : index
    %717 = memref.load %arg5[%c2_472, %c1_473] : memref<8x4xf32, #tpu.memory_space<smem>>
    %718 = vector.broadcast %717 : f32 to vector<8x128xf32>
    %719 = arith.mulf %708, %718 : vector<8x128xf32>
    %720 = arith.addf %686, %719 : vector<8x128xf32>
    %c3_474 = arith.constant 3 : index
    %c1_475 = arith.constant 1 : index
    %721 = memref.load %arg5[%c3_474, %c1_475] : memref<8x4xf32, #tpu.memory_space<smem>>
    %722 = vector.broadcast %721 : f32 to vector<8x128xf32>
    %723 = arith.mulf %708, %722 : vector<8x128xf32>
    %724 = arith.addf %690, %723 : vector<8x128xf32>
    %c4_476 = arith.constant 4 : index
    %c1_477 = arith.constant 1 : index
    %725 = memref.load %arg5[%c4_476, %c1_477] : memref<8x4xf32, #tpu.memory_space<smem>>
    %726 = vector.broadcast %725 : f32 to vector<8x128xf32>
    %727 = arith.mulf %708, %726 : vector<8x128xf32>
    %728 = arith.addf %694, %727 : vector<8x128xf32>
    %c5_478 = arith.constant 5 : index
    %c1_479 = arith.constant 1 : index
    %729 = memref.load %arg5[%c5_478, %c1_479] : memref<8x4xf32, #tpu.memory_space<smem>>
    %730 = vector.broadcast %729 : f32 to vector<8x128xf32>
    %731 = arith.mulf %708, %730 : vector<8x128xf32>
    %732 = arith.addf %698, %731 : vector<8x128xf32>
    %c6_480 = arith.constant 6 : index
    %c1_481 = arith.constant 1 : index
    %733 = memref.load %arg5[%c6_480, %c1_481] : memref<8x4xf32, #tpu.memory_space<smem>>
    %734 = vector.broadcast %733 : f32 to vector<8x128xf32>
    %735 = arith.mulf %708, %734 : vector<8x128xf32>
    %736 = arith.addf %702, %735 : vector<8x128xf32>
    %c7_482 = arith.constant 7 : index
    %c1_483 = arith.constant 1 : index
    %737 = memref.load %arg5[%c7_482, %c1_483] : memref<8x4xf32, #tpu.memory_space<smem>>
    %738 = vector.broadcast %737 : f32 to vector<8x128xf32>
    %739 = arith.mulf %708, %738 : vector<8x128xf32>
    %740 = arith.addf %706, %739 : vector<8x128xf32>
    %c2_484 = arith.constant 2 : index
    %c0_485 = arith.constant 0 : index
    %c0_486 = arith.constant 0 : index
    %741 = vector.load %arg8[%c2_484, %c0_485, %c0_486] : memref<4x8x128xf32, #tpu.memory_space<vmem>>, vector<1x8x128xf32>
    %742 = vector.shape_cast %741 : vector<1x8x128xf32> to vector<8x128xf32>
    %c0_487 = arith.constant 0 : index
    %c2_488 = arith.constant 2 : index
    %743 = memref.load %arg5[%c0_487, %c2_488] : memref<8x4xf32, #tpu.memory_space<smem>>
    %744 = vector.broadcast %743 : f32 to vector<8x128xf32>
    %745 = arith.mulf %742, %744 : vector<8x128xf32>
    %746 = arith.addf %712, %745 : vector<8x128xf32>
    %c1_489 = arith.constant 1 : index
    %c2_490 = arith.constant 2 : index
    %747 = memref.load %arg5[%c1_489, %c2_490] : memref<8x4xf32, #tpu.memory_space<smem>>
    %748 = vector.broadcast %747 : f32 to vector<8x128xf32>
    %749 = arith.mulf %742, %748 : vector<8x128xf32>
    %750 = arith.addf %716, %749 : vector<8x128xf32>
    %c2_491 = arith.constant 2 : index
    %c2_492 = arith.constant 2 : index
    %751 = memref.load %arg5[%c2_491, %c2_492] : memref<8x4xf32, #tpu.memory_space<smem>>
    %752 = vector.broadcast %751 : f32 to vector<8x128xf32>
    %753 = arith.mulf %742, %752 : vector<8x128xf32>
    %754 = arith.addf %720, %753 : vector<8x128xf32>
    %c3_493 = arith.constant 3 : index
    %c2_494 = arith.constant 2 : index
    %755 = memref.load %arg5[%c3_493, %c2_494] : memref<8x4xf32, #tpu.memory_space<smem>>
    %756 = vector.broadcast %755 : f32 to vector<8x128xf32>
    %757 = arith.mulf %742, %756 : vector<8x128xf32>
    %758 = arith.addf %724, %757 : vector<8x128xf32>
    %c4_495 = arith.constant 4 : index
    %c2_496 = arith.constant 2 : index
    %759 = memref.load %arg5[%c4_495, %c2_496] : memref<8x4xf32, #tpu.memory_space<smem>>
    %760 = vector.broadcast %759 : f32 to vector<8x128xf32>
    %761 = arith.mulf %742, %760 : vector<8x128xf32>
    %762 = arith.addf %728, %761 : vector<8x128xf32>
    %c5_497 = arith.constant 5 : index
    %c2_498 = arith.constant 2 : index
    %763 = memref.load %arg5[%c5_497, %c2_498] : memref<8x4xf32, #tpu.memory_space<smem>>
    %764 = vector.broadcast %763 : f32 to vector<8x128xf32>
    %765 = arith.mulf %742, %764 : vector<8x128xf32>
    %766 = arith.addf %732, %765 : vector<8x128xf32>
    %c6_499 = arith.constant 6 : index
    %c2_500 = arith.constant 2 : index
    %767 = memref.load %arg5[%c6_499, %c2_500] : memref<8x4xf32, #tpu.memory_space<smem>>
    %768 = vector.broadcast %767 : f32 to vector<8x128xf32>
    %769 = arith.mulf %742, %768 : vector<8x128xf32>
    %770 = arith.addf %736, %769 : vector<8x128xf32>
    %c7_501 = arith.constant 7 : index
    %c2_502 = arith.constant 2 : index
    %771 = memref.load %arg5[%c7_501, %c2_502] : memref<8x4xf32, #tpu.memory_space<smem>>
    %772 = vector.broadcast %771 : f32 to vector<8x128xf32>
    %773 = arith.mulf %742, %772 : vector<8x128xf32>
    %774 = arith.addf %740, %773 : vector<8x128xf32>
    %c3_503 = arith.constant 3 : index
    %c0_504 = arith.constant 0 : index
    %c0_505 = arith.constant 0 : index
    %775 = vector.load %arg8[%c3_503, %c0_504, %c0_505] : memref<4x8x128xf32, #tpu.memory_space<vmem>>, vector<1x8x128xf32>
    %776 = vector.shape_cast %775 : vector<1x8x128xf32> to vector<8x128xf32>
    %c0_506 = arith.constant 0 : index
    %c3_507 = arith.constant 3 : index
    %777 = memref.load %arg5[%c0_506, %c3_507] : memref<8x4xf32, #tpu.memory_space<smem>>
    %778 = vector.broadcast %777 : f32 to vector<8x128xf32>
    %779 = arith.mulf %776, %778 : vector<8x128xf32>
    %780 = arith.addf %746, %779 : vector<8x128xf32>
    %c1_508 = arith.constant 1 : index
    %c3_509 = arith.constant 3 : index
    %781 = memref.load %arg5[%c1_508, %c3_509] : memref<8x4xf32, #tpu.memory_space<smem>>
    %782 = vector.broadcast %781 : f32 to vector<8x128xf32>
    %783 = arith.mulf %776, %782 : vector<8x128xf32>
    %784 = arith.addf %750, %783 : vector<8x128xf32>
    %c2_510 = arith.constant 2 : index
    %c3_511 = arith.constant 3 : index
    %785 = memref.load %arg5[%c2_510, %c3_511] : memref<8x4xf32, #tpu.memory_space<smem>>
    %786 = vector.broadcast %785 : f32 to vector<8x128xf32>
    %787 = arith.mulf %776, %786 : vector<8x128xf32>
    %788 = arith.addf %754, %787 : vector<8x128xf32>
    %c3_512 = arith.constant 3 : index
    %c3_513 = arith.constant 3 : index
    %789 = memref.load %arg5[%c3_512, %c3_513] : memref<8x4xf32, #tpu.memory_space<smem>>
    %790 = vector.broadcast %789 : f32 to vector<8x128xf32>
    %791 = arith.mulf %776, %790 : vector<8x128xf32>
    %792 = arith.addf %758, %791 : vector<8x128xf32>
    %c4_514 = arith.constant 4 : index
    %c3_515 = arith.constant 3 : index
    %793 = memref.load %arg5[%c4_514, %c3_515] : memref<8x4xf32, #tpu.memory_space<smem>>
    %794 = vector.broadcast %793 : f32 to vector<8x128xf32>
    %795 = arith.mulf %776, %794 : vector<8x128xf32>
    %796 = arith.addf %762, %795 : vector<8x128xf32>
    %c5_516 = arith.constant 5 : index
    %c3_517 = arith.constant 3 : index
    %797 = memref.load %arg5[%c5_516, %c3_517] : memref<8x4xf32, #tpu.memory_space<smem>>
    %798 = vector.broadcast %797 : f32 to vector<8x128xf32>
    %799 = arith.mulf %776, %798 : vector<8x128xf32>
    %800 = arith.addf %766, %799 : vector<8x128xf32>
    %c6_518 = arith.constant 6 : index
    %c3_519 = arith.constant 3 : index
    %801 = memref.load %arg5[%c6_518, %c3_519] : memref<8x4xf32, #tpu.memory_space<smem>>
    %802 = vector.broadcast %801 : f32 to vector<8x128xf32>
    %803 = arith.mulf %776, %802 : vector<8x128xf32>
    %804 = arith.addf %770, %803 : vector<8x128xf32>
    %c7_520 = arith.constant 7 : index
    %c3_521 = arith.constant 3 : index
    %805 = memref.load %arg5[%c7_520, %c3_521] : memref<8x4xf32, #tpu.memory_space<smem>>
    %806 = vector.broadcast %805 : f32 to vector<8x128xf32>
    %807 = arith.mulf %776, %806 : vector<8x128xf32>
    %808 = arith.addf %774, %807 : vector<8x128xf32>
    %c0_522 = arith.constant 0 : index
    %c0_523 = arith.constant 0 : index
    %c8_524 = arith.constant 8 : index
    %c0_525 = arith.constant 0 : index
    %809 = vector.load %arg7[%c0_522, %c0_523, %c8_524, %c0_525] : memref<1x8x16x128xf32, #tpu.memory_space<vmem>>, vector<1x1x8x128xf32>
    %810 = vector.shape_cast %809 : vector<1x1x8x128xf32> to vector<8x128xf32>
    %811 = vector.shape_cast %780 : vector<8x128xf32> to vector<1x1x8x128xf32>
    tpu.vector_store %arg7[%c0_522, %c0_523, %c8_524, %c0_525], %811 {strides = array<i32>} : memref<1x8x16x128xf32, #tpu.memory_space<vmem>>, vector<1x1x8x128xf32>,
    %c0_526 = arith.constant 0 : index
    %c1_527 = arith.constant 1 : index
    %c8_528 = arith.constant 8 : index
    %c0_529 = arith.constant 0 : index
    %812 = vector.load %arg7[%c0_526, %c1_527, %c8_528, %c0_529] : memref<1x8x16x128xf32, #tpu.memory_space<vmem>>, vector<1x1x8x128xf32>
    %813 = vector.shape_cast %812 : vector<1x1x8x128xf32> to vector<8x128xf32>
    %814 = vector.shape_cast %784 : vector<8x128xf32> to vector<1x1x8x128xf32>
    tpu.vector_store %arg7[%c0_526, %c1_527, %c8_528, %c0_529], %814 {strides = array<i32>} : memref<1x8x16x128xf32, #tpu.memory_space<vmem>>, vector<1x1x8x128xf32>,
    %c0_530 = arith.constant 0 : index
    %c2_531 = arith.constant 2 : index
    %c8_532 = arith.constant 8 : index
    %c0_533 = arith.constant 0 : index
    %815 = vector.load %arg7[%c0_530, %c2_531, %c8_532, %c0_533] : memref<1x8x16x128xf32, #tpu.memory_space<vmem>>, vector<1x1x8x128xf32>
    %816 = vector.shape_cast %815 : vector<1x1x8x128xf32> to vector<8x128xf32>
    %817 = vector.shape_cast %788 : vector<8x128xf32> to vector<1x1x8x128xf32>
    tpu.vector_store %arg7[%c0_530, %c2_531, %c8_532, %c0_533], %817 {strides = array<i32>} : memref<1x8x16x128xf32, #tpu.memory_space<vmem>>, vector<1x1x8x128xf32>,
    %c0_534 = arith.constant 0 : index
    %c3_535 = arith.constant 3 : index
    %c8_536 = arith.constant 8 : index
    %c0_537 = arith.constant 0 : index
    %818 = vector.load %arg7[%c0_534, %c3_535, %c8_536, %c0_537] : memref<1x8x16x128xf32, #tpu.memory_space<vmem>>, vector<1x1x8x128xf32>
    %819 = vector.shape_cast %818 : vector<1x1x8x128xf32> to vector<8x128xf32>
    %820 = vector.shape_cast %792 : vector<8x128xf32> to vector<1x1x8x128xf32>
    tpu.vector_store %arg7[%c0_534, %c3_535, %c8_536, %c0_537], %820 {strides = array<i32>} : memref<1x8x16x128xf32, #tpu.memory_space<vmem>>, vector<1x1x8x128xf32>,
    %c0_538 = arith.constant 0 : index
    %c4_539 = arith.constant 4 : index
    %c8_540 = arith.constant 8 : index
    %c0_541 = arith.constant 0 : index
    %821 = vector.load %arg7[%c0_538, %c4_539, %c8_540, %c0_541] : memref<1x8x16x128xf32, #tpu.memory_space<vmem>>, vector<1x1x8x128xf32>
    %822 = vector.shape_cast %821 : vector<1x1x8x128xf32> to vector<8x128xf32>
    %823 = vector.shape_cast %796 : vector<8x128xf32> to vector<1x1x8x128xf32>
    tpu.vector_store %arg7[%c0_538, %c4_539, %c8_540, %c0_541], %823 {strides = array<i32>} : memref<1x8x16x128xf32, #tpu.memory_space<vmem>>, vector<1x1x8x128xf32>,
    %c0_542 = arith.constant 0 : index
    %c5_543 = arith.constant 5 : index
    %c8_544 = arith.constant 8 : index
    %c0_545 = arith.constant 0 : index
    %824 = vector.load %arg7[%c0_542, %c5_543, %c8_544, %c0_545] : memref<1x8x16x128xf32, #tpu.memory_space<vmem>>, vector<1x1x8x128xf32>
    %825 = vector.shape_cast %824 : vector<1x1x8x128xf32> to vector<8x128xf32>
    %826 = vector.shape_cast %800 : vector<8x128xf32> to vector<1x1x8x128xf32>
    tpu.vector_store %arg7[%c0_542, %c5_543, %c8_544, %c0_545], %826 {strides = array<i32>} : memref<1x8x16x128xf32, #tpu.memory_space<vmem>>, vector<1x1x8x128xf32>,
    %c0_546 = arith.constant 0 : index
    %c6_547 = arith.constant 6 : index
    %c8_548 = arith.constant 8 : index
    %c0_549 = arith.constant 0 : index
    %827 = vector.load %arg7[%c0_546, %c6_547, %c8_548, %c0_549] : memref<1x8x16x128xf32, #tpu.memory_space<vmem>>, vector<1x1x8x128xf32>
    %828 = vector.shape_cast %827 : vector<1x1x8x128xf32> to vector<8x128xf32>
    %829 = vector.shape_cast %804 : vector<8x128xf32> to vector<1x1x8x128xf32>
    tpu.vector_store %arg7[%c0_546, %c6_547, %c8_548, %c0_549], %829 {strides = array<i32>} : memref<1x8x16x128xf32, #tpu.memory_space<vmem>>, vector<1x1x8x128xf32>,
    %c0_550 = arith.constant 0 : index
    %c7_551 = arith.constant 7 : index
    %c8_552 = arith.constant 8 : index
    %c0_553 = arith.constant 0 : index
    %830 = vector.load %arg7[%c0_550, %c7_551, %c8_552, %c0_553] : memref<1x8x16x128xf32, #tpu.memory_space<vmem>>, vector<1x1x8x128xf32>
    %831 = vector.shape_cast %830 : vector<1x1x8x128xf32> to vector<8x128xf32>
    %832 = vector.shape_cast %808 : vector<8x128xf32> to vector<1x1x8x128xf32>
    tpu.vector_store %arg7[%c0_550, %c7_551, %c8_552, %c0_553], %832 {strides = array<i32>} : memref<1x8x16x128xf32, #tpu.memory_space<vmem>>, vector<1x1x8x128xf32>,
    return
  }
  func.func @transform_0(%arg0: i32, %arg1: i32) -> (i32, i32, i32, i32) {
    %c0_i32 = arith.constant 0 : i32
    %c0_i32_0 = arith.constant 0 : i32
    %c0_i32_1 = arith.constant 0 : i32
    return %arg0, %c0_i32, %arg1, %c0_i32_0 : i32, i32, i32, i32
  }
  func.func @transform_1(%arg0: i32, %arg1: i32) -> (i32, i32, i32, i32) {
    %c1_i32 = arith.constant 1 : i32
    %0 = arith.addi %arg1, %c1_i32 : i32
    %c2_i32 = arith.constant 2 : i32
    %1 = arith.muli %0, %c2_i32 : i32
    %c0_i32 = arith.constant 0 : i32
    %c0_i32_0 = arith.constant 0 : i32
    %c0_i32_1 = arith.constant 0 : i32
    return %arg0, %c0_i32, %1, %c0_i32_0 : i32, i32, i32, i32
  }
  func.func @transform_2(%arg0: i32, %arg1: i32) -> (i32, i32) {
    %c0_i32 = arith.constant 0 : i32
    %c0_i32_0 = arith.constant 0 : i32
    %c0_i32_1 = arith.constant 0 : i32
    return %c0_i32, %c0_i32_0 : i32, i32
  }
  func.func @transform_3(%arg0: i32, %arg1: i32) -> (i32, i32) {
    %c0_i32 = arith.constant 0 : i32
    %c0_i32_0 = arith.constant 0 : i32
    %c0_i32_1 = arith.constant 0 : i32
    return %c0_i32, %c0_i32_0 : i32, i32
  }
  func.func @transform_4(%arg0: i32, %arg1: i32) -> i32 {
    %c0_i32 = arith.constant 0 : i32
    %c0_i32_0 = arith.constant 0 : i32
    return %c0_i32 : i32
  }
  func.func @transform_5(%arg0: i32, %arg1: i32) -> (i32, i32, i32, i32) {
    %c0_i32 = arith.constant 0 : i32
    %c0_i32_0 = arith.constant 0 : i32
    %c0_i32_1 = arith.constant 0 : i32
    return %arg0, %c0_i32, %arg1, %c0_i32_0 : i32, i32, i32, i32
  }
}

</mosaic_0001>

<bundles_post_ra>
// kernel: tpu_custom_call.1
= control target key start
LH: loop header
LB: loop body
LE: loop exit
PB: predicated region body
PF: predicated region fallthrough
CT: control target
= control target key end

     0   :  { %s2914_s0 = inlined_call_operand.hbm [shape: f32[2,4,24,128], index: 0, kind: input, shape index: {}]   ;;  %s2915_s1 = inlined_call_operand.hbm [shape: f32[2,4,24,128], index: 1, kind: input, shape index: {}]   ;;  %s2916_s2 = inlined_call_operand.vmem [shape: f32[4,9], index: 2, kind: input, shape index: {}]   ;;  %s2917_s3 = inlined_call_operand.vmem [shape: f32[8,4], index: 3, kind: input, shape index: {}]   ;;  %s2918_s4 = inlined_call_operand.vmem [shape: f32[8], index: 4, kind: input, shape index: {}]   ;;  %s2919_s5 = inlined_call_operand.hbm [shape: f32[2,8,16,128], index: 5, kind: output, shape index: {}]  }
   0x1   :  { %2987 = sst [smem:[#allocation56_spill]] %s2914_s0 }
   0x2   :  { %2988 = sst [smem:[#allocation57_spill]] %s2915_s1 }
   0x3   :  { %2989 = sst [smem:[#allocation58_spill]] %s2916_s2 }
   0x4   :  { %2990 = sst [smem:[#allocation59_spill]] %s2917_s3 }
   0x5   :  { %2991 = sst [smem:[#allocation60_spill]] %s2918_s4 }
   0x6   :  { %2992 = sst [smem:[#allocation61_spill]] %s2919_s5 }
   0x7   :  { %10 = vsyncpa [#allocation4], 0 }
   0x8   :  { %12 = vsyncpa [#allocation4 + $0x1], 0 }
   0x9   :  { %13 = vsyncpa [#allocation8], 0 }
   0xa   :  { %15 = vsyncpa [#allocation8 + $0x1], 0 }
   0xb   :  { %16 = vsyncpa [#allocation6], 0 }
   0xc   :  { %17 = vsyncpa [#allocation11], 0 }
   0xd   :  { %18 = vsyncpa [#allocation5], 0 }
   0xe   :  { %20 = vsyncpa [#allocation5 + $0x1], 0  ;;  %s1865_s18 = smov 0   ;;  %s1867_s19 = smov 0  }
   0xf   :  { %s1869_s20 = smov 0   ;;  %s1871_s21 = smov 0  }
  0x10   :  { %s1873_s22 = smov 0   ;;  %s1875_s23 = smov 0  }
  0x11 LB: > { %2993 = sst [smem:[#allocation22_spill]] %s1795_s18  ;;  %s1338_s24 = sadd.s32 4294967295, %s1815_s23   ;;  %s1815_s23 = sphi %s1875_s23, %s26_s23   ;;  %s1811_s22 = sphi %s1873_s22, %s3109_s22   ;;  %s1807_s21 = sphi %s1871_s21, %s3108_s21   ;;  %s1803_s20 = sphi %s1869_s20, %s3107_s20   ;;  %s1799_s19 = sphi %s1867_s19, %s3106_s19   ;;  %s1795_s18 = sphi %s1865_s18, %s3105_s18  }
  0x12   : > { %2994 = sst [smem:[#allocation23_spill]] %s1799_s19  ;;  %s1339_s25 = sadd.s32 4294967294, %s1815_s23  }
  0x13   : > { %2995 = sst [smem:[#allocation24_spill]] %s1803_s20  ;;  %s38_s26 = sadd.s32 1, %s1811_s22 }
  0x14   : > { %2996 = sst [smem:[#allocation25_spill]] %s1807_s21  ;;  %s47_s27 = sadd.s32 1, %s1803_s20 }
  0x15   : > { %2997 = sst [smem:[#allocation26_spill]] %s1811_s22  ;;  %p40_p0 = scmp.ge.s32.totalorder %s38_s26, 2 }
  0x16   : > { %2998 = sst [smem:[#allocation27_spill]] %s1815_s23  ;;  %p54_p1 = scmp.ne.s32.totalorder %s1803_s20, %s1799_s19 }
  0x17   : > { %p55_p2 = scmp.eq.s32.totalorder %s1815_s23, 0  ;;  %p60_p3 = scmp.ne.s32.totalorder %s1799_s19, %s1795_s18 }
  0x18   : > { %s3111_s26 = smov (%p40_p0, %s38_s26), 0  ;;  %p1910_p5 = scmp.eq.s32.totalorder %s1338_s24, 0 }
  0x19   : > { %2999 = sst [smem:[#allocation28_spill]] %s3111_s26  ;;  %p1906_p4 = por %p55_p2, %p54_p1 }
  0x1a   : > { %s3001_s29 = scalar_select %p1910_p5, 1, 0 }
  0x1b   : > { %s3000_s28 = scalar_select %p1906_p4, 1, 0 }
  0x1c   : > { %s42_s30 = ssub.s32 %s1811_s22, %s3111_s26  ;;  %p181_p6 = scmp.eq.s32.totalorder %s1338_s24, 1 }
  0x1d   : > { %p45_p7 = scmp.eq.s32.totalorder %s42_s30, 0  ;;  %p1918_p8 = por %p1910_p5, %p60_p3 }
  0x1e   : > { %p1922_p9 = por %p181_p6, %p54_p1  ;;  %p187_p10 = scmp.eq.s32.totalorder %s1339_s25, 1 }
  0x1f   : > { %s3002_s6 = scalar_select %p1918_p8, 1, 0 }
  0x20   : > { %s3003_s7 = scalar_select %p1922_p9, 1, 0 }
  0x21   : > { %s1927_s8 = scalar_select %p45_p7, %s1803_s20, %s47_s27  }
  0x22   : > { %3004 = sst [smem:[#allocation29_spill]] %s3003_s7  ;;  %p1929_p11 = por %p187_p10, %p60_p3 }
  0x23   : > { %3005 = sst [smem:[#allocation30_spill]] %s1927_s8  ;;  %p1340_p12 = scmp.ge.s32.totalorder %s1815_s23, 1 }
  0x24   : > { %s3006_s9 = scalar_select %p1929_p11, 1, 0 }
  0x25   : > { %p194_p13 = scmp.lt.s32.totalorder %s1815_s23, 3  ;;  %s3008_s3 = sld [smem:[#allocation59_spill]] }
  0x26   : > { %3007 = sst [smem:[#allocation31_spill]] %s3006_s9  ;;  %s3010_s2 = sld [smem:[#allocation58_spill]] }
  0x27   : > { %p1938_p0 = pnand %p1340_p12, %p194_p13  ;;  %s3012_s4 = sld [smem:[#allocation60_spill]] }
  0x29   : > { %s3009_s13 = scalar_select %p1938_p0, 1, 0 }
  0x2a   : > { %p1562_p1 = pneg %p1938_p0 }
  0x2b   : > { %s218_s12 = sshll.u32 %s3008_s3, 4  ;;  %s219_s12 = int_to_ptr.vmem [resolvable:$true] %s218_s12 }
  0x2c   : > { %s207_s16 = sshll.u32 %s3010_s2, 4  ;;  %p1949_p2 = pnand %p1562_p1, %p1910_p5  ;;  %s208_s16 = int_to_ptr.vmem [resolvable:$true] %s207_s16 }
  0x2d   : > { %s229_s27 = sshll.u32 %s3012_s4, 4  ;;  %s1647_s30 = scalar_lea.vmem %s219_s12, 128  ;;  %s1956_s27 = int_to_ptr.vmem [resolvable:$true] %s229_s27 }
  0x2e   : > { %p1648_p3 = scmp.ne.s32.totalorder %s219_s12, %s1647_s30  ;;  %p1649_p6 = pneg %p1949_p2 }
  0x2f   : > { %p1655_p12 = scmp.lt.s32.totalorder %s219_s12, %s219_s12  ;;  %p1656_p13 = scmp.lt.s32.totalorder %s1647_s30, %s1647_s30 }
  0x30   : > { %p1650_p7 = pnand %p1649_p6, %p1648_p3 }
  0x31   : > { %p1657_p1 = por %p1656_p13, %p1655_p12 }
  0x32   : > { %p1651_p10 = pneg %p1650_p7 }
  0x34   : > { %p1658_p11 = pnand %p1657_p1, %p1651_p10 }
  0x36   : > { %1661 = shalt.err (!%p1658_p11)
}
  0x37   : > { %s1817_s10 = smov [#allocation10]   ;;  %s1662_s11 = scalar_lea.vmem %s208_s16, 64 }
  0x38   : > { %1568 = dma.vmem_to_smem (!%p1949_p2), %s219_s12, 128, %s1817_s10, [#allocation11]  }
  0x39   : > { %p1663_p9 = scmp.ne.s32.totalorder %s208_s16, %s1662_s11  ;;  %p1670_p0 = scmp.lt.s32.totalorder %s208_s16, %s208_s16 }
  0x3a   : > { %p1671_p4 = scmp.lt.s32.totalorder %s1662_s11, %s1662_s11 }
  0x3b   : > { %p1665_p5 = pnand %p1663_p9, %p1649_p6 }
  0x3c   : > { %p1672_p3 = por %p1671_p4, %p1670_p0 }
  0x3d   : > { %p1666_p8 = pneg %p1665_p5 }
  0x3f   : > { %p1673_p7 = pnand %p1672_p3, %p1666_p8 }
  0x41   : > { %1676 = shalt.err (!%p1673_p7)
}
  0x42   : > { %s1818_s14 = smov [#allocation9]   ;;  %s1677_s12 = scalar_lea.vmem %s1956_s27, 16 }
  0x43   : > { %1565 = dma.vmem_to_smem (!%p1949_p2), %s208_s16, 64, %s1818_s14, [#allocation6]  }
  0x44   : > { %p1678_p11 = scmp.ne.s32.totalorder %s1956_s27, %s1677_s12  ;;  %p1685_p5 = scmp.lt.s32.totalorder %s1956_s27, %s1956_s27 }
  0x45   : > { %p1686_p12 = scmp.lt.s32.totalorder %s1677_s12, %s1677_s12 }
  0x46   : > { %p1680_p10 = pnand %p1678_p11, %p1649_p6 }
  0x47   : > { %p1687_p4 = por %p1686_p12, %p1685_p5 }
  0x48   : > { %p1681_p9 = pneg %p1680_p10 }
  0x4a   : > { %p1688_p8 = pnand %p1687_p4, %p1681_p9 }
  0x4c   : > { %1691 = shalt.err (!%p1688_p8)
}
  0x4d   : > { %s1819_s15 = smov [#allocation12]   ;;  %p1344_p0 = scmp.ge.s32.totalorder %s1815_s23, 2 }
  0x4e   : > { %1571 = dma.vmem_to_smem (!%p1949_p2), %s1956_s27, 16, %s1819_s15, [#allocation11]  }
  0x4f   : > { %236 = sbr.rel (%p1344_p0) target bundleno = 132 (0x84), region = 28 }
  0x56   : > { %s1984_s16 = sand.u32 1, %s1803_s20   ;;  %s1536_s24 = smul.u32 1536, %s1811_s22 }
  0x57   : > { %s1345_s17 = sshll.u32 %s1984_s16, 6  ;;  %s3013_s0 = sld [smem:[#allocation56_spill]] }
  0x58   : > { %p3014_p2 = scmp.ne.s32.totalorder %s3000_s28, 0  ;;  %s244_s11 = scalar_lea.vmem [#allocation3], %s1345_s17 }
  0x59   : > { %s272_s14 = sshll.u32 %s244_s11, 4  ;;  %s1820_s15 = smov 384   ;;  %s273_s14 = int_to_ptr.vmem [resolvable:$true] %s272_s14 }
  0x5a   : > { %s1543_s10 = scalar_select %p3014_p2, [#allocation0], [#allocation16] }
  0x5b   : > { %1544 = sst [smem:[#allocation15]] (%p3014_p2), %s1820_s15  ;;  %s1821_s2 = smov 256  }
  0x5c   : > { %s264_s12 = sld [smem:[%s1543_s10]]   ;;  %s1822_s3 = smov 2  }
  0x5d   : > { %s257_s30 = scalar_lea.hbm %s3013_s0, %s1536_s24  ;;  %1545 = sst [smem:[#allocation15 + $0x1]] (%p3014_p2), %s1821_s2 }
  0x5e   : > { %1546 = sst [smem:[#allocation15 + $0x2]] (%p3014_p2), %s1822_s3  ;;  %s1823_s25 = smov 128  }
  0x5f   : > { %1547 = sst [smem:[#allocation15 + $0x3]] (%p3014_p2), %s1823_s25  ;;  %s1824_s27 = smov 8  }
  0x60   : > { %1548 = sst [smem:[#allocation15 + $0x4]] (%p3014_p2), %s1823_s25  ;;  %s241_s11 = scalar_lea.sflag [#allocation4], %s1984_s16 }
  0x61   : > { %1549 = sst [smem:[#allocation15 + $0x5]] (%p3014_p2), %s1824_s27  ;;  %s1825_s0 = smov [#allocation14]  }
  0x62   : > { %s1347_s17 = sshll.u32 %s264_s12, 26  ;;  %s1349_s2 = sshll.u32 %s1984_s16, 5 }
  0x63   : > { %s1348_s10 = sadd.s32 134217728, %s1347_s17  ;;  %s299_s12 = scalar_lea.vmem [#allocation7], %s1349_s2 }
  0x64   : > { %1550 = dma.general (%p3014_p2), %s257_s30, 1024, %s273_s14, %s241_s11, %s1825_s0, [#allocation15], %s1348_s10, 0  }
  0x65   : > { %s3015_s1 = sld [smem:[#allocation57_spill]]  ;;  %s309_s25 = sshll.u32 %s299_s12, 4  ;;  %s2014_s25 = int_to_ptr.vmem [resolvable:$true] %s309_s25 }
  0x66   : > { %s296_s17 = scalar_lea.sflag [#allocation8], %s1984_s16 }
  0x6b   : > { %s1242_s4 = scalar_lea.hbm %s3015_s1, %s1536_s24  ;;  %s1696_s14 = scalar_lea.hbm %s3015_s1, 3072 }
  0x6c   : > { %s2012_s26 = scalar_lea.hbm %s1242_s4, 256  ;;  %s1720_s27 = scalar_lea.hbm %s1242_s4, 768 }
  0x6d   : > { %p1693_p6 = scmp.ne.s32.totalorder %s2012_s26, %s1720_s27  ;;  %p1697_p3 = scmp.lt.u32.totalorder %s2012_s26, %s3015_s1 }
  0x6e   : > { %p1698_p7 = scmp.lt.u32.totalorder %s1696_s14, %s1720_s27  ;;  %p1700_p10 = scmp.lt.u32.totalorder %s1720_s27, %s2012_s26 }
  0x6f   : > { %p1694_p13 = pnand %p1693_p6, %p3014_p2 }
  0x70   : > { %p1699_p11 = por %p1698_p7, %p1697_p3 }
  0x71   : > { %p1695_p1 = pneg %p1694_p13 }
  0x72   : > { %p1701_p9 = por %p1700_p10, %p1699_p11 }
  0x74   : > { %p1702_p5 = pnand %p1701_p9, %p1695_p1 }
  0x76   : > { %1705 = shalt.err (!%p1702_p5)
}
  0x77   : > { %s1706_s4 = scalar_lea.vmem %s2014_s25, 512  ;;  %s1826_s11 = smov [#allocation7]  }
  0x78   : > { %p1707_p12 = scmp.ne.s32.totalorder %s2014_s25, %s1706_s4  ;;  %s1710_s2 = sshll.u32 %s1826_s11, 4  ;;  %s1711_s2 = int_to_ptr.vmem [resolvable:$false] %s1710_s2 }
  0x79   : > { %s1712_s15 = scalar_lea.vmem %s1711_s2, 1024  ;;  %p1713_p6 = scmp.lt.s32.totalorder %s2014_s25, %s1711_s2 }
  0x7a   : > { %p1708_p4 = pnand %p1707_p12, %p3014_p2  ;;  %p1714_p13 = scmp.lt.s32.totalorder %s1712_s15, %s1706_s4 }
  0x7c   : > { %p1709_p8 = pneg %p1708_p4  ;;  %p1715_p3 = por %p1714_p13, %p1713_p6 }
  0x7e   : > { %p1716_p7 = pnand %p1715_p3, %p1709_p8 }
  0x80   : > { %1719 = shalt.err (!%p1716_p7)
}
  0x81   : > { %s1827_s3 = smov 384   ;;  %s1828_s12 = smov 128  }
  0x82   : > { %s1829_s27 = smov 8  }
  0x83   : > { %1551 = dma.hbm_to_vmem [thread:$0]  (%p3014_p2), %s2012_s26, 512, %s2014_s25, %s296_s17, %s1827_s3, %s1828_s12, %s1829_s27  }
  0x84 PF: > { %p3016_p1 = scmp.ne.s32.totalorder %s3009_s13, 0 }
  0x86   : > { %321 = sbr.rel (%p3016_p1) target bundleno = 411 (0x19b), region = 40 }
  0x8d   : > { %s2042_s0 = sand.u32 1, %s1799_s19   ;;  %p3018_p11 = scmp.ne.s32.totalorder %s3002_s6, 0 }
  0x8e   : > { %3017 = sst [smem:[#allocation32_spill]] %s2042_s0  ;;  %s1352_s30 = sshll.u32 %s2042_s0, 6 }
  0x8f   : > { %s324_s14 = scalar_lea.sflag [#allocation4], %s2042_s0  ;;  %s2046_s24 = scalar_lea.vmem [#allocation3], %s1352_s30 }
  0x90   : > { %1774 = dma.done.wait (%p3018_p11), %s324_s14, 1024  }
  0x91   : > { %1776 = vsyncadd (%p3018_p11), %s324_s14, 4294966272  ;;  %s1353_s26 = sshll.u32 %s2042_s0, 5  ;;  %s333_s28 = scalar_lea.sflag [#allocation8], %s2042_s0 }
  0x92   : > { %s2054_s13 = scalar_lea.vmem [#allocation7], %s1353_s26 }
  0x93   : > { %1778 = dma.done.wait (%p3018_p11), %s333_s28, 512  }
  0x94   : > { %1780 = vsyncadd (%p3018_p11), %s333_s28, 4294966784  ;;  %p3019_p2 = scmp.ne.s32.totalorder %s3001_s29, 0 }
  0x96   : > { %1782 = dma.done.wait (%p3019_p2), [#allocation6], 64  }
  0x97   : > { %1784 = vsyncadd (%p3019_p2), [#allocation6], 4294967232 }
  0x98   : > { %1786 = dma.done.wait (%p3019_p2), [#allocation11], 144  }
  0x99   : > { %1788 = vsyncadd (%p3019_p2), [#allocation11], 4294967152 }
  0x9a   : > { %353 = sfence }
  0x9b   : > { %v2069_v0 = vld [vmem:[%s2046_s24] sm:$0xff]  ;;  %v389_v1 = vlaneseq  ;;  %v2072_v2 = vld [vmem:[%s2046_s24 + $0x8] sm:$0xff]  ;;  %s1830_s6 = smov 1   ;;  %s1831_s29 = smov 127   ;;  %v2101_v10 = vld [vmem:[%s2046_s24 + $0x10] sm:$0xff] }
  0x9c   : > { %393 = vrot.lane.b32.xlu0 %v2069_v0, %s1830_s6  ;;  %v410_v3 = vrot.slane %v2072_v2, 1  ;;  %v411_v4 = vrot.slane %v2069_v0, 1  ;;  %v430_v6 = vrot.slane %v2072_v2, 2  ;;  %v431_v7 = vrot.slane %v2069_v0, 2  ;;  %v2108_v11 = vld [vmem:[%s2046_s24 + $0x18] sm:$0xff]  ;;  %v791_v12 = vld [vmem:[%s2054_s13] sm:$0xff] }
  0x9d   : > { %v2078_v5 = vshrl.u32 %v389_v1, 7  ;;  %v2116_v13 = vld [vmem:[%s2046_s24 + $0x20] sm:$0xff]  ;;  %v808_v14 = vrot.slane %v791_v12, 1  ;;  %v469_v15 = vrot.slane %v2108_v11, 1  ;;  %v470_v16 = vrot.slane %v2101_v10, 1  ;;  %v2137_v19 = vld [vmem:[%s2046_s24 + $0x28] sm:$0xff] }
  0x9e   : > { %v1453_v20 = vld [vmem:[%s2054_s13 + $0x8] sm:$0xff]  ;;  %v2145_v21 = vld [vmem:[%s2046_s24 + $0x30] sm:$0xff]  ;;  %v528_v23 = vrot.slane %v2137_v19, 1  ;;  %v529_v24 = vrot.slane %v2116_v13, 1  ;;  %v2166_v27 = vld [vmem:[%s2046_s24 + $0x38] sm:$0xff]  ;;  %v827_v34 = vrot.slane %v791_v12, 2 }
  0x9f   : > { %vm409_vm0 = vcmp.ge.s32.totalorder %v2078_v5, 7  ;;  %vm429_vm1 = vcmp.ge.s32.totalorder %v2078_v5, 6  ;;  %v866_v22 = vrot.slane %v1453_v20, 1  ;;  %v1464_v28 = vld [vmem:[%s2054_s13 + $0x10] sm:$0xff]  ;;  %v587_v30 = vrot.slane %v2166_v27, 1  ;;  %v1475_v35 = vld [vmem:[%s2054_s13 + $0x18] sm:$0xff] }
  0xa0   : > { %395 = vrot.lane.b32.xlu0 %v2069_v0, %s1831_s29  ;;  %v2088_v8 = vsel %vm409_vm0, %v410_v3, %v411_v4  ;;  %v2094_v9 = vsel %vm429_vm1, %v430_v6, %v431_v7  ;;  %v2126_v17 = vsel %vm409_vm0, %v808_v14, %v410_v3  ;;  %v2134_v18 = vsel %vm409_vm0, %v469_v15, %v470_v16  ;;  %s2276_s16 = sld [smem:[#allocation9 + $0x1]]  ;;  %s2278_s25 = sld [smem:[#allocation9]] }
  0xa1   : > { %413 = vrot.lane.b32.xlu1 %v2088_v8, %s1830_s6  ;;  %v2155_v25 = vsel %vm409_vm0, %v866_v22, %v469_v15  ;;  %v2163_v26 = vsel %vm409_vm0, %v528_v23, %v529_v24  ;;  %v924_v29 = vrot.slane %v1464_v28, 1  ;;  %v588_v31 = vrot.slane %v2145_v21, 1  ;;  %s2280_s17 = sld [smem:[#allocation9 + $0x2]]  ;;  %s2282_s10 = sld [smem:[#allocation9 + $0x3]] }
  0xa2   : > { %v488_v36 = vrot.slane %v2108_v11, 2  ;;  %v489_v37 = vrot.slane %v2101_v10, 2  ;;  %v2200_v38 = vsel %vm429_vm1, %v827_v34, %v430_v6  ;;  %v982_v39 = vrot.slane %v1475_v35, 1  ;;  %s2284_s4 = sld [smem:[#allocation9 + $0x4]]  ;;  %s2289_s11 = sld [smem:[#allocation9 + $0x5]] }
  0xa3   : > { %v2181_v32 = vsel %vm409_vm0, %v924_v29, %v528_v23  ;;  %v2189_v33 = vsel %vm409_vm0, %v587_v30, %v588_v31  ;;  %v885_v41 = vrot.slane %v1453_v20, 2  ;;  %v547_v44 = vrot.slane %v2137_v19, 2  ;;  %s2291_s2 = sld [smem:[#allocation9 + $0x6]]  ;;  %s2293_s15 = sld [smem:[#allocation9 + $0x7]] }
  0xa4   : > { %433 = vrot.lane.b32.xlu0 %v2094_v9, %s1830_s6  ;;  %v2208_v40 = vsel %vm429_vm1, %v488_v36, %v489_v37  ;;  %v2212_v42 = vsel %vm409_vm0, %v982_v39, %v587_v30  ;;  %v548_v45 = vrot.slane %v2116_v13, 2  ;;  %v943_v46 = vrot.slane %v1464_v28, 2  ;;  %s2298_s3 = sld [smem:[#allocation9 + $0x81]]  ;;  %s2303_s12 = sld [smem:[#allocation9 + $0x80]] }
  0xa5   : > { %415 = vrot.lane.b32.xlu1 %v2088_v8, %s1831_s29  ;;  %v2220_v43 = vsel %vm429_vm1, %v885_v41, %v488_v36  ;;  %v606_v49 = vrot.slane %v2166_v27, 2  ;;  %v607_v50 = vrot.slane %v2145_v21, 2  ;;  %v1001_v52 = vrot.slane %v1475_v35, 2  ;;  %s2315_s27 = sld [smem:[#allocation9 + $0x82]]  ;;  %s2321_s30 = sld [smem:[#allocation9 + $0x84]] }
  0xa6   : > { %v2234_v47 = vsel %vm429_vm1, %v547_v44, %v548_v45  ;;  %v2242_v48 = vsel %vm429_vm1, %v943_v46, %v547_v44  ;;  %v402_v54 = vstv %s2276_s16  ;;  %v398_v55 = vstv %s2278_s25  ;;  %s2323_s14 = sld [smem:[#allocation9 + $0x83]]  ;;  %s2327_s24 = sld [smem:[#allocation9 + $0x100]] }
  0xa7   : > { %v2256_v51 = vsel %vm429_vm1, %v606_v49, %v607_v50  ;;  %v2264_v53 = vsel %vm429_vm1, %v1001_v52, %v606_v49  ;;  %v403_v56 = vmul.f32 %v402_v54, %v2069_v0  ;;  %v406_v59 = vstv %s2280_s17  ;;  %s2329_s26 = sld [smem:[#allocation9 + $0x101]]  ;;  %s2334_s28 = sld [smem:[#allocation9 + $0x102]] }
  0xa8   : > { %453 = vrot.lane.b32.xlu0 %v2101_v10, %s1830_s6  ;;  %3020 = sst [smem:[#allocation33_spill]] %s2289_s11  ;;  %v418_v61 = vstv %s2282_s10  ;;  %v422_v62 = vstv %s2284_s4  ;;  %v426_v6 = vstv %s2289_s11  ;;  %v802_v28 = vmul.f32 %v402_v54, %v2072_v2  ;;  %s2337_s13 = sld [smem:[#allocation9 + $0x104]] }
  0xa9   : > { %792 = vrot.lane.b32.xlu1 %v2072_v2, %s1830_s6  ;;  %3021 = sst [smem:[#allocation34_spill]] %s2291_s2  ;;  %v423_v4 = vmul.f32 %v422_v62, %v2088_v8  ;;  %v438_v7 = vstv %s2291_s2  ;;  %v442_v16 = vstv %s2293_s15  ;;  %s2351_s16 = sld [smem:[#allocation9 + $0x181]] }
  0xaa   : > { %v443_v8 = vmul.f32 %v442_v16, %v2094_v9  ;;  %v462_v31 = vstv %s2298_s3  ;;  %v458_v37 = vstv %s2303_s12  ;;  %s2356_s25 = sld [smem:[#allocation9 + $0x182]]  ;;  %s2359_s17 = sld [smem:[#allocation9 + $0x184]] }
  0xab   : > { %v860_v36 = vmul.f32 %v2108_v11, %v462_v31  ;;  %v466_v54 = vstv %s2315_s27  ;;  %s2363_s10 = sld [smem:[#allocation9 + $0x183]]  ;;  %s2367_s4 = sld [smem:[#allocation9 + $0x87]] }
  0xac   : > { %850 = vrot.lane.b32.xlu0 %v2108_v11, %s1830_s6  ;;  %s2369_s3 = sld [smem:[#allocation9 + $0x107]]  ;;  %s2378_s27 = sld [smem:[#allocation9 + $0x85]] }
  0xad   : > { %794 = vrot.lane.b32.xlu1 %v2072_v2, %s1831_s29  ;;  %s2371_s12 = sld [smem:[#allocation9 + $0x187]]  ;;  %s2404_s1 = sld [smem:[#allocation10 + $0x180]] }
  0xae   : > { %s2409_s22 = sld [smem:[#allocation12 + $0x1]]  ;;  %s2411_s8 = sld [smem:[#allocation12 + $0x2]] }
  0xaf   : > { %s2415_s20 = sld [smem:[#allocation12 + $0x3]]  ;;  %s2417_s19 = sld [smem:[#allocation12 + $0x4]] }
  0xb0   : > { %512 = vrot.lane.b32.xlu0 %v2116_v13, %s1830_s6  ;;  %3022 = sst [smem:[#allocation35_spill]] %s2356_s25  ;;  %s2421_s23 = sld [smem:[#allocation12 + $0x6]] }
  0xb1   : > { %455 = vrot.lane.b32.xlu1 %v2101_v10, %s1831_s29  ;;  %3023 = sst [smem:[#allocation36_spill]] %s2363_s10  ;;  %s2423_s9 = sld [smem:[#allocation12 + $0x7]] }
  0xb2   : > { %s2425_s18 = sld [smem:[#allocation10 + $0x200]]  ;;  %s2442_s0 = sld [smem:[#allocation9 + $0x185]] }
  0xb3   : > { %3027 = sst [smem:[#allocation40_spill]] %s2404_s1  ;;  %s2433_s7 = sld [smem:[#allocation10 + $0x280]] }
  0xb4   : > { %852 = vrot.lane.b32.xlu0 %v2108_v11, %s1831_s29  ;;  %v463_v11 = vmul.f32 %v2101_v10, %v462_v31  ;;  %3028 = sst [smem:[#allocation41_spill]] %s2409_s22  ;;  %s2435_s5 = sld [smem:[#allocation10 + $0x300]] }
  0xb5   : > { %811 = vrot.lane.b32.xlu1 %v2126_v17, %s1830_s6  ;;  %3029 = sst [smem:[#allocation42_spill]] %s2411_s8  ;;  %s2438_s21 = sld [smem:[#allocation10 + $0x380]] }
  0xb6   : > { %3030 = sst [smem:[#allocation43_spill]] %s2415_s20  ;;  %s2445_s2 = sld [smem:[#allocation9 + $0x106]] }
  0xb7   : > { %3031 = sst [smem:[#allocation44_spill]] %s2417_s19  ;;  %s2476_s15 = sld [smem:[#allocation10 + $0x101]] }
  0xb8   : > { %472 = vrot.lane.b32.xlu0 %v2134_v18, %s1830_s6  ;;  %3033 = sst [smem:[#allocation46_spill]] %s2421_s23  ;;  %s2494_s11 = sld [smem:[#allocation10 + $0x281]] }
  0xb9   : > { %908 = vrot.lane.b32.xlu1 %v2137_v19, %s1830_s6  ;;  %3034 = sst [smem:[#allocation47_spill]] %s2423_s9 }
  0xbb   : > { %3035 = sst [smem:[#allocation48_spill]] %s2438_s21 }
  0xbc   : > { %571 = vrot.lane.b32.xlu0 %v2145_v21, %s1830_s6 }
  0xbd   : > { %514 = vrot.lane.b32.xlu1 %v2116_v13, %s1831_s29  ;;  %3037 = sst [smem:[#allocation50_spill]] %s2476_s15  ;;  %s2502_s15 = sld [smem:[#allocation10 + $0x381]] }
  0xc0   : > { %910 = vrot.lane.b32.xlu0 %v2137_v19, %s1831_s29 }
  0xc1   : > { %869 = vrot.lane.b32.xlu1 %v2155_v25, %s1830_s6 }
  0xc4   : > { %531 = vrot.lane.b32.xlu0 %v2163_v26, %s1830_s6 }
  0xc5   : > { %966 = vrot.lane.b32.xlu1 %v2166_v27, %s1830_s6 }
  0xc8   : > { %813 = vrot.lane.b32.xlu0 %v2126_v17, %s1831_s29 }
  0xc9   : > { %573 = vrot.lane.b32.xlu1 %v2145_v21, %s1831_s29 }
  0xcc   : > { %968 = vrot.lane.b32.xlu0 %v2166_v27, %s1831_s29 }
  0xcd   : > { %927 = vrot.lane.b32.xlu1 %v2181_v32, %s1830_s6 }
  0xd0   : > { %590 = vrot.lane.b32.xlu0 %v2189_v33, %s1830_s6 }
  0xd1   : > { %474 = vrot.lane.b32.xlu1 %v2134_v18, %s1831_s29 }
  0xd4   : > { %871 = vrot.lane.b32.xlu0 %v2155_v25, %s1831_s29 }
  0xd5   : > { %830 = vrot.lane.b32.xlu1 %v2200_v38, %s1830_s6 }
  0xd8   : > { %491 = vrot.lane.b32.xlu0 %v2208_v40, %s1830_s6 }
  0xd9   : > { %985 = vrot.lane.b32.xlu1 %v2212_v42, %s1830_s6 }
  0xdc   : > { %888 = vrot.lane.b32.xlu0 %v2220_v43, %s1830_s6 }
  0xdd   : > { %533 = vrot.lane.b32.xlu1 %v2163_v26, %s1831_s29 }
  0xe0   : > { %435 = vrot.lane.b32.xlu0 %v2094_v9, %s1831_s29 }
  0xe1   : > { %929 = vrot.lane.b32.xlu1 %v2181_v32, %s1831_s29 }
  0xe4   : > { %592 = vrot.lane.b32.xlu0 %v2189_v33, %s1831_s29 }
  0xe5   : > { %550 = vrot.lane.b32.xlu1 %v2234_v47, %s1830_s6 }
  0xe8   : > { %946 = vrot.lane.b32.xlu0 %v2242_v48, %s1830_s6 }
  0xe9   : > { %832 = vrot.lane.b32.xlu1 %v2200_v38, %s1831_s29 }
  0xec   : > { %493 = vrot.lane.b32.xlu0 %v2208_v40, %s1831_s29 }
  0xed   : > { %987 = vrot.lane.b32.xlu1 %v2212_v42, %s1831_s29 }
  0xf0   : > { %890 = vrot.lane.b32.xlu0 %v2220_v43, %s1831_s29 }
  0xf1   : > { %609 = vrot.lane.b32.xlu1 %v2256_v51, %s1830_s6 }
  0xf4   : > { %552 = vrot.lane.b32.xlu0 %v2234_v47, %s1831_s29 }
  0xf5   : > { %1004 = vrot.lane.b32.xlu1 %v2264_v53, %s1830_s6  ;;  %s2339_s6 = sld [smem:[#allocation9 + $0x103]] }
  0xf8   : > { %611 = vrot.lane.b32.xlu0 %v2256_v51, %s1831_s29 }
  0xf9   : > { %948 = vrot.lane.b32.xlu1 %v2242_v48, %s1831_s29 }
  0xfd   : > { %1006 = vrot.lane.b32.xlu1 %v2264_v53, %s1831_s29  ;;  %s2349_s29 = sld [smem:[#allocation9 + $0x180]] }
 0x10e   : > { %v394_v57 = vpop.permute.xlu0 %393 }
 0x10f   : > { %v399_v58 = vmul.f32 %v398_v55, %v394_v57 }
 0x111   : > { %v404_v60 = vadd.f32 %v403_v56, %v399_v58 }
 0x112   : > { %v396_v63 = vpop.permute.xlu0 %395 }
 0x113   : > { %v407_v1 = vmul.f32 %v406_v59, %v396_v63  ;;  %v414_v0 = vpop.permute.xlu1 %413 }
 0x114   : > { %v419_v3 = vmul.f32 %v418_v61, %v414_v0 }
 0x115   : > { %v408_v5 = vadd.f32 %v407_v1, %v404_v60  ;;  %v481_v60 = vstv %s2321_s30  ;;  %v477_v1 = vstv %s2323_s14  ;;  %s2380_s30 = sld [smem:[#allocation9 + $0x86]]  ;;  %s2384_s14 = sld [smem:[#allocation9 + $0x105]] }
 0x116   : > { %v434_v12 = vpop.permute.xlu0 %433 }
 0x117   : > { %v420_v14 = vadd.f32 %v419_v3, %v408_v5  ;;  %v416_v15 = vpop.permute.xlu1 %415  ;;  %v439_v22 = vmul.f32 %v438_v7, %v434_v12 }
 0x118   : > { %v427_v20 = vmul.f32 %v426_v6, %v416_v15  ;;  %v521_v15 = vstv %s2329_s26  ;;  %s2389_s26 = sld [smem:[#allocation10]] }
 0x119   : > { %v424_v23 = vadd.f32 %v423_v4, %v420_v14  ;;  %v482_v4 = vmul.f32 %v481_v60, %v2134_v18  ;;  %v525_v18 = vstv %s2334_s28  ;;  %s2396_s28 = sld [smem:[#allocation10 + $0x80]] }
 0x11a   : > { %v454_v24 = vpop.permute.xlu0 %453 }
 0x11b   : > { %v428_v29 = vadd.f32 %v427_v20, %v424_v23  ;;  %v793_v30 = vpop.permute.xlu1 %792 }
 0x11c   : > { %v798_v34 = vmul.f32 %v793_v30, %v398_v55  ;;  %v459_v55 = vmul.f32 %v458_v37, %v454_v24  ;;  %v879_v30 = vmul.f32 %v2155_v25, %v481_v60 }
 0x11d   : > { %v440_v35 = vadd.f32 %v439_v22, %v428_v29 }
 0x11e   : > { %v803_v39 = vadd.f32 %v802_v28, %v798_v34  ;;  %v851_v41 = vpop.permute.xlu0 %850  ;;  %v464_v0 = vadd.f32 %v463_v11, %v459_v55  ;;  %v522_v28 = vmul.f32 %v2116_v13, %v521_v15  ;;  %v580_v11 = vstv %s2351_s16  ;;  %3024 = sst [smem:[#allocation37_spill]] %s2389_s26  ;;  %s2508_s16 = sld [smem:[#allocation9 + $0x186]] }
 0x11f   : > { %v856_v44 = vmul.f32 %v851_v41, %v458_v37  ;;  %v795_v45 = vpop.permute.xlu1 %794  ;;  %v2319_v46 = vadd.f32 %v443_v8, %v440_v35  ;;  %v540_v35 = vstv %s2337_s13  ;;  %s2398_s13 = sld [smem:[#allocation10 + $0x100]] }
 0x120   : > { %v806_v2 = vmul.f32 %v795_v45, %v406_v59  ;;  %v821_v59 = vmul.f32 %v2126_v17, %v422_v62  ;;  %v541_v45 = vmul.f32 %v540_v35, %v2163_v26  ;;  %v918_v26 = vmul.f32 %v2137_v19, %v521_v15 }
 0x121   : > { %v861_v9 = vadd.f32 %v860_v36, %v856_v44  ;;  %v581_v19 = vmul.f32 %v2145_v21, %v580_v11  ;;  %v937_v21 = vmul.f32 %v2181_v32, %v540_v35  ;;  %v500_v15 = vstv %s2367_s4  ;;  %s2447_s4 = sld [smem:[#allocation9 + $0x88]] }
 0x122   : > { %v807_v49 = vadd.f32 %v806_v2, %v803_v39  ;;  %v513_v50 = vpop.permute.xlu0 %512  ;;  %v536_v39 = vstv %s2339_s6  ;;  %s2402_s6 = sld [smem:[#allocation12]]  ;;  %v2467_v35 = vmul.f32 %v2220_v43, %v500_v15 }
 0x123   : > { %v456_v52 = vpop.permute.xlu1 %455 }
 0x124   : > { %v467_v57 = vmul.f32 %v466_v54, %v456_v52 }
 0x125   : > { %3025 = sst [smem:[#allocation38_spill]] %s2398_s13 }
 0x126   : > { %v853_v56 = vpop.permute.xlu0 %852  ;;  %v468_v5 = vadd.f32 %v467_v57, %v464_v0  ;;  %v599_v0 = vstv %s2359_s17  ;;  %s2419_s17 = sld [smem:[#allocation12 + $0x5]] }
 0x127   : > { %v812_v58 = vpop.permute.xlu1 %811  ;;  %v864_v24 = vmul.f32 %v853_v56, %v466_v54  ;;  %v576_v54 = vstv %s2349_s29  ;;  %v600_v32 = vmul.f32 %v599_v0, %v2189_v33  ;;  %3036 = sst [smem:[#allocation49_spill]] %s2447_s4  ;;  %v2452_v33 = vmul.f32 %v2200_v38, %v442_v16  ;;  %s1832_s29 = smov [#allocation13]  }
 0x128   : > { %v817_v63 = vmul.f32 %v812_v58, %v418_v61  ;;  %v517_v61 = vstv %s2327_s24  ;;  %s2387_s24 = sld [smem:[#allocation9 + $0x8]]  ;;  %3026 = sst [smem:[#allocation39_spill]] %s2402_s6 }
 0x129   : > { %v518_v8 = vmul.f32 %v517_v61, %v513_v50  ;;  %v865_v36 = vadd.f32 %v864_v24, %v861_v9 }
 0x12a   : > { %v818_v3 = vadd.f32 %v817_v63, %v807_v49  ;;  %v473_v10 = vpop.permute.xlu0 %472 }
 0x12b   : > { %v478_v12 = vmul.f32 %v477_v1, %v473_v10  ;;  %v909_v14 = vpop.permute.xlu1 %908  ;;  %v523_v41 = vadd.f32 %v522_v28, %v518_v8  ;;  %v618_v8 = vstv %s2371_s12  ;;  %s2461_s12 = sld [smem:[#allocation10 + $0x81]] }
 0x12c   : > { %v2341_v17 = vadd.f32 %v821_v59, %v818_v3  ;;  %v914_v52 = vmul.f32 %v909_v14, %v517_v61  ;;  %v584_v59 = vstv %s2356_s25  ;;  %3032 = sst [smem:[#allocation45_spill]] %s2419_s17  ;;  %v2484_v43 = vmul.f32 %v618_v8, %v2256_v51  ;;  %s2492_s25 = sld [smem:[#allocation10 + $0x201]] }
 0x12d   : > { %v479_v62 = vadd.f32 %v478_v12, %v468_v5  ;;  %v595_v12 = vstv %s2363_s10  ;;  %s2478_s10 = sld [smem:[#allocation10 + $0x181]]  ;;  %v645_v51 = vstv %s2389_s26  ;;  %s2516_s26 = sld [smem:[#allocation10 + $0x2]] }
 0x12e   : > { %v572_v20 = vpop.permute.xlu0 %571  ;;  %v919_v63 = vadd.f32 %v918_v26, %v914_v52  ;;  %v634_v26 = vstv %s2415_s20  ;;  %v636_v52 = vstv %s2417_s19  ;;  %s2528_s20 = sld [smem:[#allocation10 + $0x102]] }
 0x12f   : > { %v515_v22 = vpop.permute.xlu1 %514  ;;  %v2345_v23 = vadd.f32 %v482_v4, %v479_v62  ;;  %v577_v60 = vmul.f32 %v576_v54, %v572_v20  ;;  %s2546_s19 = sld [smem:[#allocation10 + $0x302]] }
 0x130   : > { %v526_v31 = vmul.f32 %v525_v18, %v515_v22 }
 0x131   : > { %v582_v14 = vadd.f32 %v581_v19, %v577_v60  ;;  %v661_v19 = vstv %s2425_s18  ;;  %v665_v60 = vstv %s2433_s7 }
 0x132   : > { %v911_v29 = vpop.permute.xlu0 %910  ;;  %v527_v2 = vadd.f32 %v526_v31, %v523_v41  ;;  %v446_v41 = vstv %s2387_s24 }
 0x133   : > { %v870_v34 = vpop.permute.xlu1 %869  ;;  %v922_v58 = vmul.f32 %v911_v29, %v525_v18  ;;  %v559_v18 = vstv %s2369_s3  ;;  %s2459_s3 = sld [smem:[#allocation10 + $0x1]]  ;;  %3038 = sst [smem:[#allocation51_spill]] %s2478_s10 }
 0x134   : > { %v875_v37 = vmul.f32 %v870_v34, %v477_v1  ;;  %v2464_v34 = vmul.f32 %v2212_v42, %v599_v0  ;;  %v2470_v38 = vmul.f32 %v559_v18, %v2234_v47  ;;  %v2481_v42 = vmul.f32 %v2242_v48, %v559_v18  ;;  %s2500_s10 = sld [smem:[#allocation10 + $0x301]]  ;;  %3041 = sst [smem:[#allocation52_spill]] %s2528_s20 }
 0x135   : > { %v923_v4 = vadd.f32 %v922_v58, %v919_v63  ;;  %v2487_v47 = vmul.f32 %v2264_v53, %v618_v8  ;;  %v496_v48 = vstv %s2380_s30  ;;  %v649_v53 = vstv %s2396_s28  ;;  %3047 = sst [smem:[#allocation34_spill]] %s2546_s19  ;;  %s3067_s18 = sld [smem:[#allocation51_spill]] }
 0x136   : > { %v876_v44 = vadd.f32 %v875_v37, %v865_v36  ;;  %v532_v13 = vpop.permute.xlu0 %531  ;;  %v976_v36 = vmul.f32 %v2166_v27, %v580_v11  ;;  %v485_v37 = vstv %s2378_s27  ;;  %s2514_s27 = sld [smem:[#allocation9 + $0x108]]  ;;  %v638_v11 = vstv %s2419_s17  ;;  %s2568_s17 = sld [smem:[#allocation10 + $0x103]] }
 0x137   : > { %v537_v49 = vmul.f32 %v536_v39, %v532_v13  ;;  %v2361_v25 = vpop.permute.xlu1 %966  ;;  %v657_v13 = vstv %s2404_s1  ;;  %v642_v58 = vstv %s2423_s9  ;;  %s2522_s1 = sld [smem:[#allocation10 + $0x82]]  ;;  %v669_v63 = vstv %s2435_s5  ;;  %s2709_s5 = sld [smem:[#allocation10 + $0x183]] }
 0x138   : > { %v2365_v9 = vadd.f32 %v879_v30, %v876_v44  ;;  %v2455_v30 = vmul.f32 %v500_v15, %v2208_v40  ;;  %v653_v44 = vstv %s2398_s13  ;;  %v673_v0 = vstv %s2438_s21  ;;  %s2530_s13 = sld [smem:[#allocation10 + $0x182]]  ;;  %s2711_s19 = sld [smem:[#allocation10 + $0x203]] }
 0x139   : > { %v538_v50 = vadd.f32 %v537_v49, %v527_v2  ;;  %v628_v2 = vstv %s2402_s6  ;;  %v630_v49 = vstv %s2409_s22  ;;  %s3039_s22 = sld [smem:[#allocation50_spill]]  ;;  %s2538_s9 = sld [smem:[#allocation10 + $0x202]]  ;;  %v614_v15 = vstv %s2508_s16 }
 0x13a   : > { %v2376_v55 = vpop.permute.xlu0 %813  ;;  %s2548_s21 = sld [smem:[#allocation10 + $0x382]]  ;;  %s2566_s6 = sld [smem:[#allocation10 + $0x83]] }
 0x13b   : > { %v574_v56 = vpop.permute.xlu1 %573  ;;  %v2382_v57 = vadd.f32 %v541_v45, %v538_v50  ;;  %v632_v50 = vstv %s2411_s8  ;;  %s2560_s8 = sld [smem:[#allocation10 + $0x3]] }
 0x13c   : > { %v585_v3 = vmul.f32 %v584_v59, %v574_v56  ;;  %v640_v56 = vstv %s2421_s23  ;;  %s2540_s23 = sld [smem:[#allocation10 + $0x282]]  ;;  %3052 = sst [smem:[#allocation55_spill]] %s2568_s17 }
 0x13d   : > { %s3099_s17 = sld [smem:[#allocation29_spill]] }
 0x13e   : > { %v2400_v1 = vpop.permute.xlu0 %968  ;;  %v586_v20 = vadd.f32 %v585_v3, %v582_v14  ;;  %v972_v3 = vmul.f32 %v2361_v25, %v576_v54  ;;  %v825_v25 = vmul.f32 %v2376_v55, %v426_v6 }
 0x13f   : > { %v928_v10 = vpop.permute.xlu1 %927  ;;  %3044 = sst [smem:[#allocation33_spill]] %s2538_s9  ;;  %v980_v54 = vmul.f32 %v2400_v1, %v584_v59 }
 0x140   : > { %v933_v5 = vmul.f32 %v928_v10, %v536_v39  ;;  %v544_v39 = vstv %s2384_s14  ;;  %3048 = sst [smem:[#allocation53_spill]] %s2548_s21  ;;  %v977_v6 = vadd.f32 %v976_v36, %v972_v3  ;;  %v826_v36 = vadd.f32 %v825_v25, %v2341_v17  ;;  %s2751_s21 = sld [smem:[#allocation10 + $0x303]] }
 0x141   : > { %3050 = sst [smem:[#allocation36_spill]] %s2560_s8  ;;  %s1725_s14 = sshll.u32 %s1832_s29, 4  ;;  %s1726_s14 = int_to_ptr.vmem [resolvable:$false] %s1725_s14 }
 0x142   : > { %v934_v62 = vadd.f32 %v933_v5, %v923_v4  ;;  %v591_v61 = vpop.permute.xlu0 %590  ;;  %v555_v4 = vstv %s2445_s2  ;;  %v504_v5 = vstv %s2447_s4  ;;  %3045 = sst [smem:[#allocation35_spill]] %s2540_s23  ;;  %v981_v3 = vadd.f32 %v980_v54, %v977_v6  ;;  %s1727_s24 = scalar_lea.vmem %s1726_s14, 4096 }
 0x143   : > { %v596_v22 = vmul.f32 %v595_v12, %v591_v61  ;;  %v2431_v24 = vpop.permute.xlu1 %474  ;;  %v682_v61 = vstv %s2461_s12  ;;  %3051 = sst [smem:[#allocation54_spill]] %s2566_s6  ;;  %p3100_p9 = scmp.ne.s32.totalorder %s3099_s17, 0 }
 0x144   : > { %v2440_v28 = vadd.f32 %v937_v21, %v934_v62  ;;  %v603_v21 = vstv %s2442_s0  ;;  %v678_v62 = vstv %s2459_s3  ;;  %s3079_s0 = sld [smem:[#allocation34_spill]]  ;;  %s3086_s28 = sld [smem:[#allocation54_spill]] }
 0x145   : > { %v597_v29 = vadd.f32 %v596_v22, %v586_v20  ;;  %v486_v20 = vmul.f32 %v485_v37, %v2431_v24  ;;  %v694_v22 = vstv %s2492_s25  ;;  %s3082_s25 = sld [smem:[#allocation32_spill]]  ;;  %s3087_s3 = sld [smem:[#allocation55_spill]] }
 0x146   : > { %v2457_v31 = vpop.permute.xlu0 %871 }
 0x147   : > { %v2472_v40 = vpop.permute.xlu1 %830  ;;  %v2474_v16 = vadd.f32 %v600_v32, %v597_v29  ;;  %v686_v32 = vstv %s3039_s22  ;;  %s2558_s22 = sld [smem:[#allocation9 + $0x188]]  ;;  %v883_v18 = vmul.f32 %v2457_v31, %v485_v37  ;;  %v563_v29 = vstv %s2514_s27  ;;  %s3098_s27 = sld [smem:[#allocation61_spill]] }
 0x148   : > { %v836_v55 = vmul.f32 %v2472_v40, %v438_v7  ;;  %v487_v7 = vadd.f32 %v486_v20, %v2345_v23  ;;  %v727_v20 = vstv %s2538_s9 }
 0x14a   : > { %v492_v27 = vpop.permute.xlu0 %491  ;;  %v837_v8 = vadd.f32 %v836_v55, %v826_v36 }
 0x14b   : > { %v986_v45 = vpop.permute.xlu1 %985  ;;  %v497_v59 = vmul.f32 %v496_v48, %v492_v27  ;;  %s1357_s12 = sshll.u32 %s3082_s25, 7  ;;  %s1178_s4 = scalar_lea.sflag [#allocation5], %s3082_s25 }
 0x14c   : > { %v991_v1 = vmul.f32 %v986_v45, %v595_v12  ;;  %v884_v12 = vadd.f32 %v883_v18, %v2365_v9  ;;  %v715_v45 = vstv %s2522_s1  ;;  %v731_v9 = vstv %s2540_s23  ;;  %s2753_s23 = sld [smem:[#allocation10 + $0x383]] }
 0x14d   : > { %v498_v17 = vadd.f32 %v497_v59, %v487_v7  ;;  %v622_v59 = vstv %s2558_s22  ;;  %s2806_s22 = scalar_lea.vmem [#allocation13], %s1357_s12 }
 0x14e   : > { %v889_v10 = vpop.permute.xlu0 %888  ;;  %v992_v25 = vadd.f32 %v991_v1, %v981_v3 }
 0x14f   : > { %v534_v14 = vpop.permute.xlu1 %533  ;;  %v894_v40 = vmul.f32 %v889_v10, %v496_v48  ;;  %v723_v10 = vstv %s2530_s13 }
 0x150   : > { %v545_v23 = vmul.f32 %v544_v39, %v534_v14 }
 0x151   : > { %v895_v18 = vadd.f32 %v894_v40, %v884_v12  ;;  %v841_v40 = vadd.f32 %v2452_v33, %v837_v8 }
 0x152   : > { %v436_v24 = vpop.permute.xlu0 %435  ;;  %v546_v3 = vadd.f32 %v545_v23, %v2382_v57 }
 0x153   : > { %v447_v31 = vmul.f32 %v446_v41, %v436_v24  ;;  %v930_v37 = vpop.permute.xlu1 %929  ;;  %v719_v24 = vstv %s2528_s20  ;;  %v2625_v8 = vadd.f32 %v2467_v35, %v895_v18  ;;  %s2741_s20 = sld [smem:[#allocation10 + $0x283]] }
 0x154   : > { %v941_v6 = vmul.f32 %v930_v37, %v544_v39  ;;  %v502_v39 = vadd.f32 %v2455_v30, %v498_v17  ;;  %v2609_v37 = vadd.f32 %v2464_v34, %v992_v25 }
 0x155   : > { %v448_v27 = vadd.f32 %v447_v31, %v2319_v46 }
 0x156   : > { %v593_v54 = vpop.permute.xlu0 %592  ;;  %v942_v30 = vadd.f32 %v941_v6, %v2440_v28 }
 0x157   : > { %v551_v48 = vpop.permute.xlu1 %550  ;;  %v646_v1 = vmul.f32 %v645_v51, %v448_v27  ;;  %v650_v12 = vmul.f32 %v649_v53, %v448_v27  ;;  %v654_v31 = vmul.f32 %v653_v44, %v448_v27  ;;  %v658_v36 = vmul.f32 %v657_v13, %v448_v27 }
 0x158   : > { %v556_v57 = vmul.f32 %v555_v4, %v551_v48  ;;  %v662_v33 = vmul.f32 %v661_v19, %v448_v27  ;;  %v666_v25 = vmul.f32 %v665_v60, %v448_v27  ;;  %v670_v48 = vmul.f32 %v669_v63, %v448_v27 }
 0x159   : > { %v647_v17 = vadd.f32 %v646_v1, %v628_v2  ;;  %v674_v14 = vmul.f32 %v673_v0, %v448_v27  ;;  %v604_v28 = vmul.f32 %v603_v21, %v593_v54  ;;  %v651_v1 = vadd.f32 %v650_v12, %v630_v49 }
 0x15a   : > { %v947_v7 = vpop.permute.xlu0 %946  ;;  %v659_v55 = vadd.f32 %v658_v36, %v634_v26  ;;  %v667_v36 = vadd.f32 %v666_v25, %v638_v11 }
 0x15b   : > { %v833_v23 = vpop.permute.xlu1 %832  ;;  %v952_v35 = vmul.f32 %v947_v7, %v555_v4 }
 0x15c   : > { %v844_v34 = vmul.f32 %v833_v23, %v446_v41  ;;  %v557_v41 = vadd.f32 %v556_v57, %v546_v3  ;;  %v655_v23 = vadd.f32 %v654_v31, %v632_v50  ;;  %v663_v31 = vadd.f32 %v662_v33, %v636_v52 }
 0x15e   : > { %v845_v18 = vadd.f32 %v844_v34, %v841_v40  ;;  %v494_v6 = vpop.permute.xlu0 %493  ;;  %v671_v40 = vadd.f32 %v670_v48, %v640_v56  ;;  %v2669_v57 = vadd.f32 %v2470_v38, %v557_v41 }
 0x15f   : > { %v505_v27 = vmul.f32 %v504_v5, %v494_v6  ;;  %v988_v46 = vpop.permute.xlu1 %987 }
 0x160   : > { %v1040_v54 = vmul.f32 %v845_v18, %v645_v51  ;;  %v1044_v4 = vmul.f32 %v845_v18, %v649_v53  ;;  %v1048_v3 = vmul.f32 %v845_v18, %v653_v44  ;;  %v1052_v7 = vmul.f32 %v845_v18, %v657_v13 }
 0x161   : > { %v1056_v12 = vmul.f32 %v845_v18, %v661_v19  ;;  %v675_v51 = vadd.f32 %v674_v14, %v642_v58  ;;  %v605_v53 = vadd.f32 %v604_v28, %v2474_v16  ;;  %v2666_v44 = vadd.f32 %v952_v35, %v942_v30 }
 0x162   : > { %v891_v13 = vpop.permute.xlu0 %890  ;;  %v1041_v33 = vadd.f32 %v1040_v54, %v628_v2  ;;  %v1060_v19 = vmul.f32 %v845_v18, %v665_v60  ;;  %v1064_v14 = vmul.f32 %v845_v18, %v669_v63  ;;  %v1068_v16 = vmul.f32 %v845_v18, %v673_v0 }
 0x163   : > { %v610_v30 = vpop.permute.xlu1 %609  ;;  %v1045_v34 = vadd.f32 %v1044_v4, %v630_v49  ;;  %v1049_v38 = vadd.f32 %v1048_v3, %v632_v50  ;;  %v1053_v25 = vadd.f32 %v1052_v7, %v634_v26  ;;  %v506_v48 = vadd.f32 %v505_v27, %v502_v39 }
 0x164   : > { %v1057_v2 = vadd.f32 %v1056_v12, %v636_v52  ;;  %v999_v60 = vmul.f32 %v988_v46, %v603_v21  ;;  %v902_v28 = vmul.f32 %v891_v13, %v504_v5  ;;  %v615_v63 = vmul.f32 %v614_v15, %v610_v30 }
 0x165   : > { %v679_v0 = vmul.f32 %v678_v62, %v506_v48  ;;  %v683_v41 = vmul.f32 %v682_v61, %v506_v48  ;;  %v687_v35 = vmul.f32 %v686_v32, %v506_v48  ;;  %v3068_v49 = vstv %s3067_s18 }
 0x166   : > { %v691_v18 = vmul.f32 %v3068_v49, %v506_v48  ;;  %v695_v50 = vmul.f32 %v694_v22, %v506_v48  ;;  %v3069_v26 = vstv %s2494_s11  ;;  %v3070_v52 = vstv %s2500_s10  ;;  %v553_v3 = vpop.permute.xlu0 %552  ;;  %s3080_s11 = sld [smem:[#allocation53_spill]]  ;;  %s3085_s10 = sld [smem:[#allocation36_spill]] }
 0x167   : > { %v699_v39 = vmul.f32 %v3069_v26, %v506_v48  ;;  %v703_v21 = vmul.f32 %v3070_v52, %v506_v48  ;;  %v3071_v46 = vstv %s2502_s15  ;;  %v680_v6 = vadd.f32 %v679_v0, %v647_v17  ;;  %v1005_v7 = vpop.permute.xlu1 %1004  ;;  %s3092_s15 = sld [smem:[#allocation25_spill]] }
 0x168   : > { %v707_v5 = vmul.f32 %v3071_v46, %v506_v48  ;;  %v684_v27 = vadd.f32 %v683_v41, %v651_v1  ;;  %v688_v54 = vadd.f32 %v687_v35, %v655_v23  ;;  %v692_v4 = vadd.f32 %v691_v18, %v659_v55 }
 0x169   : > { %v696_v12 = vadd.f32 %v695_v50, %v663_v31  ;;  %v700_v13 = vadd.f32 %v699_v39, %v667_v36  ;;  %v704_v17 = vadd.f32 %v703_v21, %v671_v40  ;;  %v1061_v55 = vadd.f32 %v1060_v19, %v638_v11 }
 0x16a   : > { %v708_v1 = vadd.f32 %v707_v5, %v675_v51  ;;  %v1065_v23 = vadd.f32 %v1064_v14, %v640_v56  ;;  %v1069_v30 = vadd.f32 %v1068_v16, %v642_v58  ;;  %v903_v48 = vadd.f32 %v902_v28, %v2625_v8 }
 0x16b   : > { %v1000_v0 = vadd.f32 %v999_v60, %v2609_v37  ;;  %v616_v41 = vadd.f32 %v615_v63, %v605_v53  ;;  %v564_v31 = vmul.f32 %v563_v29, %v553_v3  ;;  %v1010_v36 = vmul.f32 %v1005_v7, %v614_v15  ;;  %v949_v60 = vpop.permute.xlu1 %948 }
 0x16c   : > { %v1073_v40 = vmul.f32 %v903_v48, %v678_v62  ;;  %v1077_v51 = vmul.f32 %v903_v48, %v682_v61  ;;  %v1081_v35 = vmul.f32 %v903_v48, %v686_v32  ;;  %v3072_v11 = vmov %v3068_v49 }
 0x16d   : > { %v1085_v19 = vmul.f32 %v903_v48, %v3072_v11  ;;  %v1089_v56 = vmul.f32 %v903_v48, %v694_v22  ;;  %v3073_v58 = vmov %v3069_v26  ;;  %v3074_v8 = vmov %v3070_v52  ;;  %v612_v22 = vpop.permute.xlu0 %611  ;;  %s1535_s1 = sshll.u32 %s3092_s15, 11 }
 0x16e   : > { %v1093_v14 = vmul.f32 %v903_v48, %v3073_v58  ;;  %v1097_v16 = vmul.f32 %v903_v48, %v3074_v8  ;;  %v3075_v37 = vmov %v3071_v46  ;;  %v2743_v15 = vadd.f32 %v1073_v40, %v1041_v33  ;;  %s2855_s6 = scalar_lea.hbm %s3098_s27, %s1535_s1 }
 0x16f   : > { %v1101_v53 = vmul.f32 %v903_v48, %v3075_v37  ;;  %v2745_v62 = vadd.f32 %v1077_v51, %v1045_v34  ;;  %v2747_v61 = vadd.f32 %v1081_v35, %v1049_v38  ;;  %v2749_v32 = vadd.f32 %v1085_v19, %v1053_v25 }
 0x170   : > { %v2755_v33 = vadd.f32 %v1089_v56, %v1057_v2  ;;  %v2757_v34 = vadd.f32 %v1093_v14, %v1061_v55  ;;  %v2759_v38 = vadd.f32 %v1097_v16, %v1065_v23  ;;  %v565_v28 = vadd.f32 %v564_v31, %v2669_v57 }
 0x171   : > { %v2761_v25 = vadd.f32 %v1101_v53, %v1069_v30  ;;  %v756_v63 = vstv %s2709_s5  ;;  %v760_v49 = vstv %s2711_s19  ;;  %v957_v18 = vadd.f32 %v2481_v42, %v2666_v44 }
 0x172   : > { %v1011_v50 = vadd.f32 %v1010_v36, %v1000_v0  ;;  %v620_v2 = vadd.f32 %v2484_v43, %v616_v41  ;;  %v623_v26 = vmul.f32 %v622_v59, %v612_v22  ;;  %v960_v39 = vmul.f32 %v949_v60, %v563_v29  ;;  %v1007_v0 = vpop.permute.xlu1 %1006 }
 0x173   : > { %v3081_v52 = vstv %s2516_s26  ;;  %v716_v46 = vmul.f32 %v715_v45, %v565_v28  ;;  %v720_v5 = vmul.f32 %v719_v24, %v565_v28  ;;  %v724_v57 = vmul.f32 %v723_v10, %v565_v28  ;;  %s1193_s26 = sshll.u32 %s2806_s22, 4  ;;  %s2857_s26 = int_to_ptr.vmem [resolvable:$true] %s1193_s26 }
 0x174   : > { %v712_v21 = vmul.f32 %v3081_v52, %v565_v28  ;;  %v728_v42 = vmul.f32 %v727_v20, %v565_v28  ;;  %v732_v43 = vmul.f32 %v731_v9, %v565_v28  ;;  %v3083_v44 = vstv %s3079_s0  ;;  %s1721_s30 = scalar_lea.vmem %s2857_s26, 2048  ;;  %p1728_p4 = scmp.lt.s32.totalorder %s2857_s26, %s1726_s14 }
 0x175   : > { %v736_v3 = vmul.f32 %v3083_v44, %v565_v28  ;;  %v3084_v7 = vstv %s3080_s11  ;;  %v717_v23 = vadd.f32 %v716_v46, %v684_v27  ;;  %v721_v30 = vadd.f32 %v720_v5, %v688_v54  ;;  %p1722_p10 = scmp.ne.s32.totalorder %s2857_s26, %s1721_s30  ;;  %p1729_p8 = scmp.lt.s32.totalorder %s1727_s24, %s1721_s30 }
 0x176   : > { %v740_v29 = vmul.f32 %v3084_v7, %v565_v28  ;;  %v713_v55 = vadd.f32 %v712_v21, %v680_v6  ;;  %v725_v48 = vadd.f32 %v724_v57, %v692_v4  ;;  %v729_v41 = vadd.f32 %v728_v42, %v696_v12 }
 0x177   : > { %v733_v31 = vadd.f32 %v732_v43, %v700_v13  ;;  %v737_v36 = vadd.f32 %v736_v3, %v704_v17  ;;  %v764_v51 = vstv %s2741_s20  ;;  %v768_v35 = vstv %s2751_s21  ;;  %p1723_p5 = pnand %p1722_p10, %p3100_p9  ;;  %p1730_p6 = por %p1729_p8, %p1728_p4 }
 0x178   : > { %v741_v40 = vadd.f32 %v740_v29, %v708_v1  ;;  %v772_v11 = vstv %s2753_s23  ;;  %v624_v19 = vadd.f32 %v623_v26, %v620_v2  ;;  %v961_v6 = vadd.f32 %v960_v39, %v957_v18 }
 0x179   : > { %v1015_v27 = vadd.f32 %v2487_v47, %v1011_v50  ;;  %v1018_v54 = vmul.f32 %v1007_v0, %v622_v59  ;;  %v3088_v56 = vstv %s3085_s10  ;;  %v3089_v58 = vstv %s3086_s28  ;;  %p1724_p12 = pneg %p1723_p5 }
 0x17a   : > { %v745_v4 = vmul.f32 %v3088_v56, %v624_v19  ;;  %v749_v14 = vmul.f32 %v3089_v58, %v624_v19  ;;  %v3090_v8 = vstv %s3087_s3  ;;  %v757_v13 = vmul.f32 %v756_v63, %v624_v19 }
 0x17b   : > { %v753_v12 = vmul.f32 %v3090_v8, %v624_v19  ;;  %v761_v17 = vmul.f32 %v760_v49, %v624_v19  ;;  %v765_v1 = vmul.f32 %v764_v51, %v624_v19  ;;  %v769_v16 = vmul.f32 %v768_v35, %v624_v19  ;;  %p1731_p13 = pnand %p1730_p6, %p1724_p12 }
 0x17c   : > { %v773_v37 = vmul.f32 %v772_v11, %v624_v19  ;;  %v746_v53 = vadd.f32 %v745_v4, %v713_v55  ;;  %v750_v47 = vadd.f32 %v749_v14, %v717_v23  ;;  %v758_v22 = vadd.f32 %v757_v13, %v725_v48 }
 0x17d   : > { %v754_v59 = vadd.f32 %v753_v12, %v721_v30  ;;  %v762_v60 = vadd.f32 %v761_v17, %v729_v41  ;;  %v766_v28 = vadd.f32 %v765_v1, %v733_v31  ;;  %v770_v18 = vadd.f32 %v769_v16, %v737_v36 }
 0x17e   : > { %v774_v50 = vadd.f32 %v773_v37, %v741_v40  ;;  %775 = vst [vmem:[%s2806_s22] sm:$0xff] %v746_v53  ;;  %1437 = vst [vmem:[%s2806_s22 + $0x10] sm:$0xff] %v750_v47  ;;  %v3091_v2 = vmov %v3081_v52  ;;  %v1110_v39 = vmul.f32 %v961_v6, %v715_v45  ;;  %v1114_v52 = vmul.f32 %v961_v6, %v719_v24 }
 0x17f   : > { %1438 = vst [vmem:[%s2806_s22 + $0x20] sm:$0xff] %v754_v59  ;;  %1439 = vst [vmem:[%s2806_s22 + $0x30] sm:$0xff] %v758_v22  ;;  %v1106_v26 = vmul.f32 %v961_v6, %v3091_v2  ;;  %v1118_v21 = vmul.f32 %v961_v6, %v723_v10  ;;  %v1122_v46 = vmul.f32 %v961_v6, %v727_v20  ;;  %v3093_v57 = vmov %v3083_v44 }
 0x180   : > { %1440 = vst [vmem:[%s2806_s22 + $0x40] sm:$0xff] %v762_v60  ;;  %1441 = vst [vmem:[%s2806_s22 + $0x50] sm:$0xff] %v766_v28  ;;  %v1126_v5 = vmul.f32 %v961_v6, %v731_v9  ;;  %v1130_v42 = vmul.f32 %v961_v6, %v3093_v57  ;;  %v3094_v45 = vmov %v3084_v7  ;;  %v1111_v43 = vadd.f32 %v1110_v39, %v2745_v62 }
 0x181   : > { %1442 = vst [vmem:[%s2806_s22 + $0x60] sm:$0xff] %v770_v18  ;;  %1443 = vst [vmem:[%s2806_s22 + $0x70] sm:$0xff] %v774_v50  ;;  %v1134_v24 = vmul.f32 %v961_v6, %v3094_v45  ;;  %v1107_v10 = vadd.f32 %v1106_v26, %v2743_v15  ;;  %v1115_v44 = vadd.f32 %v1114_v52, %v2747_v61  ;;  %v3095_v23 = vmov %v3088_v56 }
 0x182   : > { %v1119_v3 = vadd.f32 %v1118_v21, %v2749_v32  ;;  %v1123_v20 = vadd.f32 %v1122_v46, %v2755_v33  ;;  %v1127_v7 = vadd.f32 %v1126_v5, %v2757_v34  ;;  %v1131_v9 = vadd.f32 %v1130_v42, %v2759_v38 }
 0x183   : > { %v1135_v29 = vadd.f32 %v1134_v24, %v2761_v25  ;;  %v1019_v55 = vadd.f32 %v1018_v54, %v1015_v27  ;;  %v3096_v15 = vmov %v3089_v58  ;;  %v3097_v62 = vmov %v3090_v8 }
 0x185   : > { %v1139_v30 = vmul.f32 %v1019_v55, %v3095_v23  ;;  %v1143_v48 = vmul.f32 %v1019_v55, %v3096_v15  ;;  %v1147_v0 = vmul.f32 %v1019_v55, %v3097_v62  ;;  %v1151_v61 = vmul.f32 %v1019_v55, %v756_v63 }
 0x186   : > { %v1155_v32 = vmul.f32 %v1019_v55, %v760_v49  ;;  %v1159_v33 = vmul.f32 %v1019_v55, %v764_v51  ;;  %v1163_v34 = vmul.f32 %v1019_v55, %v768_v35  ;;  %v1167_v38 = vmul.f32 %v1019_v55, %v772_v11 }
 0x187   : > { %v1140_v25 = vadd.f32 %v1139_v30, %v1107_v10  ;;  %v1144_v41 = vadd.f32 %v1143_v48, %v1111_v43  ;;  %v1148_v31 = vadd.f32 %v1147_v0, %v1115_v44  ;;  %v1152_v36 = vadd.f32 %v1151_v61, %v1119_v3 }
 0x188   : > { %v1156_v63 = vadd.f32 %v1155_v32, %v1123_v20  ;;  %v1160_v49 = vadd.f32 %v1159_v33, %v1127_v7  ;;  %v1164_v40 = vadd.f32 %v1163_v34, %v1131_v9  ;;  %v1168_v51 = vadd.f32 %v1167_v38, %v1135_v29 }
 0x189   : > { %1169 = vst [vmem:[%s2806_s22 + $0x8] sm:$0xff] %v1140_v25  ;;  %1523 = vst [vmem:[%s2806_s22 + $0x18] sm:$0xff] %v1144_v41 }
 0x18a   : > { %1524 = vst [vmem:[%s2806_s22 + $0x28] sm:$0xff] %v1148_v31  ;;  %1525 = vst [vmem:[%s2806_s22 + $0x38] sm:$0xff] %v1152_v36 }
 0x18b   : > { %1526 = vst [vmem:[%s2806_s22 + $0x48] sm:$0xff] %v1156_v63  ;;  %1527 = vst [vmem:[%s2806_s22 + $0x58] sm:$0xff] %v1160_v49 }
 0x18c   : > { %1528 = vst [vmem:[%s2806_s22 + $0x68] sm:$0xff] %v1164_v40  ;;  %1529 = vst [vmem:[%s2806_s22 + $0x78] sm:$0xff] %v1168_v51 }
 0x18d   : > { %1734 = shalt.err (!%p1731_p13)
}
 0x18e   : > { %s1735_s2 = scalar_lea.hbm %s2855_s6, 2048  ;;  %s1739_s19 = scalar_lea.hbm %s3098_s27, 4096 }
 0x18f   : > { %p1736_p3 = scmp.ne.s32.totalorder %s2855_s6, %s1735_s2  ;;  %p1740_p11 = scmp.lt.u32.totalorder %s2855_s6, %s3098_s27 }
 0x190   : > { %p1741_p2 = scmp.lt.u32.totalorder %s1739_s19, %s1735_s2  ;;  %p1743_p5 = scmp.lt.u32.totalorder %s1735_s2, %s2855_s6 }
 0x191   : > { %p1737_p7 = pnand %p1736_p3, %p3100_p9 }
 0x192   : > { %p1742_p10 = por %p1741_p2, %p1740_p11 }
 0x193   : > { %p1738_p1 = pneg %p1737_p7 }
 0x194   : > { %p1744_p12 = por %p1743_p5, %p1742_p10 }
 0x196   : > { %p1745_p4 = pnand %p1744_p12, %p1738_p1 }
 0x198   : > { %1748 = shalt.err (!%p1745_p4)
}
 0x199   : > { %s1833_s23 = smov 128   ;;  %s1834_s7 = smov 8  }
 0x19a   : > { %1560 = dma.vmem_to_hbm [thread:$0]  (%p3100_p9), %s2857_s26, 2048, %s2855_s6, %s1178_s4, %s1833_s23, %s1833_s23, %s1834_s7  }
 0x19b PF: > { %s3101_s8 = sld [smem:[#allocation22_spill]]  ;;  %s3102_s9 = sld [smem:[#allocation31_spill]] }
 0x19c   : > { %s3103_s0 = sld [smem:[#allocation27_spill]] }
 0x1a1   : > { %s1208_s11 = sand.u32 1, %s3101_s8   ;;  %p3104_p8 = scmp.ne.s32.totalorder %s3102_s9, 0 }
 0x1a2   : > { %s1209_s10 = scalar_lea.sflag [#allocation5], %s1208_s11 }
 0x1a3   : > { %p1573_p6 = pnand %p1344_p0, %p3104_p8 }
 0x1a5   : > { %1790 = dma.done.wait (!%p1573_p6), %s1209_s10, 2048  }
 0x1a6   : > { %1792 = vsyncadd (!%p1573_p6), %s1209_s10, 4294965248  ;;  %s26_s23 = sadd.s32 1, %s3103_s0   ;;  %s3105_s18 = sld [smem:[#allocation23_spill]] }
 0x1a7   : > { %p23_p13 = scmp.ge.s32.totalorder %s26_s23, 4   ;;  %s3106_s19 = sld [smem:[#allocation24_spill]] }
 0x1a8   : > { %s3107_s20 = sld [smem:[#allocation30_spill]]  ;;  %s3108_s21 = sld [smem:[#allocation26_spill]] }
 0x1a9   : > { %s3109_s22 = sld [smem:[#allocation28_spill]]  ;;  %25 = sbr.rel (!%p23_p13) target bundleno = 17 (0x11), region = 132 }
 0x1b0   :  { %1214 = vsyncpa [#allocation4], 1 }
 0x1b1   :  { %1216 = vsyncpa [#allocation4 + $0x1], 1 }
 0x1b2   :  { %1217 = vsyncpa [#allocation8], 1 }
 0x1b3   :  { %1219 = vsyncpa [#allocation8 + $0x1], 1 }
 0x1b4   :  { %1220 = vsyncpa [#allocation5], 1 }
 0x1b5   :  { %1222 = vsyncpa [#allocation5 + $0x1], 1 }
 0x1b6   :  { %1223 = vsyncpa [#allocation6], 1 }
 0x1b7   :  { %1225 = vsyncpa [#allocation6 + $0x1], 1 }
 0x1b8   :  { %1226 = vsyncpa [#allocation11], 1 }

</bundles_post_ra>
